<compile_context>
chip_gen: v7x
topology: tpu7x:2x2x1
jax: 0.10.0
libtpu: 0.0.40
codegen_flags: <defaults>
</compile_context>

<pallas_src>
import math

import jax
import jax.numpy as jnp
from jax.experimental import pallas as pl
from jax.experimental.pallas import tpu as pltpu

# ----------------------- small M2M100-style config -------------------------
D_MODEL = 32          # d_model (1024 in the real checkpoint)
N_HEADS = 4           # attention heads (16 real)
HEAD_DIM = D_MODEL // N_HEADS
FFN_DIM = 64          # encoder/decoder_ffn_dim (4096 real)
VOCAB = 64            # vocab_size (128112 real)
ENC_LAYERS = 2        # encoder_layers (12 real)
DEC_LAYERS = 2        # decoder_layers (12 real)
PAD_IDX = 1           # pad_token_id
MAX_POS = 64          # positional table size
NEG_INF = -1e9        # additive mask value
EMBED_SCALE = math.sqrt(D_MODEL)     # scale_embedding=True in M2M100
ATTN_SCALE = 1.0 / math.sqrt(HEAD_DIM)

ENC_PARAM_ORDER = ("ln1_g", "ln1_b", "wqkv", "bqkv", "wo", "bo",
                   "ln2_g", "ln2_b", "w1", "b1", "w2", "b2")
DEC_PARAM_ORDER = ("ln1_g", "ln1_b", "wqkv", "bqkv", "wo", "bo",
                   "ln2_g", "ln2_b", "wq_c", "bq_c", "wkv_c", "bkv_c",
                   "wo_c", "bo_c", "ln3_g", "ln3_b", "w1", "b1", "w2", "b2")


# --------------------------- in-kernel helpers ------------------------------
def _ln(x, g, b):
    # x: [M, D] f32, g/b: [1, D] f32
    mean = jnp.mean(x, axis=-1, keepdims=True)
    var = jnp.mean(jnp.square(x - mean), axis=-1, keepdims=True)
    return (x - mean) * jax.lax.rsqrt(var + 1e-5) * g + b


def _split_heads(z, n_mats):
    # z: [M, n_mats*D] f32  ->  [n_mats*H, M, hd] f32 (head-major, one relayout)
    m = z.shape[0]
    zh = z.reshape(m, n_mats * N_HEADS, HEAD_DIM)
    return pltpu.einshape("mhd->hmd", zh)


def _attention(q3, k3, v3, bias):
    # q3: [H, Mq, hd], k3/v3: [H, Mk, hd] f32; bias: [Mq, Mk] additive f32.
    # Head-batched score + context matmuls (no per-head Python matmul loop).
    s = jnp.einsum("hqd,hkd->hqk",
                   q3.astype(jnp.bfloat16), k3.astype(jnp.bfloat16),
                   preferred_element_type=jnp.float32)
    s = s * ATTN_SCALE + bias[None, :, :]
    s = s - jnp.max(s, axis=-1, keepdims=True)
    p = jnp.exp(s)
    p = p * pl.reciprocal(jnp.sum(p, axis=-1, keepdims=True), approx=True)
    return jnp.einsum("hqk,hkd->hqd",
                      p.astype(jnp.bfloat16), v3.astype(jnp.bfloat16),
                      preferred_element_type=jnp.float32)      # [H, Mq, hd] f32


def _out_proj(ctx, wo_ref, bo_ref):
    # Per-head MXU accumulation: acc += ctx[h] @ Wo[h*hd:(h+1)*hd, :].
    # Sublane-sliced weight rows, no lane-sliced activations, no concat.
    mq = ctx.shape[1]
    out = jnp.zeros((mq, D_MODEL), jnp.float32)
    for h in range(N_HEADS):
        out = out + jnp.dot(ctx[h].astype(jnp.bfloat16),
                            wo_ref[h * HEAD_DIM:(h + 1) * HEAD_DIM, :],
                            preferred_element_type=jnp.float32)
    return out + bo_ref[...]


def _dense(x, w_ref, b_ref, relu=False):
    acc = jnp.dot(x.astype(w_ref.dtype), w_ref[...],
                  preferred_element_type=jnp.float32) + b_ref[...]
    if relu:
        acc = jnp.maximum(acc, 0.0)
    return acc


# ------------------------------ Pallas kernels ------------------------------
def _encoder_stack_kernel(x0_ref, bias_ref,
                          ln1g, ln1b, wqkv, bqkv, wo, bo,
                          ln2g, ln2b, w1, b1, w2, b2,
                          fing, finb,
                          o_ref, res_ref):
    l = pl.program_id(0)

    @pl.when(l == 0)
    def _():
        res_ref[...] = x0_ref[...]

    x = res_ref[...]                                  # [Ms, D] f32 residual

    # --- self attention (pre-LN) ---
    h = _ln(x, ln1g[...], ln1b[...])
    qkv = _dense(h, wqkv, bqkv)                       # [Ms, 3D], one wide MXU matmul
    qkvh = _split_heads(qkv, 3)                       # [3H, Ms, hd]
    ctx = _attention(qkvh[:N_HEADS], qkvh[N_HEADS:2 * N_HEADS],
                     qkvh[2 * N_HEADS:], bias_ref[...])
    x = x + _out_proj(ctx, wo, bo)

    # --- feed-forward (pre-LN) ---
    h = _ln(x, ln2g[...], ln2b[...])
    h = _dense(h, w1, b1, relu=True)
    x = x + _dense(h, w2, b2)

    res_ref[...] = x

    @pl.when(l == pl.num_programs(0) - 1)
    def _():
        # final encoder LayerNorm folded into the last layer iteration
        o_ref[...] = _ln(x, fing[...], finb[...]).astype(o_ref.dtype)


def _decoder_stack_kernel(y0_ref, enc_ref, sbias_ref, xbias_ref,
                          ln1g, ln1b, wqkv, bqkv, wo, bo,
                          ln2g, ln2b, wq_c, bq_c, wkv_c, bkv_c, wo_c, bo_c,
                          ln3g, ln3b, w1, b1, w2, b2,
                          fing, finb, emb_ref,
                          logits_ref, res_ref):
    l = pl.program_id(0)

    @pl.when(l == 0)
    def _():
        res_ref[...] = y0_ref[...]

    y = res_ref[...]                                  # [Mt, D] f32 residual
    enc = enc_ref[...]                                # [Ms, D] f32

    # --- masked self attention ---
    h = _ln(y, ln1g[...], ln1b[...])
    qkv = _dense(h, wqkv, bqkv)
    qkvh = _split_heads(qkv, 3)
    ctx = _attention(qkvh[:N_HEADS], qkvh[N_HEADS:2 * N_HEADS],
                     qkvh[2 * N_HEADS:], sbias_ref[...])
    y = y + _out_proj(ctx, wo, bo)

    # --- cross attention ---
    h = _ln(y, ln2g[...], ln2b[...])
    q = _dense(h, wq_c, bq_c)                         # [Mt, D]
    kv = _dense(enc, wkv_c, bkv_c)                    # [Ms, 2D] fused k/v matmul
    q3 = _split_heads(q, 1)                           # [H, Mt, hd]
    kvh = _split_heads(kv, 2)                         # [2H, Ms, hd]
    ctx = _attention(q3, kvh[:N_HEADS], kvh[N_HEADS:], xbias_ref[...])
    y = y + _out_proj(ctx, wo_c, bo_c)

    # --- feed-forward ---
    h = _ln(y, ln3g[...], ln3b[...])
    h = _dense(h, w1, b1, relu=True)
    y = y + _dense(h, w2, b2)

    res_ref[...] = y

    @pl.when(l == pl.num_programs(0) - 1)
    def _():
        # final decoder LN + tied (no-bias) lm_head, lane-dense (Vp % 128 == 0)
        hf = _ln(y, fing[...], finb[...])
        logits_ref[...] = jax.lax.dot_general(
            hf.astype(emb_ref.dtype), emb_ref[...],
            (((1,), (1,)), ((), ())),
            preferred_element_type=jnp.float32).astype(logits_ref.dtype)


# --------------------------- pallas_call wrappers ---------------------------
def _const_spec(arr):
    zeros = (0,) * arr.ndim
    return pl.BlockSpec(arr.shape, lambda l, _z=zeros: _z)


def _layer_spec(arr):
    # stacked per-layer parameter [L, ...]: leading L squeezed, indexed by grid
    tail = arr.shape[1:]
    nt = len(tail)
    return pl.BlockSpec((None,) + tail, lambda l, _nt=nt: (l,) + (0,) * _nt)


def encoder_stack_call(x0, enc_bias, enc_params, fin_g, fin_b):
    ms = x0.shape[0]
    weights = [enc_params[k] for k in ENC_PARAM_ORDER]
    in_specs = ([_const_spec(x0), _const_spec(enc_bias)]
                + [_layer_spec(w) for w in weights]
                + [_const_spec(fin_g), _const_spec(fin_b)])
    return pl.pallas_call(
        _encoder_stack_kernel,
        out_shape=jax.ShapeDtypeStruct((ms, D_MODEL), jnp.float32),
        grid=(ENC_LAYERS,),
        in_specs=in_specs,
        out_specs=pl.BlockSpec((ms, D_MODEL), lambda l: (0, 0)),
        scratch_shapes=[pltpu.VMEM((ms, D_MODEL), jnp.float32)],
        compiler_params=pltpu.CompilerParams(
            dimension_semantics=("arbitrary",)),
    )(x0, enc_bias, *weights, fin_g, fin_b)


def decoder_stack_call(y0, enc_out, self_bias, cross_bias, dec_params,
                       fin_g, fin_b, emb_pad):
    # TODO(synk): at the real 418M config (128K vocab, d_model=1024) the
    # lm_head must be a separate pallas_call tiled over the vocab axis
    # (V_tile <= 4-8K on v7x, Buffered weights, explicit vmem_limit_bytes),
    # and batch/seq tiles would become a "parallel" grid axis for v7x's 2 TCs
    # instead of being folded into M with a block-diagonal mask.
    mt = y0.shape[0]
    vp = emb_pad.shape[0]
    weights = [dec_params[k] for k in DEC_PARAM_ORDER]
    in_specs = ([_const_spec(y0), _const_spec(enc_out),
                 _const_spec(self_bias), _const_spec(cross_bias)]
                + [_layer_spec(w) for w in weights]
                + [_const_spec(fin_g), _const_spec(fin_b),
                   _const_spec(emb_pad)])
    return pl.pallas_call(
        _decoder_stack_kernel,
        out_shape=jax.ShapeDtypeStruct((mt, vp), jnp.float32),
        grid=(DEC_LAYERS,),
        in_specs=in_specs,
        out_specs=pl.BlockSpec((mt, vp), lambda l: (0, 0)),
        scratch_shapes=[pltpu.VMEM((mt, D_MODEL), jnp.float32)],
        compiler_params=pltpu.CompilerParams(
            dimension_semantics=("arbitrary",)),
    )(y0, enc_out, self_bias, cross_bias, *weights, fin_g, fin_b, emb_pad)


# ------------------------------- glue (JAX) ---------------------------------
def sinusoidal_table(num_positions, dim, padding_idx):
    half = dim // 2
    freq = jnp.exp(jnp.arange(half, dtype=jnp.float32)
                   * -(math.log(10000.0) / (half - 1)))
    pos = jnp.arange(num_positions, dtype=jnp.float32)[:, None] * freq[None, :]
    emb = jnp.concatenate([jnp.sin(pos), jnp.cos(pos)], axis=1)
    if dim % 2 == 1:
        emb = jnp.concatenate([emb, jnp.zeros((num_positions, 1))], axis=1)
    return emb.at[padding_idx].set(0.0)


def position_ids_from_input_ids(input_ids, padding_idx):
    mask = (input_ids != padding_idx).astype(jnp.int32)
    return jnp.cumsum(mask, axis=1) * mask + padding_idx


@jax.jit
def script_wrapper_forward(params, input_ids, attention_mask, decoder_input_ids):
    """Returns logits [batch, tgt_seq, vocab] (== outputs.logits)."""
    B, Ssrc = input_ids.shape
    Stgt = decoder_input_ids.shape[1]
    Ms, Mt = B * Ssrc, B * Stgt
    emb = params["shared"]               # [V, D] bf16
    pos_table = params["pos_table"]      # [MAX_POS, D] f32

    # ---- block-diagonal additive attention biases (built once, hoisted) ----
    src_bid = jnp.repeat(jnp.arange(B), Ssrc)           # [Ms]
    tgt_bid = jnp.repeat(jnp.arange(B), Stgt)            # [Mt]
    src_valid = attention_mask.reshape(-1) > 0           # [Ms]
    enc_bias = jnp.where((src_bid[:, None] == src_bid[None, :])
                         & src_valid[None, :],
                         0.0, NEG_INF).astype(jnp.float32)          # [Ms, Ms]
    tgt_pos = jnp.tile(jnp.arange(Stgt), (B,))
    dec_self_bias = jnp.where((tgt_bid[:, None] == tgt_bid[None, :])
                              & (tgt_pos[None, :] <= tgt_pos[:, None]),
                              0.0, NEG_INF).astype(jnp.float32)     # [Mt, Mt]
    cross_bias = jnp.where((tgt_bid[:, None] == src_bid[None, :])
                           & src_valid[None, :],
                           0.0, NEG_INF).astype(jnp.float32)        # [Mt, Ms]

    # ---- embeddings + sinusoidal positions (JAX glue gathers) ----
    enc_pos = position_ids_from_input_ids(input_ids, PAD_IDX)
    x0 = (jnp.take(emb, input_ids, axis=0).astype(jnp.float32) * EMBED_SCALE
          + jnp.take(pos_table, enc_pos, axis=0)).reshape(Ms, D_MODEL)
    dec_pos = position_ids_from_input_ids(decoder_input_ids, PAD_IDX)
    y0 = (jnp.take(emb, decoder_input_ids, axis=0).astype(jnp.float32)
          * EMBED_SCALE
          + jnp.take(pos_table, dec_pos, axis=0)).reshape(Mt, D_MODEL)

    # ---- one fused pallas_call per stack ----
    enc_out = encoder_stack_call(x0, enc_bias, params["encoder"],
                                 params["enc_ln_g"], params["enc_ln_b"])

    vp = ((VOCAB + 127) // 128) * 128      # lane-dense logits (pad vocab to 128)
    emb_pad = jnp.zeros((vp, D_MODEL), jnp.bfloat16).at[:VOCAB].set(emb)

    logits_pad = decoder_stack_call(y0, enc_out, dec_self_bias, cross_bias,
                                    params["decoder"],
                                    params["dec_ln_g"], params["dec_ln_b"],
                                    emb_pad)
    return logits_pad[:, :VOCAB].reshape(B, Stgt, VOCAB)


# ------------------------- deterministic parameters -------------------------
def init_params(key):
    # TODO(synk): synthetic small-config weights; the real 418M checkpoint is
    # not loadable here (no file / network access).
    k_emb, k_enc, k_dec = jax.random.split(key, 3)
    shared = jax.random.normal(k_emb, (VOCAB, D_MODEL), jnp.float32) * 0.02
    shared = shared.at[PAD_IDX].set(0.0).astype(jnp.bfloat16)
    pos_table = sinusoidal_table(MAX_POS, D_MODEL, PAD_IDX)

    def dense_stack(k, L, fi, fo):
        w = (jax.random.normal(k, (L, fi, fo), jnp.float32) * 0.02
             ).astype(jnp.bfloat16)
        return w, jnp.zeros((L, 1, fo), jnp.float32)

    def ln_stack(L):
        return (jnp.ones((L, 1, D_MODEL), jnp.float32),
                jnp.zeros((L, 1, D_MODEL), jnp.float32))

    ek = jax.random.split(k_enc, 4)
    enc = {}
    enc["ln1_g"], enc["ln1_b"] = ln_stack(ENC_LAYERS)
    enc["wqkv"], enc["bqkv"] = dense_stack(ek[0], ENC_LAYERS, D_MODEL, 3 * D_MODEL)
    enc["wo"], enc["bo"] = dense_stack(ek[1], ENC_LAYERS, D_MODEL, D_MODEL)
    enc["ln2_g"], enc["ln2_b"] = ln_stack(ENC_LAYERS)
    enc["w1"], enc["b1"] = dense_stack(ek[2], ENC_LAYERS, D_MODEL, FFN_DIM)
    enc["w2"], enc["b2"] = dense_stack(ek[3], ENC_LAYERS, FFN_DIM, D_MODEL)

    dk = jax.random.split(k_dec, 7)
    dec = {}
    dec["ln1_g"], dec["ln1_b"] = ln_stack(DEC_LAYERS)
    dec["wqkv"], dec["bqkv"] = dense_stack(dk[0], DEC_LAYERS, D_MODEL, 3 * D_MODEL)
    dec["wo"], dec["bo"] = dense_stack(dk[1], DEC_LAYERS, D_MODEL, D_MODEL)
    dec["ln2_g"], dec["ln2_b"] = ln_stack(DEC_LAYERS)
    dec["wq_c"], dec["bq_c"] = dense_stack(dk[2], DEC_LAYERS, D_MODEL, D_MODEL)
    dec["wkv_c"], dec["bkv_c"] = dense_stack(dk[3], DEC_LAYERS, D_MODEL, 2 * D_MODEL)
    dec["wo_c"], dec["bo_c"] = dense_stack(dk[4], DEC_LAYERS, D_MODEL, D_MODEL)
    dec["ln3_g"], dec["ln3_b"] = ln_stack(DEC_LAYERS)
    dec["w1"], dec["b1"] = dense_stack(dk[5], DEC_LAYERS, D_MODEL, FFN_DIM)
    dec["w2"], dec["b2"] = dense_stack(dk[6], DEC_LAYERS, FFN_DIM, D_MODEL)

    return {"shared": shared, "pos_table": pos_table,
            "encoder": enc, "decoder": dec,
            "enc_ln_g": jnp.ones((1, D_MODEL), jnp.float32),
            "enc_ln_b": jnp.zeros((1, D_MODEL), jnp.float32),
            "dec_ln_g": jnp.ones((1, D_MODEL), jnp.float32),
            "dec_ln_b": jnp.zeros((1, D_MODEL), jnp.float32)}


# ----------------------------------- main -----------------------------------
if __name__ == "__main__":
    key = jax.random.PRNGKey(0)
    kp, ki, kd = jax.random.split(key, 3)
    params = init_params(kp)

    B, SRC_SEQ, TGT_SEQ = 2, 8, 8
    input_ids = jax.random.randint(ki, (B, SRC_SEQ), 2, VOCAB, dtype=jnp.int32)
    attention_mask = jnp.ones((B, SRC_SEQ), jnp.int32).at[1, 6:].set(0)
    input_ids = jnp.where(attention_mask == 1, input_ids, PAD_IDX)
    decoder_input_ids = jax.random.randint(kd, (B, TGT_SEQ), 2, VOCAB,
                                           dtype=jnp.int32)
    decoder_input_ids = decoder_input_ids.at[:, 0].set(2)   # decoder start token

    logits = script_wrapper_forward(params, input_ids, attention_mask,
                                    decoder_input_ids)
    logits = jax.block_until_ready(logits)

    assert logits.shape == (B, TGT_SEQ, VOCAB), logits.shape
    assert bool(jnp.all(jnp.isfinite(logits)))
    print("KERNEL_OK")
</pallas_src>

<mosaic_0001>
module attributes {stable_mosaic.version = 11 : i64} {
  func.func @_decoder_stack_kernel(%arg0: i32, %arg1: memref<16x32xf32, #tpu.memory_space<vmem>>, %arg2: memref<16x32xf32, #tpu.memory_space<vmem>>, %arg3: memref<16x16xf32, #tpu.memory_space<vmem>>, %arg4: memref<16x16xf32, #tpu.memory_space<vmem>>, %arg5: memref<1x1x32xf32, #tpu.memory_space<vmem>>, %arg6: memref<1x1x32xf32, #tpu.memory_space<vmem>>, %arg7: memref<1x32x96xbf16, #tpu.memory_space<vmem>>, %arg8: memref<1x1x96xf32, #tpu.memory_space<vmem>>, %arg9: memref<1x32x32xbf16, #tpu.memory_space<vmem>>, %arg10: memref<1x1x32xf32, #tpu.memory_space<vmem>>, %arg11: memref<1x1x32xf32, #tpu.memory_space<vmem>>, %arg12: memref<1x1x32xf32, #tpu.memory_space<vmem>>, %arg13: memref<1x32x32xbf16, #tpu.memory_space<vmem>>, %arg14: memref<1x1x32xf32, #tpu.memory_space<vmem>>, %arg15: memref<1x32x64xbf16, #tpu.memory_space<vmem>>, %arg16: memref<1x1x64xf32, #tpu.memory_space<vmem>>, %arg17: memref<1x32x32xbf16, #tpu.memory_space<vmem>>, %arg18: memref<1x1x32xf32, #tpu.memory_space<vmem>>, %arg19: memref<1x1x32xf32, #tpu.memory_space<vmem>>, %arg20: memref<1x1x32xf32, #tpu.memory_space<vmem>>, %arg21: memref<1x32x64xbf16, #tpu.memory_space<vmem>>, %arg22: memref<1x1x64xf32, #tpu.memory_space<vmem>>, %arg23: memref<1x64x32xbf16, #tpu.memory_space<vmem>>, %arg24: memref<1x1x32xf32, #tpu.memory_space<vmem>>, %arg25: memref<1x32xf32, #tpu.memory_space<vmem>>, %arg26: memref<1x32xf32, #tpu.memory_space<vmem>>, %arg27: memref<128x32xbf16, #tpu.memory_space<vmem>>, %arg28: memref<16x128xf32, #tpu.memory_space<vmem>>, %arg29: memref<16x32xf32, #tpu.memory_space<vmem>>) attributes {dimension_semantics = [#tpu.dimension_semantics<arbitrary>], iteration_bounds = array<i64: 2>, scalar_prefetch = 0 : i64, scratch_operands = 1 : i64, tpu.core_type = #tpu.core_type<tc>, window_params = [{pipeline_mode = #tpu.pipeline_mode<synchronous>, transform_indices = @transform_0, window_bounds = array<i64: 16, 32>}, {pipeline_mode = #tpu.pipeline_mode<synchronous>, transform_indices = @transform_1, window_bounds = array<i64: 16, 32>}, {pipeline_mode = #tpu.pipeline_mode<synchronous>, transform_indices = @transform_2, window_bounds = array<i64: 16, 16>}, {pipeline_mode = #tpu.pipeline_mode<synchronous>, transform_indices = @transform_3, window_bounds = array<i64: 16, 16>}, {transform_indices = @transform_4, window_bounds = array<i64: 1, 1, 32>}, {transform_indices = @transform_5, window_bounds = array<i64: 1, 1, 32>}, {transform_indices = @transform_6, window_bounds = array<i64: 1, 32, 96>}, {transform_indices = @transform_7, window_bounds = array<i64: 1, 1, 96>}, {transform_indices = @transform_8, window_bounds = array<i64: 1, 32, 32>}, {transform_indices = @transform_9, window_bounds = array<i64: 1, 1, 32>}, {transform_indices = @transform_10, window_bounds = array<i64: 1, 1, 32>}, {transform_indices = @transform_11, window_bounds = array<i64: 1, 1, 32>}, {transform_indices = @transform_12, window_bounds = array<i64: 1, 32, 32>}, {transform_indices = @transform_13, window_bounds = array<i64: 1, 1, 32>}, {transform_indices = @transform_14, window_bounds = array<i64: 1, 32, 64>}, {transform_indices = @transform_15, window_bounds = array<i64: 1, 1, 64>}, {transform_indices = @transform_16, window_bounds = array<i64: 1, 32, 32>}, {transform_indices = @transform_17, window_bounds = array<i64: 1, 1, 32>}, {transform_indices = @transform_18, window_bounds = array<i64: 1, 1, 32>}, {transform_indices = @transform_19, window_bounds = array<i64: 1, 1, 32>}, {transform_indices = @transform_20, window_bounds = array<i64: 1, 32, 64>}, {transform_indices = @transform_21, window_bounds = array<i64: 1, 1, 64>}, {transform_indices = @transform_22, window_bounds = array<i64: 1, 64, 32>}, {transform_indices = @transform_23, window_bounds = array<i64: 1, 1, 32>}, {pipeline_mode = #tpu.pipeline_mode<synchronous>, transform_indices = @transform_24, window_bounds = array<i64: 1, 32>}, {pipeline_mode = #tpu.pipeline_mode<synchronous>, transform_indices = @transform_25, window_bounds = array<i64: 1, 32>}, {pipeline_mode = #tpu.pipeline_mode<synchronous>, transform_indices = @transform_26, window_bounds = array<i64: 128, 32>}, {pipeline_mode = #tpu.pipeline_mode<synchronous>, transform_indices = @transform_27, window_bounds = array<i64: 16, 128>}]} {
    %c0_i32 = arith.constant 0 : i32
    %0 = arith.cmpi eq, %arg0, %c0_i32 : i32
    %1 = arith.extui %0 : i1 to i32
    %c0_i32_0 = arith.constant 0 : i32
    %2 = arith.cmpi ne, %1, %c0_i32_0 : i32
    scf.if %2 {
      %c0_126 = arith.constant 0 : index
      %c0_127 = arith.constant 0 : index
      %253 = vector.load %arg1[%c0_126, %c0_127] : memref<16x32xf32, #tpu.memory_space<vmem>>, vector<16x32xf32>
      %c0_128 = arith.constant 0 : index
      %c0_129 = arith.constant 0 : index
      %254 = vector.load %arg29[%c0_128, %c0_129] : memref<16x32xf32, #tpu.memory_space<vmem>>, vector<16x32xf32>
      tpu.vector_store %arg29[%c0_128, %c0_129], %253 {strides = array<i32>} : memref<16x32xf32, #tpu.memory_space<vmem>>, vector<16x32xf32>,
    } else {
    }
    %c0 = arith.constant 0 : index
    %c0_1 = arith.constant 0 : index
    %3 = vector.load %arg29[%c0, %c0_1] : memref<16x32xf32, #tpu.memory_space<vmem>>, vector<16x32xf32>
    %c0_2 = arith.constant 0 : index
    %c0_3 = arith.constant 0 : index
    %4 = vector.load %arg2[%c0_2, %c0_3] : memref<16x32xf32, #tpu.memory_space<vmem>>, vector<16x32xf32>
    %c0_4 = arith.constant 0 : index
    %c0_5 = arith.constant 0 : index
    %c0_6 = arith.constant 0 : index
    %5 = vector.load %arg5[%c0_4, %c0_5, %c0_6] : memref<1x1x32xf32, #tpu.memory_space<vmem>>, vector<1x1x32xf32>
    %6 = vector.shape_cast %5 : vector<1x1x32xf32> to vector<1x32xf32>
    %c0_7 = arith.constant 0 : index
    %c0_8 = arith.constant 0 : index
    %c0_9 = arith.constant 0 : index
    %7 = vector.load %arg6[%c0_7, %c0_8, %c0_9] : memref<1x1x32xf32, #tpu.memory_space<vmem>>, vector<1x1x32xf32>
    %8 = vector.shape_cast %7 : vector<1x1x32xf32> to vector<1x32xf32>
    %cst = arith.constant dense<0.000000e+00> : vector<16xf32>
    %9 = vector.multi_reduction <add>, %3, %cst [1] : vector<16x32xf32> to vector<16xf32>
    %10 = vector.shape_cast %9 : vector<16xf32> to vector<16x1xf32>
    %cst_10 = arith.constant 3.200000e+01 : f32
    %11 = vector.broadcast %cst_10 : f32 to vector<16x1xf32>
    %12 = arith.divf %10, %11 : vector<16x1xf32>
    %13 = vector.broadcast %12 : vector<16x1xf32> to vector<16x32xf32>
    %14 = arith.subf %3, %13 : vector<16x32xf32>
    %15 = arith.mulf %14, %14 : vector<16x32xf32>
    %cst_11 = arith.constant dense<0.000000e+00> : vector<16xf32>
    %16 = vector.multi_reduction <add>, %15, %cst_11 [1] : vector<16x32xf32> to vector<16xf32>
    %17 = vector.shape_cast %16 : vector<16xf32> to vector<16x1xf32>
    %cst_12 = arith.constant 3.200000e+01 : f32
    %18 = vector.broadcast %cst_12 : f32 to vector<16x1xf32>
    %19 = arith.divf %17, %18 : vector<16x1xf32>
    %20 = vector.broadcast %12 : vector<16x1xf32> to vector<16x32xf32>
    %21 = arith.subf %3, %20 : vector<16x32xf32>
    %cst_13 = arith.constant 9.99999974E-6 : f32
    %22 = vector.broadcast %cst_13 : f32 to vector<16x1xf32>
    %23 = arith.addf %19, %22 : vector<16x1xf32>
    %24 = math.rsqrt %23 : vector<16x1xf32>
    %25 = vector.broadcast %24 : vector<16x1xf32> to vector<16x32xf32>
    %26 = arith.mulf %21, %25 : vector<16x32xf32>
    %27 = vector.broadcast %6 : vector<1x32xf32> to vector<16x32xf32>
    %28 = arith.mulf %26, %27 : vector<16x32xf32>
    %29 = vector.broadcast %8 : vector<1x32xf32> to vector<16x32xf32>
    %30 = arith.addf %28, %29 : vector<16x32xf32>
    %31 = arith.truncf %30 : vector<16x32xf32> to vector<16x32xbf16>
    %c0_14 = arith.constant 0 : index
    %c0_15 = arith.constant 0 : index
    %c0_16 = arith.constant 0 : index
    %32 = vector.load %arg7[%c0_14, %c0_15, %c0_16] : memref<1x32x96xbf16, #tpu.memory_space<vmem>>, vector<1x32x96xbf16>
    %33 = vector.shape_cast %32 : vector<1x32x96xbf16> to vector<32x96xbf16>
    %cst_17 = arith.constant dense<0.000000e+00> : vector<16x96xf32>
    %34 = tpu.matmul %31, %33, %cst_17 {dimension_numbers = #tpu.dot_dimension_numbers<[1], [0], [0], [1], [0, 0, 1, 1], [], []>} : vector<16x32xbf16>, vector<32x96xbf16>, vector<16x96xf32> -> vector<16x96xf32>
    %c0_18 = arith.constant 0 : index
    %c0_19 = arith.constant 0 : index
    %c0_20 = arith.constant 0 : index
    %35 = vector.load %arg8[%c0_18, %c0_19, %c0_20] : memref<1x1x96xf32, #tpu.memory_space<vmem>>, vector<1x1x96xf32>
    %36 = vector.shape_cast %35 : vector<1x1x96xf32> to vector<1x96xf32>
    %37 = vector.broadcast %36 : vector<1x96xf32> to vector<16x96xf32>
    %38 = arith.addf %34, %37 : vector<16x96xf32>
    %39 = vector.shape_cast %38 : vector<16x96xf32> to vector<16x12x8xf32>
    %40 = tpu.transpose %39, [1, 0, 2] : vector<16x12x8xf32> -> vector<12x16x8xf32>
    %41 = vector.extract_strided_slice %40 {offsets = [0, 0, 0], sizes = [4, 16, 8], strides = [1, 1, 1]} : vector<12x16x8xf32> to vector<4x16x8xf32>
    %42 = vector.extract_strided_slice %40 {offsets = [4, 0, 0], sizes = [4, 16, 8], strides = [1, 1, 1]} : vector<12x16x8xf32> to vector<4x16x8xf32>
    %43 = vector.extract_strided_slice %40 {offsets = [8, 0, 0], sizes = [4, 16, 8], strides = [1, 1, 1]} : vector<12x16x8xf32> to vector<4x16x8xf32>
    %c0_21 = arith.constant 0 : index
    %c0_22 = arith.constant 0 : index
    %44 = vector.load %arg3[%c0_21, %c0_22] : memref<16x16xf32, #tpu.memory_space<vmem>>, vector<16x16xf32>
    %45 = arith.truncf %41 : vector<4x16x8xf32> to vector<4x16x8xbf16>
    %46 = arith.truncf %42 : vector<4x16x8xf32> to vector<4x16x8xbf16>
    "tpu.trace_start"() <{level = 10 : i32, message = "hqd,hkd->hqk"}> : () -> ()
    %cst_23 = arith.constant dense<0.000000e+00> : vector<4x16x16xf32>
    %47 = tpu.matmul %45, %46, %cst_23 {dimension_numbers = #tpu.dot_dimension_numbers<[2], [2], [1], [1], [0, 0, 0, 1, 1, 1], [0], [0]>} : vector<4x16x8xbf16>, vector<4x16x8xbf16>, vector<4x16x16xf32> -> vector<4x16x16xf32>
    "tpu.trace_stop"() : () -> ()
    %cst_24 = arith.constant 0.353553385 : f32
    %48 = vector.broadcast %cst_24 : f32 to vector<4x16x16xf32>
    %49 = arith.mulf %47, %48 : vector<4x16x16xf32>
    %50 = vector.shape_cast %44 : vector<16x16xf32> to vector<1x16x16xf32>
    %51 = vector.broadcast %50 : vector<1x16x16xf32> to vector<4x16x16xf32>
    %52 = arith.addf %49, %51 : vector<4x16x16xf32>
    %cst_25 = arith.constant dense<0xFF800000> : vector<4x16xf32>
    %53 = vector.multi_reduction <maximumf>, %52, %cst_25 [2] : vector<4x16x16xf32> to vector<4x16xf32>
    %54 = vector.shape_cast %53 : vector<4x16xf32> to vector<4x16x1xf32>
    %55 = vector.broadcast %54 : vector<4x16x1xf32> to vector<4x16x16xf32>
    %56 = arith.subf %52, %55 : vector<4x16x16xf32>
    %57 = math.exp %56 : vector<4x16x16xf32>
    %cst_26 = arith.constant dense<0.000000e+00> : vector<4x16xf32>
    %58 = vector.multi_reduction <add>, %57, %cst_26 [2] : vector<4x16x16xf32> to vector<4x16xf32>
    %59 = vector.shape_cast %58 : vector<4x16xf32> to vector<4x16x1xf32>
    %60 = tpu.reciprocal %59 {approx = true} : vector<4x16x1xf32> -> vector<4x16x1xf32>
    %61 = vector.broadcast %60 : vector<4x16x1xf32> to vector<4x16x16xf32>
    %62 = arith.mulf %57, %61 : vector<4x16x16xf32>
    %63 = arith.truncf %62 : vector<4x16x16xf32> to vector<4x16x16xbf16>
    %64 = arith.truncf %43 : vector<4x16x8xf32> to vector<4x16x8xbf16>
    "tpu.trace_start"() <{level = 10 : i32, message = "hqk,hkd->hqd"}> : () -> ()
    %cst_27 = arith.constant dense<0.000000e+00> : vector<4x16x8xf32>
    %65 = tpu.matmul %63, %64, %cst_27 {dimension_numbers = #tpu.dot_dimension_numbers<[2], [1], [1], [2], [0, 0, 0, 1, 1, 2], [0], [0]>} : vector<4x16x16xbf16>, vector<4x16x8xbf16>, vector<4x16x8xf32> -> vector<4x16x8xf32>
    %cst_28 = arith.constant 0.000000e+00 : f32
    "tpu.trace_stop"() : () -> ()
    %66 = vector.broadcast %cst_28 : f32 to vector<16x32xf32>
    %67 = vector.extract_strided_slice %65 {offsets = [0, 0, 0], sizes = [1, 16, 8], strides = [1, 1, 1]} : vector<4x16x8xf32> to vector<1x16x8xf32>
    %68 = vector.shape_cast %67 : vector<1x16x8xf32> to vector<16x8xf32>
    %69 = arith.truncf %68 : vector<16x8xf32> to vector<16x8xbf16>
    %c0_29 = arith.constant 0 : index
    %c0_30 = arith.constant 0 : index
    %c0_31 = arith.constant 0 : index
    %70 = vector.load %arg9[%c0_29, %c0_30, %c0_31] : memref<1x32x32xbf16, #tpu.memory_space<vmem>>, vector<1x8x32xbf16>
    %71 = vector.shape_cast %70 : vector<1x8x32xbf16> to vector<8x32xbf16>
    %cst_32 = arith.constant dense<0.000000e+00> : vector<16x32xf32>
    %72 = tpu.matmul %69, %71, %cst_32 {dimension_numbers = #tpu.dot_dimension_numbers<[1], [0], [0], [1], [0, 0, 1, 1], [], []>} : vector<16x8xbf16>, vector<8x32xbf16>, vector<16x32xf32> -> vector<16x32xf32>
    %73 = arith.addf %66, %72 : vector<16x32xf32>
    %74 = vector.extract_strided_slice %65 {offsets = [1, 0, 0], sizes = [1, 16, 8], strides = [1, 1, 1]} : vector<4x16x8xf32> to vector<1x16x8xf32>
    %75 = vector.shape_cast %74 : vector<1x16x8xf32> to vector<16x8xf32>
    %76 = arith.truncf %75 : vector<16x8xf32> to vector<16x8xbf16>
    %c0_33 = arith.constant 0 : index
    %c8 = arith.constant 8 : index
    %c0_34 = arith.constant 0 : index
    %77 = vector.load %arg9[%c0_33, %c8, %c0_34] : memref<1x32x32xbf16, #tpu.memory_space<vmem>>, vector<1x8x32xbf16>
    %78 = vector.shape_cast %77 : vector<1x8x32xbf16> to vector<8x32xbf16>
    %cst_35 = arith.constant dense<0.000000e+00> : vector<16x32xf32>
    %79 = tpu.matmul %76, %78, %cst_35 {dimension_numbers = #tpu.dot_dimension_numbers<[1], [0], [0], [1], [0, 0, 1, 1], [], []>} : vector<16x8xbf16>, vector<8x32xbf16>, vector<16x32xf32> -> vector<16x32xf32>
    %80 = arith.addf %73, %79 : vector<16x32xf32>
    %81 = vector.extract_strided_slice %65 {offsets = [2, 0, 0], sizes = [1, 16, 8], strides = [1, 1, 1]} : vector<4x16x8xf32> to vector<1x16x8xf32>
    %82 = vector.shape_cast %81 : vector<1x16x8xf32> to vector<16x8xf32>
    %83 = arith.truncf %82 : vector<16x8xf32> to vector<16x8xbf16>
    %c0_36 = arith.constant 0 : index
    %c16 = arith.constant 16 : index
    %c0_37 = arith.constant 0 : index
    %84 = vector.load %arg9[%c0_36, %c16, %c0_37] : memref<1x32x32xbf16, #tpu.memory_space<vmem>>, vector<1x8x32xbf16>
    %85 = vector.shape_cast %84 : vector<1x8x32xbf16> to vector<8x32xbf16>
    %cst_38 = arith.constant dense<0.000000e+00> : vector<16x32xf32>
    %86 = tpu.matmul %83, %85, %cst_38 {dimension_numbers = #tpu.dot_dimension_numbers<[1], [0], [0], [1], [0, 0, 1, 1], [], []>} : vector<16x8xbf16>, vector<8x32xbf16>, vector<16x32xf32> -> vector<16x32xf32>
    %87 = arith.addf %80, %86 : vector<16x32xf32>
    %88 = vector.extract_strided_slice %65 {offsets = [3, 0, 0], sizes = [1, 16, 8], strides = [1, 1, 1]} : vector<4x16x8xf32> to vector<1x16x8xf32>
    %89 = vector.shape_cast %88 : vector<1x16x8xf32> to vector<16x8xf32>
    %90 = arith.truncf %89 : vector<16x8xf32> to vector<16x8xbf16>
    %c0_39 = arith.constant 0 : index
    %c24 = arith.constant 24 : index
    %c0_40 = arith.constant 0 : index
    %91 = vector.load %arg9[%c0_39, %c24, %c0_40] : memref<1x32x32xbf16, #tpu.memory_space<vmem>>, vector<1x8x32xbf16>
    %92 = vector.shape_cast %91 : vector<1x8x32xbf16> to vector<8x32xbf16>
    %cst_41 = arith.constant dense<0.000000e+00> : vector<16x32xf32>
    %93 = tpu.matmul %90, %92, %cst_41 {dimension_numbers = #tpu.dot_dimension_numbers<[1], [0], [0], [1], [0, 0, 1, 1], [], []>} : vector<16x8xbf16>, vector<8x32xbf16>, vector<16x32xf32> -> vector<16x32xf32>
    %94 = arith.addf %87, %93 : vector<16x32xf32>
    %c0_42 = arith.constant 0 : index
    %c0_43 = arith.constant 0 : index
    %c0_44 = arith.constant 0 : index
    %95 = vector.load %arg10[%c0_42, %c0_43, %c0_44] : memref<1x1x32xf32, #tpu.memory_space<vmem>>, vector<1x1x32xf32>
    %96 = vector.shape_cast %95 : vector<1x1x32xf32> to vector<1x32xf32>
    %97 = vector.broadcast %96 : vector<1x32xf32> to vector<16x32xf32>
    %98 = arith.addf %94, %97 : vector<16x32xf32>
    %99 = arith.addf %3, %98 : vector<16x32xf32>
    %c0_45 = arith.constant 0 : index
    %c0_46 = arith.constant 0 : index
    %c0_47 = arith.constant 0 : index
    %100 = vector.load %arg11[%c0_45, %c0_46, %c0_47] : memref<1x1x32xf32, #tpu.memory_space<vmem>>, vector<1x1x32xf32>
    %101 = vector.shape_cast %100 : vector<1x1x32xf32> to vector<1x32xf32>
    %c0_48 = arith.constant 0 : index
    %c0_49 = arith.constant 0 : index
    %c0_50 = arith.constant 0 : index
    %102 = vector.load %arg12[%c0_48, %c0_49, %c0_50] : memref<1x1x32xf32, #tpu.memory_space<vmem>>, vector<1x1x32xf32>
    %103 = vector.shape_cast %102 : vector<1x1x32xf32> to vector<1x32xf32>
    %cst_51 = arith.constant dense<0.000000e+00> : vector<16xf32>
    %104 = vector.multi_reduction <add>, %99, %cst_51 [1] : vector<16x32xf32> to vector<16xf32>
    %105 = vector.shape_cast %104 : vector<16xf32> to vector<16x1xf32>
    %cst_52 = arith.constant 3.200000e+01 : f32
    %106 = vector.broadcast %cst_52 : f32 to vector<16x1xf32>
    %107 = arith.divf %105, %106 : vector<16x1xf32>
    %108 = vector.broadcast %107 : vector<16x1xf32> to vector<16x32xf32>
    %109 = arith.subf %99, %108 : vector<16x32xf32>
    %110 = arith.mulf %109, %109 : vector<16x32xf32>
    %cst_53 = arith.constant dense<0.000000e+00> : vector<16xf32>
    %111 = vector.multi_reduction <add>, %110, %cst_53 [1] : vector<16x32xf32> to vector<16xf32>
    %112 = vector.shape_cast %111 : vector<16xf32> to vector<16x1xf32>
    %cst_54 = arith.constant 3.200000e+01 : f32
    %113 = vector.broadcast %cst_54 : f32 to vector<16x1xf32>
    %114 = arith.divf %112, %113 : vector<16x1xf32>
    %115 = vector.broadcast %107 : vector<16x1xf32> to vector<16x32xf32>
    %116 = arith.subf %99, %115 : vector<16x32xf32>
    %cst_55 = arith.constant 9.99999974E-6 : f32
    %117 = vector.broadcast %cst_55 : f32 to vector<16x1xf32>
    %118 = arith.addf %114, %117 : vector<16x1xf32>
    %119 = math.rsqrt %118 : vector<16x1xf32>
    %120 = vector.broadcast %119 : vector<16x1xf32> to vector<16x32xf32>
    %121 = arith.mulf %116, %120 : vector<16x32xf32>
    %122 = vector.broadcast %101 : vector<1x32xf32> to vector<16x32xf32>
    %123 = arith.mulf %121, %122 : vector<16x32xf32>
    %124 = vector.broadcast %103 : vector<1x32xf32> to vector<16x32xf32>
    %125 = arith.addf %123, %124 : vector<16x32xf32>
    %126 = arith.truncf %125 : vector<16x32xf32> to vector<16x32xbf16>
    %c0_56 = arith.constant 0 : index
    %c0_57 = arith.constant 0 : index
    %c0_58 = arith.constant 0 : index
    %127 = vector.load %arg13[%c0_56, %c0_57, %c0_58] : memref<1x32x32xbf16, #tpu.memory_space<vmem>>, vector<1x32x32xbf16>
    %128 = vector.shape_cast %127 : vector<1x32x32xbf16> to vector<32x32xbf16>
    %cst_59 = arith.constant dense<0.000000e+00> : vector<16x32xf32>
    %129 = tpu.matmul %126, %128, %cst_59 {dimension_numbers = #tpu.dot_dimension_numbers<[1], [0], [0], [1], [0, 0, 1, 1], [], []>} : vector<16x32xbf16>, vector<32x32xbf16>, vector<16x32xf32> -> vector<16x32xf32>
    %c0_60 = arith.constant 0 : index
    %c0_61 = arith.constant 0 : index
    %c0_62 = arith.constant 0 : index
    %130 = vector.load %arg14[%c0_60, %c0_61, %c0_62] : memref<1x1x32xf32, #tpu.memory_space<vmem>>, vector<1x1x32xf32>
    %131 = vector.shape_cast %130 : vector<1x1x32xf32> to vector<1x32xf32>
    %132 = vector.broadcast %131 : vector<1x32xf32> to vector<16x32xf32>
    %133 = arith.addf %129, %132 : vector<16x32xf32>
    %134 = arith.truncf %4 : vector<16x32xf32> to vector<16x32xbf16>
    %c0_63 = arith.constant 0 : index
    %c0_64 = arith.constant 0 : index
    %c0_65 = arith.constant 0 : index
    %135 = vector.load %arg15[%c0_63, %c0_64, %c0_65] : memref<1x32x64xbf16, #tpu.memory_space<vmem>>, vector<1x32x64xbf16>
    %136 = vector.shape_cast %135 : vector<1x32x64xbf16> to vector<32x64xbf16>
    %cst_66 = arith.constant dense<0.000000e+00> : vector<16x64xf32>
    %137 = tpu.matmul %134, %136, %cst_66 {dimension_numbers = #tpu.dot_dimension_numbers<[1], [0], [0], [1], [0, 0, 1, 1], [], []>} : vector<16x32xbf16>, vector<32x64xbf16>, vector<16x64xf32> -> vector<16x64xf32>
    %c0_67 = arith.constant 0 : index
    %c0_68 = arith.constant 0 : index
    %c0_69 = arith.constant 0 : index
    %138 = vector.load %arg16[%c0_67, %c0_68, %c0_69] : memref<1x1x64xf32, #tpu.memory_space<vmem>>, vector<1x1x64xf32>
    %139 = vector.shape_cast %138 : vector<1x1x64xf32> to vector<1x64xf32>
    %140 = vector.broadcast %139 : vector<1x64xf32> to vector<16x64xf32>
    %141 = arith.addf %137, %140 : vector<16x64xf32>
    %142 = vector.shape_cast %133 : vector<16x32xf32> to vector<16x4x8xf32>
    %143 = tpu.transpose %142, [1, 0, 2] : vector<16x4x8xf32> -> vector<4x16x8xf32>
    %144 = vector.shape_cast %141 : vector<16x64xf32> to vector<16x8x8xf32>
    %145 = tpu.transpose %144, [1, 0, 2] : vector<16x8x8xf32> -> vector<8x16x8xf32>
    %146 = vector.extract_strided_slice %145 {offsets = [0, 0, 0], sizes = [4, 16, 8], strides = [1, 1, 1]} : vector<8x16x8xf32> to vector<4x16x8xf32>
    %147 = vector.extract_strided_slice %145 {offsets = [4, 0, 0], sizes = [4, 16, 8], strides = [1, 1, 1]} : vector<8x16x8xf32> to vector<4x16x8xf32>
    %c0_70 = arith.constant 0 : index
    %c0_71 = arith.constant 0 : index
    %148 = vector.load %arg4[%c0_70, %c0_71] : memref<16x16xf32, #tpu.memory_space<vmem>>, vector<16x16xf32>
    %149 = arith.truncf %143 : vector<4x16x8xf32> to vector<4x16x8xbf16>
    %150 = arith.truncf %146 : vector<4x16x8xf32> to vector<4x16x8xbf16>
    "tpu.trace_start"() <{level = 10 : i32, message = "hqd,hkd->hqk"}> : () -> ()
    %cst_72 = arith.constant dense<0.000000e+00> : vector<4x16x16xf32>
    %151 = tpu.matmul %149, %150, %cst_72 {dimension_numbers = #tpu.dot_dimension_numbers<[2], [2], [1], [1], [0, 0, 0, 1, 1, 1], [0], [0]>} : vector<4x16x8xbf16>, vector<4x16x8xbf16>, vector<4x16x16xf32> -> vector<4x16x16xf32>
    "tpu.trace_stop"() : () -> ()
    %cst_73 = arith.constant 0.353553385 : f32
    %152 = vector.broadcast %cst_73 : f32 to vector<4x16x16xf32>
    %153 = arith.mulf %151, %152 : vector<4x16x16xf32>
    %154 = vector.shape_cast %148 : vector<16x16xf32> to vector<1x16x16xf32>
    %155 = vector.broadcast %154 : vector<1x16x16xf32> to vector<4x16x16xf32>
    %156 = arith.addf %153, %155 : vector<4x16x16xf32>
    %cst_74 = arith.constant dense<0xFF800000> : vector<4x16xf32>
    %157 = vector.multi_reduction <maximumf>, %156, %cst_74 [2] : vector<4x16x16xf32> to vector<4x16xf32>
    %158 = vector.shape_cast %157 : vector<4x16xf32> to vector<4x16x1xf32>
    %159 = vector.broadcast %158 : vector<4x16x1xf32> to vector<4x16x16xf32>
    %160 = arith.subf %156, %159 : vector<4x16x16xf32>
    %161 = math.exp %160 : vector<4x16x16xf32>
    %cst_75 = arith.constant dense<0.000000e+00> : vector<4x16xf32>
    %162 = vector.multi_reduction <add>, %161, %cst_75 [2] : vector<4x16x16xf32> to vector<4x16xf32>
    %163 = vector.shape_cast %162 : vector<4x16xf32> to vector<4x16x1xf32>
    %164 = tpu.reciprocal %163 {approx = true} : vector<4x16x1xf32> -> vector<4x16x1xf32>
    %165 = vector.broadcast %164 : vector<4x16x1xf32> to vector<4x16x16xf32>
    %166 = arith.mulf %161, %165 : vector<4x16x16xf32>
    %167 = arith.truncf %166 : vector<4x16x16xf32> to vector<4x16x16xbf16>
    %168 = arith.truncf %147 : vector<4x16x8xf32> to vector<4x16x8xbf16>
    "tpu.trace_start"() <{level = 10 : i32, message = "hqk,hkd->hqd"}> : () -> ()
    %cst_76 = arith.constant dense<0.000000e+00> : vector<4x16x8xf32>
    %169 = tpu.matmul %167, %168, %cst_76 {dimension_numbers = #tpu.dot_dimension_numbers<[2], [1], [1], [2], [0, 0, 0, 1, 1, 2], [0], [0]>} : vector<4x16x16xbf16>, vector<4x16x8xbf16>, vector<4x16x8xf32> -> vector<4x16x8xf32>
    %cst_77 = arith.constant 0.000000e+00 : f32
    "tpu.trace_stop"() : () -> ()
    %170 = vector.broadcast %cst_77 : f32 to vector<16x32xf32>
    %171 = vector.extract_strided_slice %169 {offsets = [0, 0, 0], sizes = [1, 16, 8], strides = [1, 1, 1]} : vector<4x16x8xf32> to vector<1x16x8xf32>
    %172 = vector.shape_cast %171 : vector<1x16x8xf32> to vector<16x8xf32>
    %173 = arith.truncf %172 : vector<16x8xf32> to vector<16x8xbf16>
    %c0_78 = arith.constant 0 : index
    %c0_79 = arith.constant 0 : index
    %c0_80 = arith.constant 0 : index
    %174 = vector.load %arg17[%c0_78, %c0_79, %c0_80] : memref<1x32x32xbf16, #tpu.memory_space<vmem>>, vector<1x8x32xbf16>
    %175 = vector.shape_cast %174 : vector<1x8x32xbf16> to vector<8x32xbf16>
    %cst_81 = arith.constant dense<0.000000e+00> : vector<16x32xf32>
    %176 = tpu.matmul %173, %175, %cst_81 {dimension_numbers = #tpu.dot_dimension_numbers<[1], [0], [0], [1], [0, 0, 1, 1], [], []>} : vector<16x8xbf16>, vector<8x32xbf16>, vector<16x32xf32> -> vector<16x32xf32>
    %177 = arith.addf %170, %176 : vector<16x32xf32>
    %178 = vector.extract_strided_slice %169 {offsets = [1, 0, 0], sizes = [1, 16, 8], strides = [1, 1, 1]} : vector<4x16x8xf32> to vector<1x16x8xf32>
    %179 = vector.shape_cast %178 : vector<1x16x8xf32> to vector<16x8xf32>
    %180 = arith.truncf %179 : vector<16x8xf32> to vector<16x8xbf16>
    %c0_82 = arith.constant 0 : index
    %c8_83 = arith.constant 8 : index
    %c0_84 = arith.constant 0 : index
    %181 = vector.load %arg17[%c0_82, %c8_83, %c0_84] : memref<1x32x32xbf16, #tpu.memory_space<vmem>>, vector<1x8x32xbf16>
    %182 = vector.shape_cast %181 : vector<1x8x32xbf16> to vector<8x32xbf16>
    %cst_85 = arith.constant dense<0.000000e+00> : vector<16x32xf32>
    %183 = tpu.matmul %180, %182, %cst_85 {dimension_numbers = #tpu.dot_dimension_numbers<[1], [0], [0], [1], [0, 0, 1, 1], [], []>} : vector<16x8xbf16>, vector<8x32xbf16>, vector<16x32xf32> -> vector<16x32xf32>
    %184 = arith.addf %177, %183 : vector<16x32xf32>
    %185 = vector.extract_strided_slice %169 {offsets = [2, 0, 0], sizes = [1, 16, 8], strides = [1, 1, 1]} : vector<4x16x8xf32> to vector<1x16x8xf32>
    %186 = vector.shape_cast %185 : vector<1x16x8xf32> to vector<16x8xf32>
    %187 = arith.truncf %186 : vector<16x8xf32> to vector<16x8xbf16>
    %c0_86 = arith.constant 0 : index
    %c16_87 = arith.constant 16 : index
    %c0_88 = arith.constant 0 : index
    %188 = vector.load %arg17[%c0_86, %c16_87, %c0_88] : memref<1x32x32xbf16, #tpu.memory_space<vmem>>, vector<1x8x32xbf16>
    %189 = vector.shape_cast %188 : vector<1x8x32xbf16> to vector<8x32xbf16>
    %cst_89 = arith.constant dense<0.000000e+00> : vector<16x32xf32>
    %190 = tpu.matmul %187, %189, %cst_89 {dimension_numbers = #tpu.dot_dimension_numbers<[1], [0], [0], [1], [0, 0, 1, 1], [], []>} : vector<16x8xbf16>, vector<8x32xbf16>, vector<16x32xf32> -> vector<16x32xf32>
    %191 = arith.addf %184, %190 : vector<16x32xf32>
    %192 = vector.extract_strided_slice %169 {offsets = [3, 0, 0], sizes = [1, 16, 8], strides = [1, 1, 1]} : vector<4x16x8xf32> to vector<1x16x8xf32>
    %193 = vector.shape_cast %192 : vector<1x16x8xf32> to vector<16x8xf32>
    %194 = arith.truncf %193 : vector<16x8xf32> to vector<16x8xbf16>
    %c0_90 = arith.constant 0 : index
    %c24_91 = arith.constant 24 : index
    %c0_92 = arith.constant 0 : index
    %195 = vector.load %arg17[%c0_90, %c24_91, %c0_92] : memref<1x32x32xbf16, #tpu.memory_space<vmem>>, vector<1x8x32xbf16>
    %196 = vector.shape_cast %195 : vector<1x8x32xbf16> to vector<8x32xbf16>
    %cst_93 = arith.constant dense<0.000000e+00> : vector<16x32xf32>
    %197 = tpu.matmul %194, %196, %cst_93 {dimension_numbers = #tpu.dot_dimension_numbers<[1], [0], [0], [1], [0, 0, 1, 1], [], []>} : vector<16x8xbf16>, vector<8x32xbf16>, vector<16x32xf32> -> vector<16x32xf32>
    %198 = arith.addf %191, %197 : vector<16x32xf32>
    %c0_94 = arith.constant 0 : index
    %c0_95 = arith.constant 0 : index
    %c0_96 = arith.constant 0 : index
    %199 = vector.load %arg18[%c0_94, %c0_95, %c0_96] : memref<1x1x32xf32, #tpu.memory_space<vmem>>, vector<1x1x32xf32>
    %200 = vector.shape_cast %199 : vector<1x1x32xf32> to vector<1x32xf32>
    %201 = vector.broadcast %200 : vector<1x32xf32> to vector<16x32xf32>
    %202 = arith.addf %198, %201 : vector<16x32xf32>
    %203 = arith.addf %99, %202 : vector<16x32xf32>
    %c0_97 = arith.constant 0 : index
    %c0_98 = arith.constant 0 : index
    %c0_99 = arith.constant 0 : index
    %204 = vector.load %arg19[%c0_97, %c0_98, %c0_99] : memref<1x1x32xf32, #tpu.memory_space<vmem>>, vector<1x1x32xf32>
    %205 = vector.shape_cast %204 : vector<1x1x32xf32> to vector<1x32xf32>
    %c0_100 = arith.constant 0 : index
    %c0_101 = arith.constant 0 : index
    %c0_102 = arith.constant 0 : index
    %206 = vector.load %arg20[%c0_100, %c0_101, %c0_102] : memref<1x1x32xf32, #tpu.memory_space<vmem>>, vector<1x1x32xf32>
    %207 = vector.shape_cast %206 : vector<1x1x32xf32> to vector<1x32xf32>
    %cst_103 = arith.constant dense<0.000000e+00> : vector<16xf32>
    %208 = vector.multi_reduction <add>, %203, %cst_103 [1] : vector<16x32xf32> to vector<16xf32>
    %209 = vector.shape_cast %208 : vector<16xf32> to vector<16x1xf32>
    %cst_104 = arith.constant 3.200000e+01 : f32
    %210 = vector.broadcast %cst_104 : f32 to vector<16x1xf32>
    %211 = arith.divf %209, %210 : vector<16x1xf32>
    %212 = vector.broadcast %211 : vector<16x1xf32> to vector<16x32xf32>
    %213 = arith.subf %203, %212 : vector<16x32xf32>
    %214 = arith.mulf %213, %213 : vector<16x32xf32>
    %cst_105 = arith.constant dense<0.000000e+00> : vector<16xf32>
    %215 = vector.multi_reduction <add>, %214, %cst_105 [1] : vector<16x32xf32> to vector<16xf32>
    %216 = vector.shape_cast %215 : vector<16xf32> to vector<16x1xf32>
    %cst_106 = arith.constant 3.200000e+01 : f32
    %217 = vector.broadcast %cst_106 : f32 to vector<16x1xf32>
    %218 = arith.divf %216, %217 : vector<16x1xf32>
    %219 = vector.broadcast %211 : vector<16x1xf32> to vector<16x32xf32>
    %220 = arith.subf %203, %219 : vector<16x32xf32>
    %cst_107 = arith.constant 9.99999974E-6 : f32
    %221 = vector.broadcast %cst_107 : f32 to vector<16x1xf32>
    %222 = arith.addf %218, %221 : vector<16x1xf32>
    %223 = math.rsqrt %222 : vector<16x1xf32>
    %224 = vector.broadcast %223 : vector<16x1xf32> to vector<16x32xf32>
    %225 = arith.mulf %220, %224 : vector<16x32xf32>
    %226 = vector.broadcast %205 : vector<1x32xf32> to vector<16x32xf32>
    %227 = arith.mulf %225, %226 : vector<16x32xf32>
    %228 = vector.broadcast %207 : vector<1x32xf32> to vector<16x32xf32>
    %229 = arith.addf %227, %228 : vector<16x32xf32>
    %230 = arith.truncf %229 : vector<16x32xf32> to vector<16x32xbf16>
    %c0_108 = arith.constant 0 : index
    %c0_109 = arith.constant 0 : index
    %c0_110 = arith.constant 0 : index
    %231 = vector.load %arg21[%c0_108, %c0_109, %c0_110] : memref<1x32x64xbf16, #tpu.memory_space<vmem>>, vector<1x32x64xbf16>
    %232 = vector.shape_cast %231 : vector<1x32x64xbf16> to vector<32x64xbf16>
    %cst_111 = arith.constant dense<0.000000e+00> : vector<16x64xf32>
    %233 = tpu.matmul %230, %232, %cst_111 {dimension_numbers = #tpu.dot_dimension_numbers<[1], [0], [0], [1], [0, 0, 1, 1], [], []>} : vector<16x32xbf16>, vector<32x64xbf16>, vector<16x64xf32> -> vector<16x64xf32>
    %c0_112 = arith.constant 0 : index
    %c0_113 = arith.constant 0 : index
    %c0_114 = arith.constant 0 : index
    %234 = vector.load %arg22[%c0_112, %c0_113, %c0_114] : memref<1x1x64xf32, #tpu.memory_space<vmem>>, vector<1x1x64xf32>
    %235 = vector.shape_cast %234 : vector<1x1x64xf32> to vector<1x64xf32>
    %236 = vector.broadcast %235 : vector<1x64xf32> to vector<16x64xf32>
    %237 = arith.addf %233, %236 : vector<16x64xf32>
    %cst_115 = arith.constant 0.000000e+00 : f32
    %238 = vector.broadcast %cst_115 : f32 to vector<16x64xf32>
    %239 = arith.maximumf %237, %238 : vector<16x64xf32>
    %240 = arith.truncf %239 : vector<16x64xf32> to vector<16x64xbf16>
    %c0_116 = arith.constant 0 : index
    %c0_117 = arith.constant 0 : index
    %c0_118 = arith.constant 0 : index
    %241 = vector.load %arg23[%c0_116, %c0_117, %c0_118] : memref<1x64x32xbf16, #tpu.memory_space<vmem>>, vector<1x64x32xbf16>
    %242 = vector.shape_cast %241 : vector<1x64x32xbf16> to vector<64x32xbf16>
    %cst_119 = arith.constant dense<0.000000e+00> : vector<16x32xf32>
    %243 = tpu.matmul %240, %242, %cst_119 {dimension_numbers = #tpu.dot_dimension_numbers<[1], [0], [0], [1], [0, 0, 1, 1], [], []>} : vector<16x64xbf16>, vector<64x32xbf16>, vector<16x32xf32> -> vector<16x32xf32>
    %c0_120 = arith.constant 0 : index
    %c0_121 = arith.constant 0 : index
    %c0_122 = arith.constant 0 : index
    %244 = vector.load %arg24[%c0_120, %c0_121, %c0_122] : memref<1x1x32xf32, #tpu.memory_space<vmem>>, vector<1x1x32xf32>
    %245 = vector.shape_cast %244 : vector<1x1x32xf32> to vector<1x32xf32>
    %246 = vector.broadcast %245 : vector<1x32xf32> to vector<16x32xf32>
    %247 = arith.addf %243, %246 : vector<16x32xf32>
    %248 = arith.addf %203, %247 : vector<16x32xf32>
    %c0_123 = arith.constant 0 : index
    %c0_124 = arith.constant 0 : index
    %249 = vector.load %arg29[%c0_123, %c0_124] : memref<16x32xf32, #tpu.memory_space<vmem>>, vector<16x32xf32>
    tpu.vector_store %arg29[%c0_123, %c0_124], %248 {strides = array<i32>} : memref<16x32xf32, #tpu.memory_space<vmem>>, vector<16x32xf32>,
    %c1_i32 = arith.constant 1 : i32
    %250 = arith.cmpi eq, %arg0, %c1_i32 : i32
    %251 = arith.extui %250 : i1 to i32
    %c0_i32_125 = arith.constant 0 : i32
    %252 = arith.cmpi ne, %251, %c0_i32_125 : i32
    scf.if %252 {
      %c0_126 = arith.constant 0 : index
      %c0_127 = arith.constant 0 : index
      %253 = vector.load %arg25[%c0_126, %c0_127] : memref<1x32xf32, #tpu.memory_space<vmem>>, vector<1x32xf32>
      %c0_128 = arith.constant 0 : index
      %c0_129 = arith.constant 0 : index
      %254 = vector.load %arg26[%c0_128, %c0_129] : memref<1x32xf32, #tpu.memory_space<vmem>>, vector<1x32xf32>
      %cst_130 = arith.constant dense<0.000000e+00> : vector<16xf32>
      %255 = vector.multi_reduction <add>, %248, %cst_130 [1] : vector<16x32xf32> to vector<16xf32>
      %256 = vector.shape_cast %255 : vector<16xf32> to vector<16x1xf32>
      %cst_131 = arith.constant 3.200000e+01 : f32
      %257 = vector.broadcast %cst_131 : f32 to vector<16x1xf32>
      %258 = arith.divf %256, %257 : vector<16x1xf32>
      %259 = vector.broadcast %258 : vector<16x1xf32> to vector<16x32xf32>
      %260 = arith.subf %248, %259 : vector<16x32xf32>
      %261 = arith.mulf %260, %260 : vector<16x32xf32>
      %cst_132 = arith.constant dense<0.000000e+00> : vector<16xf32>
      %262 = vector.multi_reduction <add>, %261, %cst_132 [1] : vector<16x32xf32> to vector<16xf32>
      %263 = vector.shape_cast %262 : vector<16xf32> to vector<16x1xf32>
      %cst_133 = arith.constant 3.200000e+01 : f32
      %264 = vector.broadcast %cst_133 : f32 to vector<16x1xf32>
      %265 = arith.divf %263, %264 : vector<16x1xf32>
      %266 = vector.broadcast %258 : vector<16x1xf32> to vector<16x32xf32>
      %267 = arith.subf %248, %266 : vector<16x32xf32>
      %cst_134 = arith.constant 9.99999974E-6 : f32
      %268 = vector.broadcast %cst_134 : f32 to vector<16x1xf32>
      %269 = arith.addf %265, %268 : vector<16x1xf32>
      %270 = math.rsqrt %269 : vector<16x1xf32>
      %271 = vector.broadcast %270 : vector<16x1xf32> to vector<16x32xf32>
      %272 = arith.mulf %267, %271 : vector<16x32xf32>
      %273 = vector.broadcast %253 : vector<1x32xf32> to vector<16x32xf32>
      %274 = arith.mulf %272, %273 : vector<16x32xf32>
      %275 = vector.broadcast %254 : vector<1x32xf32> to vector<16x32xf32>
      %276 = arith.addf %274, %275 : vector<16x32xf32>
      %277 = arith.truncf %276 : vector<16x32xf32> to vector<16x32xbf16>
      %c0_135 = arith.constant 0 : index
      %c0_136 = arith.constant 0 : index
      %278 = vector.load %arg27[%c0_135, %c0_136] : memref<128x32xbf16, #tpu.memory_space<vmem>>, vector<128x32xbf16>
      %cst_137 = arith.constant dense<0.000000e+00> : vector<16x128xf32>
      %279 = tpu.matmul %277, %278, %cst_137 {dimension_numbers = #tpu.dot_dimension_numbers<[1], [1], [0], [0], [0, 0, 1, 0], [], []>} : vector<16x32xbf16>, vector<128x32xbf16>, vector<16x128xf32> -> vector<16x128xf32>
      %c0_138 = arith.constant 0 : index
      %c0_139 = arith.constant 0 : index
      %280 = vector.load %arg28[%c0_138, %c0_139] : memref<16x128xf32, #tpu.memory_space<vmem>>, vector<16x128xf32>
      tpu.vector_store %arg28[%c0_138, %c0_139], %279 {strides = array<i32>} : memref<16x128xf32, #tpu.memory_space<vmem>>, vector<16x128xf32>,
    } else {
    }
    return
  }
  func.func @transform_0(%arg0: i32) -> (i32, i32) {
    %c0_i32 = arith.constant 0 : i32
    %c0_i32_0 = arith.constant 0 : i32
    %c0_i32_1 = arith.constant 0 : i32
    return %c0_i32, %c0_i32_0 : i32, i32
  }
  func.func @transform_1(%arg0: i32) -> (i32, i32) {
    %c0_i32 = arith.constant 0 : i32
    %c0_i32_0 = arith.constant 0 : i32
    %c0_i32_1 = arith.constant 0 : i32
    return %c0_i32, %c0_i32_0 : i32, i32
  }
  func.func @transform_2(%arg0: i32) -> (i32, i32) {
    %c0_i32 = arith.constant 0 : i32
    %c0_i32_0 = arith.constant 0 : i32
    %c0_i32_1 = arith.constant 0 : i32
    return %c0_i32, %c0_i32_0 : i32, i32
  }
  func.func @transform_3(%arg0: i32) -> (i32, i32) {
    %c0_i32 = arith.constant 0 : i32
    %c0_i32_0 = arith.constant 0 : i32
    %c0_i32_1 = arith.constant 0 : i32
    return %c0_i32, %c0_i32_0 : i32, i32
  }
  func.func @transform_4(%arg0: i32) -> (i32, i32, i32) {
    %c0_i32 = arith.constant 0 : i32
    %c0_i32_0 = arith.constant 0 : i32
    %c0_i32_1 = arith.constant 0 : i32
    return %arg0, %c0_i32, %c0_i32_0 : i32, i32, i32
  }
  func.func @transform_5(%arg0: i32) -> (i32, i32, i32) {
    %c0_i32 = arith.constant 0 : i32
    %c0_i32_0 = arith.constant 0 : i32
    %c0_i32_1 = arith.constant 0 : i32
    return %arg0, %c0_i32, %c0_i32_0 : i32, i32, i32
  }
  func.func @transform_6(%arg0: i32) -> (i32, i32, i32) {
    %c0_i32 = arith.constant 0 : i32
    %c0_i32_0 = arith.constant 0 : i32
    %c0_i32_1 = arith.constant 0 : i32
    return %arg0, %c0_i32, %c0_i32_0 : i32, i32, i32
  }
  func.func @transform_7(%arg0: i32) -> (i32, i32, i32) {
    %c0_i32 = arith.constant 0 : i32
    %c0_i32_0 = arith.constant 0 : i32
    %c0_i32_1 = arith.constant 0 : i32
    return %arg0, %c0_i32, %c0_i32_0 : i32, i32, i32
  }
  func.func @transform_8(%arg0: i32) -> (i32, i32, i32) {
    %c0_i32 = arith.constant 0 : i32
    %c0_i32_0 = arith.constant 0 : i32
    %c0_i32_1 = arith.constant 0 : i32
    return %arg0, %c0_i32, %c0_i32_0 : i32, i32, i32
  }
  func.func @transform_9(%arg0: i32) -> (i32, i32, i32) {
    %c0_i32 = arith.constant 0 : i32
    %c0_i32_0 = arith.constant 0 : i32
    %c0_i32_1 = arith.constant 0 : i32
    return %arg0, %c0_i32, %c0_i32_0 : i32, i32, i32
  }
  func.func @transform_10(%arg0: i32) -> (i32, i32, i32) {
    %c0_i32 = arith.constant 0 : i32
    %c0_i32_0 = arith.constant 0 : i32
    %c0_i32_1 = arith.constant 0 : i32
    return %arg0, %c0_i32, %c0_i32_0 : i32, i32, i32
  }
  func.func @transform_11(%arg0: i32) -> (i32, i32, i32) {
    %c0_i32 = arith.constant 0 : i32
    %c0_i32_0 = arith.constant 0 : i32
    %c0_i32_1 = arith.constant 0 : i32
    return %arg0, %c0_i32, %c0_i32_0 : i32, i32, i32
  }
  func.func @transform_12(%arg0: i32) -> (i32, i32, i32) {
    %c0_i32 = arith.constant 0 : i32
    %c0_i32_0 = arith.constant 0 : i32
    %c0_i32_1 = arith.constant 0 : i32
    return %arg0, %c0_i32, %c0_i32_0 : i32, i32, i32
  }
  func.func @transform_13(%arg0: i32) -> (i32, i32, i32) {
    %c0_i32 = arith.constant 0 : i32
    %c0_i32_0 = arith.constant 0 : i32
    %c0_i32_1 = arith.constant 0 : i32
    return %arg0, %c0_i32, %c0_i32_0 : i32, i32, i32
  }
  func.func @transform_14(%arg0: i32) -> (i32, i32, i32) {
    %c0_i32 = arith.constant 0 : i32
    %c0_i32_0 = arith.constant 0 : i32
    %c0_i32_1 = arith.constant 0 : i32
    return %arg0, %c0_i32, %c0_i32_0 : i32, i32, i32
  }
  func.func @transform_15(%arg0: i32) -> (i32, i32, i32) {
    %c0_i32 = arith.constant 0 : i32
    %c0_i32_0 = arith.constant 0 : i32
    %c0_i32_1 = arith.constant 0 : i32
    return %arg0, %c0_i32, %c0_i32_0 : i32, i32, i32
  }
  func.func @transform_16(%arg0: i32) -> (i32, i32, i32) {
    %c0_i32 = arith.constant 0 : i32
    %c0_i32_0 = arith.constant 0 : i32
    %c0_i32_1 = arith.constant 0 : i32
    return %arg0, %c0_i32, %c0_i32_0 : i32, i32, i32
  }
  func.func @transform_17(%arg0: i32) -> (i32, i32, i32) {
    %c0_i32 = arith.constant 0 : i32
    %c0_i32_0 = arith.constant 0 : i32
    %c0_i32_1 = arith.constant 0 : i32
    return %arg0, %c0_i32, %c0_i32_0 : i32, i32, i32
  }
  func.func @transform_18(%arg0: i32) -> (i32, i32, i32) {
    %c0_i32 = arith.constant 0 : i32
    %c0_i32_0 = arith.constant 0 : i32
    %c0_i32_1 = arith.constant 0 : i32
    return %arg0, %c0_i32, %c0_i32_0 : i32, i32, i32
  }
  func.func @transform_19(%arg0: i32) -> (i32, i32, i32) {
    %c0_i32 = arith.constant 0 : i32
    %c0_i32_0 = arith.constant 0 : i32
    %c0_i32_1 = arith.constant 0 : i32
    return %arg0, %c0_i32, %c0_i32_0 : i32, i32, i32
  }
  func.func @transform_20(%arg0: i32) -> (i32, i32, i32) {
    %c0_i32 = arith.constant 0 : i32
    %c0_i32_0 = arith.constant 0 : i32
    %c0_i32_1 = arith.constant 0 : i32
    return %arg0, %c0_i32, %c0_i32_0 : i32, i32, i32
  }
  func.func @transform_21(%arg0: i32) -> (i32, i32, i32) {
    %c0_i32 = arith.constant 0 : i32
    %c0_i32_0 = arith.constant 0 : i32
    %c0_i32_1 = arith.constant 0 : i32
    return %arg0, %c0_i32, %c0_i32_0 : i32, i32, i32
  }
  func.func @transform_22(%arg0: i32) -> (i32, i32, i32) {
    %c0_i32 = arith.constant 0 : i32
    %c0_i32_0 = arith.constant 0 : i32
    %c0_i32_1 = arith.constant 0 : i32
    return %arg0, %c0_i32, %c0_i32_0 : i32, i32, i32
  }
  func.func @transform_23(%arg0: i32) -> (i32, i32, i32) {
    %c0_i32 = arith.constant 0 : i32
    %c0_i32_0 = arith.constant 0 : i32
    %c0_i32_1 = arith.constant 0 : i32
    return %arg0, %c0_i32, %c0_i32_0 : i32, i32, i32
  }
  func.func @transform_24(%arg0: i32) -> (i32, i32) {
    %c0_i32 = arith.constant 0 : i32
    %c0_i32_0 = arith.constant 0 : i32
    %c0_i32_1 = arith.constant 0 : i32
    return %c0_i32, %c0_i32_0 : i32, i32
  }
  func.func @transform_25(%arg0: i32) -> (i32, i32) {
    %c0_i32 = arith.constant 0 : i32
    %c0_i32_0 = arith.constant 0 : i32
    %c0_i32_1 = arith.constant 0 : i32
    return %c0_i32, %c0_i32_0 : i32, i32
  }
  func.func @transform_26(%arg0: i32) -> (i32, i32) {
    %c0_i32 = arith.constant 0 : i32
    %c0_i32_0 = arith.constant 0 : i32
    %c0_i32_1 = arith.constant 0 : i32
    return %c0_i32, %c0_i32_0 : i32, i32
  }
  func.func @transform_27(%arg0: i32) -> (i32, i32) {
    %c0_i32 = arith.constant 0 : i32
    %c0_i32_0 = arith.constant 0 : i32
    %c0_i32_1 = arith.constant 0 : i32
    return %c0_i32, %c0_i32_0 : i32, i32
  }
}

module attributes {stable_mosaic.version = 11 : i64} {
  func.func @_encoder_stack_kernel(%arg0: i32, %arg1: memref<16x32xf32, #tpu.memory_space<vmem>>, %arg2: memref<16x16xf32, #tpu.memory_space<vmem>>, %arg3: memref<1x1x32xf32, #tpu.memory_space<vmem>>, %arg4: memref<1x1x32xf32, #tpu.memory_space<vmem>>, %arg5: memref<1x32x96xbf16, #tpu.memory_space<vmem>>, %arg6: memref<1x1x96xf32, #tpu.memory_space<vmem>>, %arg7: memref<1x32x32xbf16, #tpu.memory_space<vmem>>, %arg8: memref<1x1x32xf32, #tpu.memory_space<vmem>>, %arg9: memref<1x1x32xf32, #tpu.memory_space<vmem>>, %arg10: memref<1x1x32xf32, #tpu.memory_space<vmem>>, %arg11: memref<1x32x64xbf16, #tpu.memory_space<vmem>>, %arg12: memref<1x1x64xf32, #tpu.memory_space<vmem>>, %arg13: memref<1x64x32xbf16, #tpu.memory_space<vmem>>, %arg14: memref<1x1x32xf32, #tpu.memory_space<vmem>>, %arg15: memref<1x32xf32, #tpu.memory_space<vmem>>, %arg16: memref<1x32xf32, #tpu.memory_space<vmem>>, %arg17: memref<16x32xf32, #tpu.memory_space<vmem>>, %arg18: memref<16x32xf32, #tpu.memory_space<vmem>>) attributes {dimension_semantics = [#tpu.dimension_semantics<arbitrary>], iteration_bounds = array<i64: 2>, scalar_prefetch = 0 : i64, scratch_operands = 1 : i64, tpu.core_type = #tpu.core_type<tc>, window_params = [{pipeline_mode = #tpu.pipeline_mode<synchronous>, transform_indices = @transform_0, window_bounds = array<i64: 16, 32>}, {pipeline_mode = #tpu.pipeline_mode<synchronous>, transform_indices = @transform_1, window_bounds = array<i64: 16, 16>}, {transform_indices = @transform_2, window_bounds = array<i64: 1, 1, 32>}, {transform_indices = @transform_3, window_bounds = array<i64: 1, 1, 32>}, {transform_indices = @transform_4, window_bounds = array<i64: 1, 32, 96>}, {transform_indices = @transform_5, window_bounds = array<i64: 1, 1, 96>}, {transform_indices = @transform_6, window_bounds = array<i64: 1, 32, 32>}, {transform_indices = @transform_7, window_bounds = array<i64: 1, 1, 32>}, {transform_indices = @transform_8, window_bounds = array<i64: 1, 1, 32>}, {transform_indices = @transform_9, window_bounds = array<i64: 1, 1, 32>}, {transform_indices = @transform_10, window_bounds = array<i64: 1, 32, 64>}, {transform_indices = @transform_11, window_bounds = array<i64: 1, 1, 64>}, {transform_indices = @transform_12, window_bounds = array<i64: 1, 64, 32>}, {transform_indices = @transform_13, window_bounds = array<i64: 1, 1, 32>}, {pipeline_mode = #tpu.pipeline_mode<synchronous>, transform_indices = @transform_14, window_bounds = array<i64: 1, 32>}, {pipeline_mode = #tpu.pipeline_mode<synchronous>, transform_indices = @transform_15, window_bounds = array<i64: 1, 32>}, {pipeline_mode = #tpu.pipeline_mode<synchronous>, transform_indices = @transform_16, window_bounds = array<i64: 16, 32>}]} {
    %c0_i32 = arith.constant 0 : i32
    %0 = arith.cmpi eq, %arg0, %c0_i32 : i32
    %1 = arith.extui %0 : i1 to i32
    %c0_i32_0 = arith.constant 0 : i32
    %2 = arith.cmpi ne, %1, %c0_i32_0 : i32
    scf.if %2 {
      %c0_72 = arith.constant 0 : index
      %c0_73 = arith.constant 0 : index
      %148 = vector.load %arg1[%c0_72, %c0_73] : memref<16x32xf32, #tpu.memory_space<vmem>>, vector<16x32xf32>
      %c0_74 = arith.constant 0 : index
      %c0_75 = arith.constant 0 : index
      %149 = vector.load %arg18[%c0_74, %c0_75] : memref<16x32xf32, #tpu.memory_space<vmem>>, vector<16x32xf32>
      tpu.vector_store %arg18[%c0_74, %c0_75], %148 {strides = array<i32>} : memref<16x32xf32, #tpu.memory_space<vmem>>, vector<16x32xf32>,
    } else {
    }
    %c0 = arith.constant 0 : index
    %c0_1 = arith.constant 0 : index
    %3 = vector.load %arg18[%c0, %c0_1] : memref<16x32xf32, #tpu.memory_space<vmem>>, vector<16x32xf32>
    %c0_2 = arith.constant 0 : index
    %c0_3 = arith.constant 0 : index
    %c0_4 = arith.constant 0 : index
    %4 = vector.load %arg3[%c0_2, %c0_3, %c0_4] : memref<1x1x32xf32, #tpu.memory_space<vmem>>, vector<1x1x32xf32>
    %5 = vector.shape_cast %4 : vector<1x1x32xf32> to vector<1x32xf32>
    %c0_5 = arith.constant 0 : index
    %c0_6 = arith.constant 0 : index
    %c0_7 = arith.constant 0 : index
    %6 = vector.load %arg4[%c0_5, %c0_6, %c0_7] : memref<1x1x32xf32, #tpu.memory_space<vmem>>, vector<1x1x32xf32>
    %7 = vector.shape_cast %6 : vector<1x1x32xf32> to vector<1x32xf32>
    %cst = arith.constant dense<0.000000e+00> : vector<16xf32>
    %8 = vector.multi_reduction <add>, %3, %cst [1] : vector<16x32xf32> to vector<16xf32>
    %9 = vector.shape_cast %8 : vector<16xf32> to vector<16x1xf32>
    %cst_8 = arith.constant 3.200000e+01 : f32
    %10 = vector.broadcast %cst_8 : f32 to vector<16x1xf32>
    %11 = arith.divf %9, %10 : vector<16x1xf32>
    %12 = vector.broadcast %11 : vector<16x1xf32> to vector<16x32xf32>
    %13 = arith.subf %3, %12 : vector<16x32xf32>
    %14 = arith.mulf %13, %13 : vector<16x32xf32>
    %cst_9 = arith.constant dense<0.000000e+00> : vector<16xf32>
    %15 = vector.multi_reduction <add>, %14, %cst_9 [1] : vector<16x32xf32> to vector<16xf32>
    %16 = vector.shape_cast %15 : vector<16xf32> to vector<16x1xf32>
    %cst_10 = arith.constant 3.200000e+01 : f32
    %17 = vector.broadcast %cst_10 : f32 to vector<16x1xf32>
    %18 = arith.divf %16, %17 : vector<16x1xf32>
    %19 = vector.broadcast %11 : vector<16x1xf32> to vector<16x32xf32>
    %20 = arith.subf %3, %19 : vector<16x32xf32>
    %cst_11 = arith.constant 9.99999974E-6 : f32
    %21 = vector.broadcast %cst_11 : f32 to vector<16x1xf32>
    %22 = arith.addf %18, %21 : vector<16x1xf32>
    %23 = math.rsqrt %22 : vector<16x1xf32>
    %24 = vector.broadcast %23 : vector<16x1xf32> to vector<16x32xf32>
    %25 = arith.mulf %20, %24 : vector<16x32xf32>
    %26 = vector.broadcast %5 : vector<1x32xf32> to vector<16x32xf32>
    %27 = arith.mulf %25, %26 : vector<16x32xf32>
    %28 = vector.broadcast %7 : vector<1x32xf32> to vector<16x32xf32>
    %29 = arith.addf %27, %28 : vector<16x32xf32>
    %30 = arith.truncf %29 : vector<16x32xf32> to vector<16x32xbf16>
    %c0_12 = arith.constant 0 : index
    %c0_13 = arith.constant 0 : index
    %c0_14 = arith.constant 0 : index
    %31 = vector.load %arg5[%c0_12, %c0_13, %c0_14] : memref<1x32x96xbf16, #tpu.memory_space<vmem>>, vector<1x32x96xbf16>
    %32 = vector.shape_cast %31 : vector<1x32x96xbf16> to vector<32x96xbf16>
    %cst_15 = arith.constant dense<0.000000e+00> : vector<16x96xf32>
    %33 = tpu.matmul %30, %32, %cst_15 {dimension_numbers = #tpu.dot_dimension_numbers<[1], [0], [0], [1], [0, 0, 1, 1], [], []>} : vector<16x32xbf16>, vector<32x96xbf16>, vector<16x96xf32> -> vector<16x96xf32>
    %c0_16 = arith.constant 0 : index
    %c0_17 = arith.constant 0 : index
    %c0_18 = arith.constant 0 : index
    %34 = vector.load %arg6[%c0_16, %c0_17, %c0_18] : memref<1x1x96xf32, #tpu.memory_space<vmem>>, vector<1x1x96xf32>
    %35 = vector.shape_cast %34 : vector<1x1x96xf32> to vector<1x96xf32>
    %36 = vector.broadcast %35 : vector<1x96xf32> to vector<16x96xf32>
    %37 = arith.addf %33, %36 : vector<16x96xf32>
    %38 = vector.shape_cast %37 : vector<16x96xf32> to vector<16x12x8xf32>
    %39 = tpu.transpose %38, [1, 0, 2] : vector<16x12x8xf32> -> vector<12x16x8xf32>
    %40 = vector.extract_strided_slice %39 {offsets = [0, 0, 0], sizes = [4, 16, 8], strides = [1, 1, 1]} : vector<12x16x8xf32> to vector<4x16x8xf32>
    %41 = vector.extract_strided_slice %39 {offsets = [4, 0, 0], sizes = [4, 16, 8], strides = [1, 1, 1]} : vector<12x16x8xf32> to vector<4x16x8xf32>
    %42 = vector.extract_strided_slice %39 {offsets = [8, 0, 0], sizes = [4, 16, 8], strides = [1, 1, 1]} : vector<12x16x8xf32> to vector<4x16x8xf32>
    %c0_19 = arith.constant 0 : index
    %c0_20 = arith.constant 0 : index
    %43 = vector.load %arg2[%c0_19, %c0_20] : memref<16x16xf32, #tpu.memory_space<vmem>>, vector<16x16xf32>
    %44 = arith.truncf %40 : vector<4x16x8xf32> to vector<4x16x8xbf16>
    %45 = arith.truncf %41 : vector<4x16x8xf32> to vector<4x16x8xbf16>
    "tpu.trace_start"() <{level = 10 : i32, message = "hqd,hkd->hqk"}> : () -> ()
    %cst_21 = arith.constant dense<0.000000e+00> : vector<4x16x16xf32>
    %46 = tpu.matmul %44, %45, %cst_21 {dimension_numbers = #tpu.dot_dimension_numbers<[2], [2], [1], [1], [0, 0, 0, 1, 1, 1], [0], [0]>} : vector<4x16x8xbf16>, vector<4x16x8xbf16>, vector<4x16x16xf32> -> vector<4x16x16xf32>
    "tpu.trace_stop"() : () -> ()
    %cst_22 = arith.constant 0.353553385 : f32
    %47 = vector.broadcast %cst_22 : f32 to vector<4x16x16xf32>
    %48 = arith.mulf %46, %47 : vector<4x16x16xf32>
    %49 = vector.shape_cast %43 : vector<16x16xf32> to vector<1x16x16xf32>
    %50 = vector.broadcast %49 : vector<1x16x16xf32> to vector<4x16x16xf32>
    %51 = arith.addf %48, %50 : vector<4x16x16xf32>
    %cst_23 = arith.constant dense<0xFF800000> : vector<4x16xf32>
    %52 = vector.multi_reduction <maximumf>, %51, %cst_23 [2] : vector<4x16x16xf32> to vector<4x16xf32>
    %53 = vector.shape_cast %52 : vector<4x16xf32> to vector<4x16x1xf32>
    %54 = vector.broadcast %53 : vector<4x16x1xf32> to vector<4x16x16xf32>
    %55 = arith.subf %51, %54 : vector<4x16x16xf32>
    %56 = math.exp %55 : vector<4x16x16xf32>
    %cst_24 = arith.constant dense<0.000000e+00> : vector<4x16xf32>
    %57 = vector.multi_reduction <add>, %56, %cst_24 [2] : vector<4x16x16xf32> to vector<4x16xf32>
    %58 = vector.shape_cast %57 : vector<4x16xf32> to vector<4x16x1xf32>
    %59 = tpu.reciprocal %58 {approx = true} : vector<4x16x1xf32> -> vector<4x16x1xf32>
    %60 = vector.broadcast %59 : vector<4x16x1xf32> to vector<4x16x16xf32>
    %61 = arith.mulf %56, %60 : vector<4x16x16xf32>
    %62 = arith.truncf %61 : vector<4x16x16xf32> to vector<4x16x16xbf16>
    %63 = arith.truncf %42 : vector<4x16x8xf32> to vector<4x16x8xbf16>
    "tpu.trace_start"() <{level = 10 : i32, message = "hqk,hkd->hqd"}> : () -> ()
    %cst_25 = arith.constant dense<0.000000e+00> : vector<4x16x8xf32>
    %64 = tpu.matmul %62, %63, %cst_25 {dimension_numbers = #tpu.dot_dimension_numbers<[2], [1], [1], [2], [0, 0, 0, 1, 1, 2], [0], [0]>} : vector<4x16x16xbf16>, vector<4x16x8xbf16>, vector<4x16x8xf32> -> vector<4x16x8xf32>
    %cst_26 = arith.constant 0.000000e+00 : f32
    "tpu.trace_stop"() : () -> ()
    %65 = vector.broadcast %cst_26 : f32 to vector<16x32xf32>
    %66 = vector.extract_strided_slice %64 {offsets = [0, 0, 0], sizes = [1, 16, 8], strides = [1, 1, 1]} : vector<4x16x8xf32> to vector<1x16x8xf32>
    %67 = vector.shape_cast %66 : vector<1x16x8xf32> to vector<16x8xf32>
    %68 = arith.truncf %67 : vector<16x8xf32> to vector<16x8xbf16>
    %c0_27 = arith.constant 0 : index
    %c0_28 = arith.constant 0 : index
    %c0_29 = arith.constant 0 : index
    %69 = vector.load %arg7[%c0_27, %c0_28, %c0_29] : memref<1x32x32xbf16, #tpu.memory_space<vmem>>, vector<1x8x32xbf16>
    %70 = vector.shape_cast %69 : vector<1x8x32xbf16> to vector<8x32xbf16>
    %cst_30 = arith.constant dense<0.000000e+00> : vector<16x32xf32>
    %71 = tpu.matmul %68, %70, %cst_30 {dimension_numbers = #tpu.dot_dimension_numbers<[1], [0], [0], [1], [0, 0, 1, 1], [], []>} : vector<16x8xbf16>, vector<8x32xbf16>, vector<16x32xf32> -> vector<16x32xf32>
    %72 = arith.addf %65, %71 : vector<16x32xf32>
    %73 = vector.extract_strided_slice %64 {offsets = [1, 0, 0], sizes = [1, 16, 8], strides = [1, 1, 1]} : vector<4x16x8xf32> to vector<1x16x8xf32>
    %74 = vector.shape_cast %73 : vector<1x16x8xf32> to vector<16x8xf32>
    %75 = arith.truncf %74 : vector<16x8xf32> to vector<16x8xbf16>
    %c0_31 = arith.constant 0 : index
    %c8 = arith.constant 8 : index
    %c0_32 = arith.constant 0 : index
    %76 = vector.load %arg7[%c0_31, %c8, %c0_32] : memref<1x32x32xbf16, #tpu.memory_space<vmem>>, vector<1x8x32xbf16>
    %77 = vector.shape_cast %76 : vector<1x8x32xbf16> to vector<8x32xbf16>
    %cst_33 = arith.constant dense<0.000000e+00> : vector<16x32xf32>
    %78 = tpu.matmul %75, %77, %cst_33 {dimension_numbers = #tpu.dot_dimension_numbers<[1], [0], [0], [1], [0, 0, 1, 1], [], []>} : vector<16x8xbf16>, vector<8x32xbf16>, vector<16x32xf32> -> vector<16x32xf32>
    %79 = arith.addf %72, %78 : vector<16x32xf32>
    %80 = vector.extract_strided_slice %64 {offsets = [2, 0, 0], sizes = [1, 16, 8], strides = [1, 1, 1]} : vector<4x16x8xf32> to vector<1x16x8xf32>
    %81 = vector.shape_cast %80 : vector<1x16x8xf32> to vector<16x8xf32>
    %82 = arith.truncf %81 : vector<16x8xf32> to vector<16x8xbf16>
    %c0_34 = arith.constant 0 : index
    %c16 = arith.constant 16 : index
    %c0_35 = arith.constant 0 : index
    %83 = vector.load %arg7[%c0_34, %c16, %c0_35] : memref<1x32x32xbf16, #tpu.memory_space<vmem>>, vector<1x8x32xbf16>
    %84 = vector.shape_cast %83 : vector<1x8x32xbf16> to vector<8x32xbf16>
    %cst_36 = arith.constant dense<0.000000e+00> : vector<16x32xf32>
    %85 = tpu.matmul %82, %84, %cst_36 {dimension_numbers = #tpu.dot_dimension_numbers<[1], [0], [0], [1], [0, 0, 1, 1], [], []>} : vector<16x8xbf16>, vector<8x32xbf16>, vector<16x32xf32> -> vector<16x32xf32>
    %86 = arith.addf %79, %85 : vector<16x32xf32>
    %87 = vector.extract_strided_slice %64 {offsets = [3, 0, 0], sizes = [1, 16, 8], strides = [1, 1, 1]} : vector<4x16x8xf32> to vector<1x16x8xf32>
    %88 = vector.shape_cast %87 : vector<1x16x8xf32> to vector<16x8xf32>
    %89 = arith.truncf %88 : vector<16x8xf32> to vector<16x8xbf16>
    %c0_37 = arith.constant 0 : index
    %c24 = arith.constant 24 : index
    %c0_38 = arith.constant 0 : index
    %90 = vector.load %arg7[%c0_37, %c24, %c0_38] : memref<1x32x32xbf16, #tpu.memory_space<vmem>>, vector<1x8x32xbf16>
    %91 = vector.shape_cast %90 : vector<1x8x32xbf16> to vector<8x32xbf16>
    %cst_39 = arith.constant dense<0.000000e+00> : vector<16x32xf32>
    %92 = tpu.matmul %89, %91, %cst_39 {dimension_numbers = #tpu.dot_dimension_numbers<[1], [0], [0], [1], [0, 0, 1, 1], [], []>} : vector<16x8xbf16>, vector<8x32xbf16>, vector<16x32xf32> -> vector<16x32xf32>
    %93 = arith.addf %86, %92 : vector<16x32xf32>
    %c0_40 = arith.constant 0 : index
    %c0_41 = arith.constant 0 : index
    %c0_42 = arith.constant 0 : index
    %94 = vector.load %arg8[%c0_40, %c0_41, %c0_42] : memref<1x1x32xf32, #tpu.memory_space<vmem>>, vector<1x1x32xf32>
    %95 = vector.shape_cast %94 : vector<1x1x32xf32> to vector<1x32xf32>
    %96 = vector.broadcast %95 : vector<1x32xf32> to vector<16x32xf32>
    %97 = arith.addf %93, %96 : vector<16x32xf32>
    %98 = arith.addf %3, %97 : vector<16x32xf32>
    %c0_43 = arith.constant 0 : index
    %c0_44 = arith.constant 0 : index
    %c0_45 = arith.constant 0 : index
    %99 = vector.load %arg9[%c0_43, %c0_44, %c0_45] : memref<1x1x32xf32, #tpu.memory_space<vmem>>, vector<1x1x32xf32>
    %100 = vector.shape_cast %99 : vector<1x1x32xf32> to vector<1x32xf32>
    %c0_46 = arith.constant 0 : index
    %c0_47 = arith.constant 0 : index
    %c0_48 = arith.constant 0 : index
    %101 = vector.load %arg10[%c0_46, %c0_47, %c0_48] : memref<1x1x32xf32, #tpu.memory_space<vmem>>, vector<1x1x32xf32>
    %102 = vector.shape_cast %101 : vector<1x1x32xf32> to vector<1x32xf32>
    %cst_49 = arith.constant dense<0.000000e+00> : vector<16xf32>
    %103 = vector.multi_reduction <add>, %98, %cst_49 [1] : vector<16x32xf32> to vector<16xf32>
    %104 = vector.shape_cast %103 : vector<16xf32> to vector<16x1xf32>
    %cst_50 = arith.constant 3.200000e+01 : f32
    %105 = vector.broadcast %cst_50 : f32 to vector<16x1xf32>
    %106 = arith.divf %104, %105 : vector<16x1xf32>
    %107 = vector.broadcast %106 : vector<16x1xf32> to vector<16x32xf32>
    %108 = arith.subf %98, %107 : vector<16x32xf32>
    %109 = arith.mulf %108, %108 : vector<16x32xf32>
    %cst_51 = arith.constant dense<0.000000e+00> : vector<16xf32>
    %110 = vector.multi_reduction <add>, %109, %cst_51 [1] : vector<16x32xf32> to vector<16xf32>
    %111 = vector.shape_cast %110 : vector<16xf32> to vector<16x1xf32>
    %cst_52 = arith.constant 3.200000e+01 : f32
    %112 = vector.broadcast %cst_52 : f32 to vector<16x1xf32>
    %113 = arith.divf %111, %112 : vector<16x1xf32>
    %114 = vector.broadcast %106 : vector<16x1xf32> to vector<16x32xf32>
    %115 = arith.subf %98, %114 : vector<16x32xf32>
    %cst_53 = arith.constant 9.99999974E-6 : f32
    %116 = vector.broadcast %cst_53 : f32 to vector<16x1xf32>
    %117 = arith.addf %113, %116 : vector<16x1xf32>
    %118 = math.rsqrt %117 : vector<16x1xf32>
    %119 = vector.broadcast %118 : vector<16x1xf32> to vector<16x32xf32>
    %120 = arith.mulf %115, %119 : vector<16x32xf32>
    %121 = vector.broadcast %100 : vector<1x32xf32> to vector<16x32xf32>
    %122 = arith.mulf %120, %121 : vector<16x32xf32>
    %123 = vector.broadcast %102 : vector<1x32xf32> to vector<16x32xf32>
    %124 = arith.addf %122, %123 : vector<16x32xf32>
    %125 = arith.truncf %124 : vector<16x32xf32> to vector<16x32xbf16>
    %c0_54 = arith.constant 0 : index
    %c0_55 = arith.constant 0 : index
    %c0_56 = arith.constant 0 : index
    %126 = vector.load %arg11[%c0_54, %c0_55, %c0_56] : memref<1x32x64xbf16, #tpu.memory_space<vmem>>, vector<1x32x64xbf16>
    %127 = vector.shape_cast %126 : vector<1x32x64xbf16> to vector<32x64xbf16>
    %cst_57 = arith.constant dense<0.000000e+00> : vector<16x64xf32>
    %128 = tpu.matmul %125, %127, %cst_57 {dimension_numbers = #tpu.dot_dimension_numbers<[1], [0], [0], [1], [0, 0, 1, 1], [], []>} : vector<16x32xbf16>, vector<32x64xbf16>, vector<16x64xf32> -> vector<16x64xf32>
    %c0_58 = arith.constant 0 : index
    %c0_59 = arith.constant 0 : index
    %c0_60 = arith.constant 0 : index
    %129 = vector.load %arg12[%c0_58, %c0_59, %c0_60] : memref<1x1x64xf32, #tpu.memory_space<vmem>>, vector<1x1x64xf32>
    %130 = vector.shape_cast %129 : vector<1x1x64xf32> to vector<1x64xf32>
    %131 = vector.broadcast %130 : vector<1x64xf32> to vector<16x64xf32>
    %132 = arith.addf %128, %131 : vector<16x64xf32>
    %cst_61 = arith.constant 0.000000e+00 : f32
    %133 = vector.broadcast %cst_61 : f32 to vector<16x64xf32>
    %134 = arith.maximumf %132, %133 : vector<16x64xf32>
    %135 = arith.truncf %134 : vector<16x64xf32> to vector<16x64xbf16>
    %c0_62 = arith.constant 0 : index
    %c0_63 = arith.constant 0 : index
    %c0_64 = arith.constant 0 : index
    %136 = vector.load %arg13[%c0_62, %c0_63, %c0_64] : memref<1x64x32xbf16, #tpu.memory_space<vmem>>, vector<1x64x32xbf16>
    %137 = vector.shape_cast %136 : vector<1x64x32xbf16> to vector<64x32xbf16>
    %cst_65 = arith.constant dense<0.000000e+00> : vector<16x32xf32>
    %138 = tpu.matmul %135, %137, %cst_65 {dimension_numbers = #tpu.dot_dimension_numbers<[1], [0], [0], [1], [0, 0, 1, 1], [], []>} : vector<16x64xbf16>, vector<64x32xbf16>, vector<16x32xf32> -> vector<16x32xf32>
    %c0_66 = arith.constant 0 : index
    %c0_67 = arith.constant 0 : index
    %c0_68 = arith.constant 0 : index
    %139 = vector.load %arg14[%c0_66, %c0_67, %c0_68] : memref<1x1x32xf32, #tpu.memory_space<vmem>>, vector<1x1x32xf32>
    %140 = vector.shape_cast %139 : vector<1x1x32xf32> to vector<1x32xf32>
    %141 = vector.broadcast %140 : vector<1x32xf32> to vector<16x32xf32>
    %142 = arith.addf %138, %141 : vector<16x32xf32>
    %143 = arith.addf %98, %142 : vector<16x32xf32>
    %c0_69 = arith.constant 0 : index
    %c0_70 = arith.constant 0 : index
    %144 = vector.load %arg18[%c0_69, %c0_70] : memref<16x32xf32, #tpu.memory_space<vmem>>, vector<16x32xf32>
    tpu.vector_store %arg18[%c0_69, %c0_70], %143 {strides = array<i32>} : memref<16x32xf32, #tpu.memory_space<vmem>>, vector<16x32xf32>,
    %c1_i32 = arith.constant 1 : i32
    %145 = arith.cmpi eq, %arg0, %c1_i32 : i32
    %146 = arith.extui %145 : i1 to i32
    %c0_i32_71 = arith.constant 0 : i32
    %147 = arith.cmpi ne, %146, %c0_i32_71 : i32
    scf.if %147 {
      %c0_72 = arith.constant 0 : index
      %c0_73 = arith.constant 0 : index
      %148 = vector.load %arg15[%c0_72, %c0_73] : memref<1x32xf32, #tpu.memory_space<vmem>>, vector<1x32xf32>
      %c0_74 = arith.constant 0 : index
      %c0_75 = arith.constant 0 : index
      %149 = vector.load %arg16[%c0_74, %c0_75] : memref<1x32xf32, #tpu.memory_space<vmem>>, vector<1x32xf32>
      %cst_76 = arith.constant dense<0.000000e+00> : vector<16xf32>
      %150 = vector.multi_reduction <add>, %143, %cst_76 [1] : vector<16x32xf32> to vector<16xf32>
      %151 = vector.shape_cast %150 : vector<16xf32> to vector<16x1xf32>
      %cst_77 = arith.constant 3.200000e+01 : f32
      %152 = vector.broadcast %cst_77 : f32 to vector<16x1xf32>
      %153 = arith.divf %151, %152 : vector<16x1xf32>
      %154 = vector.broadcast %153 : vector<16x1xf32> to vector<16x32xf32>
      %155 = arith.subf %143, %154 : vector<16x32xf32>
      %156 = arith.mulf %155, %155 : vector<16x32xf32>
      %cst_78 = arith.constant dense<0.000000e+00> : vector<16xf32>
      %157 = vector.multi_reduction <add>, %156, %cst_78 [1] : vector<16x32xf32> to vector<16xf32>
      %158 = vector.shape_cast %157 : vector<16xf32> to vector<16x1xf32>
      %cst_79 = arith.constant 3.200000e+01 : f32
      %159 = vector.broadcast %cst_79 : f32 to vector<16x1xf32>
      %160 = arith.divf %158, %159 : vector<16x1xf32>
      %161 = vector.broadcast %153 : vector<16x1xf32> to vector<16x32xf32>
      %162 = arith.subf %143, %161 : vector<16x32xf32>
      %cst_80 = arith.constant 9.99999974E-6 : f32
      %163 = vector.broadcast %cst_80 : f32 to vector<16x1xf32>
      %164 = arith.addf %160, %163 : vector<16x1xf32>
      %165 = math.rsqrt %164 : vector<16x1xf32>
      %166 = vector.broadcast %165 : vector<16x1xf32> to vector<16x32xf32>
      %167 = arith.mulf %162, %166 : vector<16x32xf32>
      %168 = vector.broadcast %148 : vector<1x32xf32> to vector<16x32xf32>
      %169 = arith.mulf %167, %168 : vector<16x32xf32>
      %170 = vector.broadcast %149 : vector<1x32xf32> to vector<16x32xf32>
      %171 = arith.addf %169, %170 : vector<16x32xf32>
      %c0_81 = arith.constant 0 : index
      %c0_82 = arith.constant 0 : index
      %172 = vector.load %arg17[%c0_81, %c0_82] : memref<16x32xf32, #tpu.memory_space<vmem>>, vector<16x32xf32>
      tpu.vector_store %arg17[%c0_81, %c0_82], %171 {strides = array<i32>} : memref<16x32xf32, #tpu.memory_space<vmem>>, vector<16x32xf32>,
    } else {
    }
    return
  }
  func.func @transform_0(%arg0: i32) -> (i32, i32) {
    %c0_i32 = arith.constant 0 : i32
    %c0_i32_0 = arith.constant 0 : i32
    %c0_i32_1 = arith.constant 0 : i32
    return %c0_i32, %c0_i32_0 : i32, i32
  }
  func.func @transform_1(%arg0: i32) -> (i32, i32) {
    %c0_i32 = arith.constant 0 : i32
    %c0_i32_0 = arith.constant 0 : i32
    %c0_i32_1 = arith.constant 0 : i32
    return %c0_i32, %c0_i32_0 : i32, i32
  }
  func.func @transform_2(%arg0: i32) -> (i32, i32, i32) {
    %c0_i32 = arith.constant 0 : i32
    %c0_i32_0 = arith.constant 0 : i32
    %c0_i32_1 = arith.constant 0 : i32
    return %arg0, %c0_i32, %c0_i32_0 : i32, i32, i32
  }
  func.func @transform_3(%arg0: i32) -> (i32, i32, i32) {
    %c0_i32 = arith.constant 0 : i32
    %c0_i32_0 = arith.constant 0 : i32
    %c0_i32_1 = arith.constant 0 : i32
    return %arg0, %c0_i32, %c0_i32_0 : i32, i32, i32
  }
  func.func @transform_4(%arg0: i32) -> (i32, i32, i32) {
    %c0_i32 = arith.constant 0 : i32
    %c0_i32_0 = arith.constant 0 : i32
    %c0_i32_1 = arith.constant 0 : i32
    return %arg0, %c0_i32, %c0_i32_0 : i32, i32, i32
  }
  func.func @transform_5(%arg0: i32) -> (i32, i32, i32) {
    %c0_i32 = arith.constant 0 : i32
    %c0_i32_0 = arith.constant 0 : i32
    %c0_i32_1 = arith.constant 0 : i32
    return %arg0, %c0_i32, %c0_i32_0 : i32, i32, i32
  }
  func.func @transform_6(%arg0: i32) -> (i32, i32, i32) {
    %c0_i32 = arith.constant 0 : i32
    %c0_i32_0 = arith.constant 0 : i32
    %c0_i32_1 = arith.constant 0 : i32
    return %arg0, %c0_i32, %c0_i32_0 : i32, i32, i32
  }
  func.func @transform_7(%arg0: i32) -> (i32, i32, i32) {
    %c0_i32 = arith.constant 0 : i32
    %c0_i32_0 = arith.constant 0 : i32
    %c0_i32_1 = arith.constant 0 : i32
    return %arg0, %c0_i32, %c0_i32_0 : i32, i32, i32
  }
  func.func @transform_8(%arg0: i32) -> (i32, i32, i32) {
    %c0_i32 = arith.constant 0 : i32
    %c0_i32_0 = arith.constant 0 : i32
    %c0_i32_1 = arith.constant 0 : i32
    return %arg0, %c0_i32, %c0_i32_0 : i32, i32, i32
  }
  func.func @transform_9(%arg0: i32) -> (i32, i32, i32) {
    %c0_i32 = arith.constant 0 : i32
    %c0_i32_0 = arith.constant 0 : i32
    %c0_i32_1 = arith.constant 0 : i32
    return %arg0, %c0_i32, %c0_i32_0 : i32, i32, i32
  }
  func.func @transform_10(%arg0: i32) -> (i32, i32, i32) {
    %c0_i32 = arith.constant 0 : i32
    %c0_i32_0 = arith.constant 0 : i32
    %c0_i32_1 = arith.constant 0 : i32
    return %arg0, %c0_i32, %c0_i32_0 : i32, i32, i32
  }
  func.func @transform_11(%arg0: i32) -> (i32, i32, i32) {
    %c0_i32 = arith.constant 0 : i32
    %c0_i32_0 = arith.constant 0 : i32
    %c0_i32_1 = arith.constant 0 : i32
    return %arg0, %c0_i32, %c0_i32_0 : i32, i32, i32
  }
  func.func @transform_12(%arg0: i32) -> (i32, i32, i32) {
    %c0_i32 = arith.constant 0 : i32
    %c0_i32_0 = arith.constant 0 : i32
    %c0_i32_1 = arith.constant 0 : i32
    return %arg0, %c0_i32, %c0_i32_0 : i32, i32, i32
  }
  func.func @transform_13(%arg0: i32) -> (i32, i32, i32) {
    %c0_i32 = arith.constant 0 : i32
    %c0_i32_0 = arith.constant 0 : i32
    %c0_i32_1 = arith.constant 0 : i32
    return %arg0, %c0_i32, %c0_i32_0 : i32, i32, i32
  }
  func.func @transform_14(%arg0: i32) -> (i32, i32) {
    %c0_i32 = arith.constant 0 : i32
    %c0_i32_0 = arith.constant 0 : i32
    %c0_i32_1 = arith.constant 0 : i32
    return %c0_i32, %c0_i32_0 : i32, i32
  }
  func.func @transform_15(%arg0: i32) -> (i32, i32) {
    %c0_i32 = arith.constant 0 : i32
    %c0_i32_0 = arith.constant 0 : i32
    %c0_i32_1 = arith.constant 0 : i32
    return %c0_i32, %c0_i32_0 : i32, i32
  }
  func.func @transform_16(%arg0: i32) -> (i32, i32) {
    %c0_i32 = arith.constant 0 : i32
    %c0_i32_0 = arith.constant 0 : i32
    %c0_i32_1 = arith.constant 0 : i32
    return %c0_i32, %c0_i32_0 : i32, i32
  }
}

</mosaic_0001>

<bundles_post_ra>
// kernel: script_wrapper_forward.2
= control target key start
LH: loop header
LB: loop body
LE: loop exit
PB: predicated region body
PF: predicated region fallthrough
CT: control target
= control target key end

     0   :  { %s3171_s21 = smov 0   ;;  %s3650_s0 = inlined_call_operand.vmem [shape: f32[16,32], index: 0, kind: input, shape index: {}]   ;;  %s3651_s1 = inlined_call_operand.vmem [shape: f32[16,16], index: 1, kind: input, shape index: {}]   ;;  %s3652_s2 = inlined_call_operand.vmem [shape: f32[2,1,32], index: 2, kind: input, shape index: {}]   ;;  %s3653_s3 = inlined_call_operand.vmem [shape: f32[2,1,32], index: 3, kind: input, shape index: {}]   ;;  %s3654_s4 = inlined_call_operand.vmem [shape: bf16[2,32,96], index: 4, kind: input, shape index: {}]   ;;  %s3655_s5 = inlined_call_operand.vmem [shape: f32[2,1,96], index: 5, kind: input, shape index: {}]   ;;  %s3656_s6 = inlined_call_operand.vmem [shape: bf16[2,32,32], index: 6, kind: input, shape index: {}]   ;;  %s3657_s7 = inlined_call_operand.vmem [shape: f32[2,1,32], index: 7, kind: input, shape index: {}]   ;;  %s3658_s8 = inlined_call_operand.vmem [shape: f32[2,1,32], index: 8, kind: input, shape index: {}]   ;;  %s3659_s9 = inlined_call_operand.vmem [shape: f32[2,1,32], index: 9, kind: input, shape index: {}]   ;;  %s3660_s10 = inlined_call_operand.vmem [shape: bf16[2,32,64], index: 10, kind: input, shape index: {}]   ;;  %s3661_s11 = inlined_call_operand.vmem [shape: f32[2,1,64], index: 11, kind: input, shape index: {}]   ;;  %s3662_s12 = inlined_call_operand.vmem [shape: bf16[2,64,32], index: 12, kind: input, shape index: {}]   ;;  %s3663_s13 = inlined_call_operand.vmem [shape: f32[2,1,32], index: 13, kind: input, shape index: {}]   ;;  %s3664_s14 = inlined_call_operand.vmem [shape: f32[1,32], index: 14, kind: input, shape index: {}]   ;;  %s3665_s15 = inlined_call_operand.vmem [shape: f32[1,32], index: 15, kind: input, shape index: {}]   ;;  %s3666_s16 = inlined_call_operand.vmem [shape: f32[16,32], index: 16, kind: output, shape index: {}]  }
   0x1   :  { %3671 = sst [smem:[#allocation5_spill]] %s3650_s0 }
   0x2   :  { %3672 = sst [smem:[#allocation6_spill]] %s3654_s4 }
   0x3   :  { %3673 = sst [smem:[#allocation7_spill]] %s3656_s6 }
   0x4   :  { %3674 = sst [smem:[#allocation8_spill]] %s3664_s14 }
   0x5   :  { %3675 = sst [smem:[#allocation9_spill]] %s3665_s15 }
   0x6   :  { %3676 = sst [smem:[#allocation10_spill]] %s3666_s16 }
   0x7 LB: > { %3677 = sst [smem:[#allocation3_spill]] %s3069_s21  ;;  %s3177_s22 = sadd.s32 4294967295, %s3069_s21   ;;  %s3069_s21 = sphi %s3171_s21, %s26_s21  }
   0x8   : > { %p2781_p0 = scmp.ge.s32.totalorder %s3069_s21, 1  ;;  %p551_p1 = scmp.lt.s32.totalorder %s3069_s21, 3 }
   0xa   : > { %p552_p2 = pnand %p2781_p0, %p551_p1 }
   0xc   : > { %555 = sbr.rel (%p552_p2) target bundleno = 2838 (0xb16), region = 84 }
  0x13   : > { %p635_p3 = scmp.lt.s32.totalorder %s3177_s22, 1  ;;  %s3678_s4 = sld [smem:[#allocation6_spill]] }
  0x14   : > { %s3679_s6 = sld [smem:[#allocation7_spill]]  ;;  %p2790_p4 = scmp.ne.s32.totalorder %s3177_s22, 0 }
  0x15   : > { %s3183_s23 = scalar_select %p635_p3, %s3177_s22, 1 }
  0x16   : > { %683 = sbr.rel (%p2790_p4) target bundleno = 30 (0x1e), region = 88  ;;  %s3681_s19 = sld [smem:[#allocation5_spill]] (!%p2790_p4)  ;;  %vm686_vm0 = vcmask (!%p2790_p4), 261120  }
  0x17   : > { %s2847_s30 = sshll.u32 %s3183_s23, 4  ;;  %s659_s14 = scalar_lea.vmem %s3658_s8, %s3183_s23 }
  0x18   : > { %s662_s18 = scalar_lea.vmem %s3659_s9, %s3183_s23  ;;  %s678_s0 = scalar_lea.vmem %s3663_s13, %s3183_s23 }
  0x19   : > { %s3201_s24 = scalar_lea.vmem %s3678_s4, %s2847_s30  ;;  %s3223_s4 = scalar_lea.vmem %s3660_s10, %s2847_s30 }
  0x1a   : > { %s3206_s16 = scalar_lea.vmem %s3679_s6, %s2847_s30  ;;  %s670_s6 = scalar_lea.vmem %s3661_s11, %s3183_s23 }
  0x1b   : > { %3680 = sst [smem:[#allocation4_spill]] %s3206_s16  ;;  %s2850_s16 = sshll.u32 %s3183_s23, 5 }
  0x1c   : > { %s3233_s27 = scalar_lea.vmem %s3662_s12, %s2850_s16  ;;  %v684_v0 = vld [vmem:[%s3681_s19] sm:$0xff] (!%p2790_p4)  ;;  %v685_v1 = vld [vmem:[%s3681_s19 + $0x8] sm:$0xff] (!%p2790_p4) }
  0x1d   : > { %687 = vst.msk [vmem:[#allocation2] sm:$0xff] %vm686_vm0, %v684_v0  ;;  %688 = vst.msk [vmem:[#allocation2 + $0x8] sm:$0xff] %vm686_vm0, %v685_v1 }
  0x1e PF: > { %vm693_vm1 = vcmask 261120   ;;  %v3009_v16 = vld [vmem:[%s3201_s24] sm:$0xff]   ;;  %v3071_v17 = vmov 0.0   ;;  %v3010_v18 = vld [vmem:[%s3201_s24 + $0x8] sm:$0xff]   ;;  %vm3072_vm2 = vmmov 0   ;;  %s3682_s25 = scalar_lea.vmem %s3652_s2, %s3183_s23  ;;  %s3683_s29 = scalar_lea.vmem %s3653_s3, %s3183_s23  ;;  %v878_v45 = vlaneseq }
  0x1f   : > { %2886 = vmatprep.subr.bf16.mxu1 %v3071_v17  ;;  %2900 = vmatprep.subr.bf16.mxu0 %v3071_v17  ;;  %v2791_v27 = vld [vmem:[%s3682_s25] ss:$0 sm:$0xff]  ;;  %s3684_s30 = scalar_lea.vmem %s3655_s5, %s3183_s23  ;;  %s3073_s20 = smov 88   ;;  %v3080_v43 = vmov 1983009808   ;;  %vm1699_vm3 = vcmask 64512  }
  0x20   : > { %2887 = vmatpush3.bf16.msra.mxu1 %v3009_v16  ;;  %2890 = vmatprep.mubr.msk.bf16.mxu1 %vm3072_vm2, %v3071_v17  ;;  %v2792_v31 = vld [vmem:[%s3683_s29] ss:$0 sm:$0xff]  ;;  %s3074_s21 = smov 96   ;;  %s3075_s16 = smov 80   ;;  %v876_v44 = vunpack.c.l.s4 %v3080_v43  ;;  %v3081_v48 = vmov 1934713408  }
  0x21   : > { %2888 = vmatprep.subr.bf16.mxu1 %v3071_v17  ;;  %2902 = vmatprep.mubr.msk.bf16.mxu0 %vm3072_vm2, %v3071_v17  ;;  %v2793_v36 = vld [vmem:[%s3684_s30] ss:$0 sm:$0xff]  ;;  %s3076_s24 = smov 72   ;;  %s3077_s25 = smov 120   ;;  %v940_v49 = vunpack.c.l.s4 %v3081_v48  ;;  %v879_v51 = vshrl.u32 %v878_v45, 7  ;;  %vm1904_vm4 = vcmask 130048  }
  0x22   : > { %s3078_s15 = smov 112   ;;  %s3079_s26 = smov 104   ;;  %v877_v50 = vunpack.c.0.s8 %v876_v44  ;;  %vm2184_vm5 = vcmask 1043456   ;;  %vm2543_vm6 = vcmask 523264  }
  0x23   : > { %v941_v54 = vunpack.c.0.s8 %v940_v49  ;;  %s3686_s29 = scalar_lea.vmem %s3657_s7, %s3183_s23  ;;  %p2842_p5 = scmp.ne.s32.totalorder %s3177_s22, 1 }
  0x24   : > { %v689_v2 = vld [vmem:[#allocation2] sm:$0xff]  ;;  %v690_v3 = vld [vmem:[#allocation2 + $0x8] sm:$0xff]  ;;  %2889 = vmatpush3.bf16.msra.mxu1 %v3010_v18  ;;  %v3296_v55 = vsub.s32 %v877_v50, %v879_v51  ;;  %s3687_s23 = sld [smem:[#allocation8_spill]] (!%p2842_p5) }
  0x25   : > { %v694_v4 = vsel %vm693_vm1, %v689_v2, 0.0  ;;  %v697_v5 = vsel %vm693_vm1, %v690_v3, 0.0  ;;  %2894 = vmatprep.subr.bf16.mxu1 %v3071_v17  ;;  %v3298_v62 = vsub.s32 %v941_v54, %v879_v51 }
  0x26   : > { %695 = vadd.xlane.f32.xlu0 %v694_v4 }
  0x2a   : > { %698 = vadd.xlane.f32.xlu0 %v697_v5 }
  0xb3   : > { %v696_v6 = vpop.xlane.xlu0 %695 }
  0xb4   : > { %v701_v7 = vmul.f32 0.03125, %v696_v6 }
  0xb6   : > { %v703_v8 = vsub.f32 %v689_v2, %v701_v7 }
  0xb7   : > { %v699_v9 = vpop.xlane.xlu0 %698 }
  0xb8   : > { %v702_v10 = vmul.f32 0.03125, %v699_v9  ;;  %v705_v11 = vmul.f32 %v703_v8, %v703_v8 }
  0xba   : > { %v704_v12 = vsub.f32 %v690_v3, %v702_v10  ;;  %v707_v13 = vsel %vm693_vm1, %v705_v11, 0.0 }
  0xbb   : > { %708 = vadd.xlane.f32.xlu1 %v707_v13 }
  0xbc   : > { %v706_v14 = vmul.f32 %v704_v12, %v704_v12 }
  0xbe   : > { %v710_v15 = vsel %vm693_vm1, %v706_v14, 0.0 }
  0xbf   : > { %711 = vadd.xlane.f32.xlu1 %v710_v15 }
 0x148   : > { %v709_v19 = vpop.xlane.xlu1 %708 }
 0x149   : > { %v713_v20 = vmul.f32 0.03125, %v709_v19 }
 0x14b   : > { %v715_v21 = vadd.f32 1e-05, %v713_v20 }
 0x14c   : > { %v712_v22 = vpop.xlane.xlu1 %711 }
 0x14d   : > { %3017 = vrsqrt.f32 %v715_v21  ;;  %v714_v23 = vmul.f32 0.03125, %v712_v22 }
 0x14f   : > { %v716_v24 = vadd.f32 1e-05, %v714_v23 }
 0x151   : > { %3019 = vrsqrt.f32 %v716_v24 }
 0x157   : > { %v3018_v25 = vpop.eup %3017 }
 0x158   : > { %v719_v26 = vmul.f32 %v3018_v25, %v703_v8 }
 0x15a   : > { %v727_v30 = vmul.f32 %v2791_v27, %v719_v26 }
 0x15b   : > { %v3020_v28 = vpop.eup %3019 }
 0x15c   : > { %v720_v29 = vmul.f32 %v3020_v28, %v704_v12  ;;  %v735_v33 = vadd.f32 %v2792_v31, %v727_v30 }
 0x15e   : > { %v728_v32 = vmul.f32 %v2791_v27, %v720_v29 }
 0x160   : > { %v736_v34 = vadd.f32 %v2792_v31, %v728_v32 }
 0x162   : > { %v737_v35 = vpack.c.bf16 %v736_v34, %v735_v33 }
 0x164   : > { %2891 = vmatmul.mubr.msk.bf16.vlgmr.msra.gmra.mrb[0].mxu1 %vm693_vm1, %v737_v35 }
 0x165   : > { %2896 = vmatprep.mubr.msk.bf16.mxu1 %vm3072_vm2, %v3071_v17 }
 0x237   : > { %v798_v37 = vpop.f32.mrb[0].mxu1 }
 0x238   : > { %v3278_v38 = vadd.f32 %v2793_v36, %v798_v37  ;;  %v2892_v39 = vpop.f32.mrb[1].mxu1 }
 0x239   : > { %v801_v40 = vpop.f32.mrb[2].mxu1 }
 0x23a   : > { %831 = vrot.lane.b32.xlu1 %v3278_v38, %s3073_s20  ;;  %825 = vrot.lane.b32.xlu0 %v3278_v38, %s3074_s21  ;;  %v2893_v41 = vpop.f32.mrb[3].mxu1  ;;  %v3282_v42 = vadd.f32 %v2793_v36, %v801_v40 }
 0x23e   : > { %837 = vrot.lane.b32.xlu0 %v3278_v38, %s3075_s16  ;;  %827 = vrot.lane.b32.xlu1 %v3282_v42, %s3074_s21  ;;  %s3083_s21 = smov 56  }
 0x242   : > { %843 = vrot.lane.b32.xlu0 %v3278_v38, %s3076_s24  ;;  %833 = vrot.lane.b32.xlu1 %v3282_v42, %s3073_s20  ;;  %s3082_s20 = smov 64  }
 0x246   : > { %807 = vrot.lane.b32.xlu0 %v3278_v38, %s3077_s25  ;;  %839 = vrot.lane.b32.xlu1 %v3282_v42, %s3075_s16  ;;  %s3084_s16 = smov 48  }
 0x24a   : > { %813 = vrot.lane.b32.xlu0 %v3278_v38, %s3078_s15  ;;  %845 = vrot.lane.b32.xlu1 %v3282_v42, %s3076_s24  ;;  %s3085_s24 = smov 40  }
 0x24e   : > { %819 = vrot.lane.b32.xlu0 %v3278_v38, %s3079_s26  ;;  %809 = vrot.lane.b32.xlu1 %v3282_v42, %s3077_s25  ;;  %s3685_s25 = sld [smem:[#allocation4_spill]] }
 0x252   : > { %815 = vrot.lane.b32.xlu1 %v3282_v42, %s3078_s15  ;;  %s3689_s15 = sld [smem:[#allocation10_spill]] (!%p2842_p5) }
 0x256   : > { %821 = vrot.lane.b32.xlu1 %v3282_v42, %s3079_s26 }
 0x2ac   : > { %v832_v46 = vpop.permute.xlu1 %831  ;;  %v826_v47 = vpop.permute.xlu0 %825 }
 0x2b0   : > { %v838_v52 = vpop.permute.xlu0 %837  ;;  %v828_v53 = vpop.permute.xlu1 %827 }
 0x2b1   : > { %v905_v56 = vcombine.low %v826_v47, %v838_v52  ;;  %v906_v57 = vcombine.high %v826_v47, %v838_v52 }
 0x2b3   : > { %v913_v63 = vrot.slane %v905_v56, %v3296_v55  ;;  %v920_v0 = vrot.slane %v906_v57, %v3296_v55 }
 0x2b4   : > { %v844_v58 = vpop.permute.xlu0 %843  ;;  %v834_v59 = vpop.permute.xlu1 %833 }
 0x2b5   : > { %v921_v60 = vcombine.low %v832_v46, %v844_v58  ;;  %v922_v61 = vcombine.high %v832_v46, %v844_v58 }
 0x2b7   : > { %v929_v1 = vrot.slane %v921_v60, %v3296_v55  ;;  %v936_v2 = vrot.slane %v922_v61, %v3296_v55 }
 0x2b8   : > { %v808_v3 = vpop.permute.xlu0 %807  ;;  %v840_v4 = vpop.permute.xlu1 %839 }
 0x2b9   : > { %v969_v5 = vcombine.low %v913_v63, %v929_v1  ;;  %v970_v6 = vcombine.high %v913_v63, %v929_v1  ;;  %v985_v7 = vcombine.low %v920_v0, %v936_v2  ;;  %v986_v8 = vcombine.high %v920_v0, %v936_v2 }
 0x2ba   : > { %v1109_v9 = vcombine.low %v828_v53, %v840_v4  ;;  %v1110_v10 = vcombine.high %v828_v53, %v840_v4 }
 0x2bb   : > { %v977_v11 = vrot.slane %v969_v5, %v3298_v62  ;;  %v984_v12 = vrot.slane %v970_v6, %v3298_v62  ;;  %v993_v13 = vrot.slane %v985_v7, %v3298_v62  ;;  %v1000_v14 = vrot.slane %v986_v8, %v3298_v62 }
 0x2bc   : > { %v814_v15 = vpop.permute.xlu0 %813  ;;  %v846_v16 = vpop.permute.xlu1 %845  ;;  %v1117_v24 = vrot.slane %v1109_v9, %v3296_v55  ;;  %v1124_v25 = vrot.slane %v1110_v10, %v3296_v55 }
 0x2bd   : > { %v2798_v18 = vcombine.low %v977_v11, %v984_v12  ;;  %v2800_v19 = vcombine.high %v977_v11, %v984_v12  ;;  %v2802_v20 = vcombine.low %v993_v13, %v1000_v14  ;;  %v2804_v21 = vcombine.high %v993_v13, %v1000_v14 }
 0x2be   : > { %v1125_v22 = vcombine.low %v834_v59, %v846_v16  ;;  %v1126_v23 = vcombine.high %v834_v59, %v846_v16  ;;  %v873_v26 = vcombine.low %v3278_v38, %v814_v15  ;;  %v874_v27 = vcombine.high %v3278_v38, %v814_v15 }
 0x2bf   : > { %v3313_v28 = vrot.slane %v2798_v18, %v3296_v55  ;;  %v3316_v29 = vrot.slane %v2800_v19, %v3296_v55  ;;  %v3321_v34 = vrot.slane %v2802_v20, %v3296_v55  ;;  %v3324_v35 = vrot.slane %v2804_v21, %v3296_v55 }
 0x2c0   : > { %v1133_v30 = vrot.slane %v1125_v22, %v3296_v55  ;;  %v1140_v31 = vrot.slane %v1126_v23, %v3296_v55  ;;  %v820_v32 = vpop.permute.xlu0 %819  ;;  %v810_v33 = vpop.permute.xlu1 %809  ;;  %v881_v44 = vrot.slane %v873_v26, %v3296_v55  ;;  %v888_v45 = vrot.slane %v874_v27, %v3296_v55 }
 0x2c1   : > { %v889_v36 = vcombine.low %v808_v3, %v820_v32  ;;  %v890_v37 = vcombine.high %v808_v3, %v820_v32  ;;  %v1361_v4 = vcombine.low %v3313_v28, %v3316_v29  ;;  %v1393_v5 = vcombine.low %v3321_v34, %v3324_v35 }
 0x2c2   : > { %v1173_v39 = vcombine.low %v1117_v24, %v1133_v30  ;;  %v1174_v40 = vcombine.high %v1117_v24, %v1133_v30  ;;  %v1189_v41 = vcombine.low %v1124_v25, %v1140_v31  ;;  %v1190_v43 = vcombine.high %v1124_v25, %v1140_v31 }
 0x2c3   : > { %v897_v46 = vrot.slane %v889_v36, %v3296_v55  ;;  %v904_v47 = vrot.slane %v890_v37, %v3296_v55  ;;  %v1401_v36 = vrot.slane %v1393_v5, %v3298_v62 }
 0x2c4   : > { %v1181_v48 = vrot.slane %v1173_v39, %v3298_v62  ;;  %v1188_v49 = vrot.slane %v1174_v40, %v3298_v62  ;;  %v1197_v50 = vrot.slane %v1189_v41, %v3298_v62  ;;  %v1204_v51 = vrot.slane %v1190_v43, %v3298_v62  ;;  %v816_v52 = vpop.permute.xlu1 %815 }
 0x2c5   : > { %v937_v53 = vcombine.low %v881_v44, %v897_v46  ;;  %v938_v54 = vcombine.high %v881_v44, %v897_v46  ;;  %v953_v56 = vcombine.low %v888_v45, %v904_v47  ;;  %v954_v57 = vcombine.high %v888_v45, %v904_v47 }
 0x2c6   : > { %v2806_v58 = vcombine.low %v1181_v48, %v1188_v49  ;;  %v2808_v59 = vcombine.high %v1181_v48, %v1188_v49  ;;  %v2810_v60 = vcombine.low %v1197_v50, %v1204_v51  ;;  %v2812_v61 = vcombine.high %v1197_v50, %v1204_v51 }
 0x2c7   : > { %v945_v63 = vrot.slane %v937_v53, %v3298_v62  ;;  %v952_v0 = vrot.slane %v938_v54, %v3298_v62  ;;  %v961_v1 = vrot.slane %v953_v56, %v3298_v62  ;;  %v968_v2 = vrot.slane %v954_v57, %v3298_v62 }
 0x2c8   : > { %v822_v3 = vpop.permute.xlu1 %821  ;;  %v1077_v10 = vcombine.low %v3282_v42, %v816_v52  ;;  %v1078_v11 = vcombine.high %v3282_v42, %v816_v52  ;;  %v3345_v14 = vrot.slane %v2806_v58, %v3296_v55  ;;  %v3348_v15 = vrot.slane %v2808_v59, %v3296_v55 }
 0x2c9   : > { %v2797_v6 = vcombine.low %v945_v63, %v952_v0  ;;  %v2799_v7 = vcombine.high %v945_v63, %v952_v0  ;;  %v2801_v8 = vcombine.low %v961_v1, %v968_v2  ;;  %v2803_v9 = vcombine.high %v961_v1, %v968_v2 }
 0x2ca   : > { %v1093_v12 = vcombine.low %v810_v33, %v822_v3  ;;  %v1094_v13 = vcombine.high %v810_v33, %v822_v3  ;;  %v3351_v16 = vrot.slane %v2810_v60, %v3296_v55  ;;  %v3354_v18 = vrot.slane %v2812_v61, %v3296_v55 }
 0x2cb   : > { %v1085_v19 = vrot.slane %v1077_v10, %v3296_v55  ;;  %v1092_v20 = vrot.slane %v1078_v11, %v3296_v55  ;;  %v3361_v23 = vrot.slane %v2797_v6, %v3296_v55  ;;  %v3364_v24 = vrot.slane %v2799_v7, %v3296_v55 }
 0x2cc   : > { %v1101_v21 = vrot.slane %v1093_v12, %v3296_v55  ;;  %v1108_v22 = vrot.slane %v1094_v13, %v3296_v55  ;;  %v3367_v25 = vrot.slane %v2801_v8, %v3296_v55  ;;  %v3370_v26 = vrot.slane %v2803_v9, %v3296_v55 }
 0x2cd   : > { %v1369_v33 = vrot.slane %v1361_v4, %v3298_v62  ;;  %v1345_v43 = vcombine.low %v3361_v23, %v3364_v24  ;;  %v1497_v45 = vcombine.low %v3345_v14, %v3348_v15  ;;  %v1529_v46 = vcombine.low %v3351_v16, %v3354_v18 }
 0x2ce   : > { %v1141_v27 = vcombine.low %v1085_v19, %v1101_v21  ;;  %v1142_v30 = vcombine.high %v1085_v19, %v1101_v21  ;;  %v1157_v31 = vcombine.low %v1092_v20, %v1108_v22  ;;  %v1158_v32 = vcombine.high %v1092_v20, %v1108_v22 }
 0x2cf   : > { %v1377_v44 = vcombine.low %v3367_v25, %v3370_v26  ;;  %v1413_v51 = vcombine.low %v1369_v33, %v1401_v36  ;;  %v1505_v52 = vrot.slane %v1497_v45, %v3298_v62  ;;  %v1537_v53 = vrot.slane %v1529_v46, %v3298_v62 }
 0x2d0   : > { %v1149_v37 = vrot.slane %v1141_v27, %v3298_v62  ;;  %v1156_v39 = vrot.slane %v1142_v30, %v3298_v62  ;;  %v1165_v40 = vrot.slane %v1157_v31, %v3298_v62  ;;  %v1172_v41 = vrot.slane %v1158_v32, %v3298_v62 }
 0x2d1   : > { %v1414_v54 = vcombine.high %v1369_v33, %v1401_v36  ;;  %v1549_v60 = vcombine.low %v1505_v52, %v1537_v53  ;;  %v1550_v61 = vcombine.high %v1505_v52, %v1537_v53  ;;  %v1362_v63 = vcombine.high %v3313_v28, %v3316_v29 }
 0x2d2   : > { %v2805_v47 = vcombine.low %v1149_v37, %v1156_v39  ;;  %v2807_v48 = vcombine.high %v1149_v37, %v1156_v39  ;;  %v2809_v49 = vcombine.low %v1165_v40, %v1172_v41  ;;  %v2811_v50 = vcombine.high %v1165_v40, %v1172_v41 }
 0x2d3   : > { %v1394_v0 = vcombine.high %v3321_v34, %v3324_v35  ;;  %v1353_v3 = vrot.slane %v1345_v43, %v3298_v62  ;;  %v1385_v4 = vrot.slane %v1377_v44, %v3298_v62  ;;  %v1695_v5 = vpack.c.bf16 %v1549_v60, %v1413_v51 }
 0x2d4   : > { %v1425_v56 = vrot.slane %v2805_v47, %v3296_v55  ;;  %v1441_v57 = vrot.slane %v2807_v48, %v3296_v55  ;;  %v1457_v58 = vrot.slane %v2809_v49, %v3296_v55  ;;  %v1473_v59 = vrot.slane %v2811_v50, %v3296_v55  ;;  %v1689_v50 = vld [vmem:[%s3651_s1] sm:$0xff] }
 0x2d5   : > { %v1696_v6 = vpack.c.bf16 %v1550_v61, %v1414_v54  ;;  %v1376_v9 = vrot.slane %v1362_v63, %v3298_v62  ;;  %v1704_v28 = vsel %vm1699_vm3, %v1695_v5, 0  ;;  %v1408_v34 = vrot.slane %v1394_v0, %v3298_v62 }
 0x2d6   : > { %v1481_v1 = vcombine.low %v1425_v56, %v1441_v57  ;;  %v1513_v2 = vcombine.low %v1457_v58, %v1473_v59  ;;  %v1498_v35 = vcombine.high %v3345_v14, %v3348_v15  ;;  %2895 = vmatpush3.bf16.xpose.msra.mxu1 %v1704_v28  ;;  %v1530_v12 = vcombine.high %v3351_v16, %v3354_v18 }
 0x2d7   : > { %v1751_v29 = vsel %vm1699_vm3, %v1696_v6, 0  ;;  %2906 = vmatprep.subr.bf16.mxu1 %v3071_v17  ;;  %v1409_v13 = vcombine.low %v1353_v3, %v1385_v4  ;;  %v1410_v19 = vcombine.high %v1353_v3, %v1385_v4  ;;  %v1482_v21 = vcombine.high %v1425_v56, %v1441_v57 }
 0x2d8   : > { %v1489_v7 = vrot.slane %v1481_v1, %v3298_v62  ;;  %v1521_v8 = vrot.slane %v1513_v2, %v3298_v62  ;;  %2901 = vmatpush3.bf16.xpose.msra.mxu0 %v1751_v29  ;;  %v1512_v20 = vrot.slane %v1498_v35, %v3298_v62  ;;  %v1514_v22 = vcombine.high %v1457_v58, %v1473_v59  ;;  %v1690_v58 = vld [vmem:[%s3651_s1 + $0x8] sm:$0xff] }
 0x2d9   : > { %2912 = vmatprep.subr.bf16.mxu0 %v3071_v17  ;;  %v1544_v27 = vrot.slane %v1530_v12, %v3298_v62  ;;  %v1346_v14 = vcombine.high %v3361_v23, %v3364_v24  ;;  %v1378_v15 = vcombine.high %v3367_v25, %v3370_v26  ;;  %v1415_v18 = vcombine.low %v1376_v9, %v1408_v34 }
 0x2da   : > { %v1545_v10 = vcombine.low %v1489_v7, %v1521_v8  ;;  %v1546_v11 = vcombine.high %v1489_v7, %v1521_v8  ;;  %v1416_v32 = vcombine.high %v1376_v9, %v1408_v34  ;;  %v1496_v36 = vrot.slane %v1482_v21, %v3298_v62 }
 0x2db   : > { %v1551_v31 = vcombine.low %v1512_v20, %v1544_v27  ;;  %v1552_v33 = vcombine.high %v1512_v20, %v1544_v27  ;;  %v1528_v37 = vrot.slane %v1514_v22, %v3298_v62  ;;  %v1360_v23 = vrot.slane %v1346_v14, %v3298_v62 }
 0x2dc   : > { %v1691_v30 = vpack.c.bf16 %v1545_v10, %v1409_v13  ;;  %v1692_v16 = vpack.c.bf16 %v1546_v11, %v1410_v19  ;;  %v1392_v24 = vrot.slane %v1378_v15, %v3298_v62 }
 0x2dd   : > { %v1697_v39 = vpack.c.bf16 %v1551_v31, %v1415_v18  ;;  %v1698_v40 = vpack.c.bf16 %v1552_v33, %v1416_v32  ;;  %v1547_v41 = vcombine.low %v1496_v36, %v1528_v37  ;;  %v1548_v43 = vcombine.high %v1496_v36, %v1528_v37 }
 0x2de   : > { %2897 = vmatmul.mubr.msk.bf16.vlgmr.msra.gmra.mrb[4].mxu1 %vm1699_vm3, %v1691_v30  ;;  %v1411_v44 = vcombine.low %v1360_v23, %v1392_v24  ;;  %v1412_v45 = vcombine.high %v1360_v23, %v1392_v24 }
 0x2df   : > { %2903 = vmatmul.mubr.msk.bf16.vlgmr.msra.gmra.mrb[0].mxu0 %vm1699_vm3, %v1692_v16  ;;  %v1798_v25 = vsel %vm1699_vm3, %v1697_v39, 0  ;;  %v1845_v26 = vsel %vm1699_vm3, %v1698_v40, 0  ;;  %2908 = vmatprep.mubr.msk.bf16.mxu1 %vm3072_vm2, %v3071_v17 }
 0x2e0   : > { %2914 = vmatprep.mubr.msk.bf16.mxu0 %vm3072_vm2, %v3071_v17  ;;  %2907 = vmatpush3.bf16.xpose.msra.mxu1 %v1798_v25  ;;  %v1693_v46 = vpack.c.bf16 %v1547_v41, %v1411_v44  ;;  %v1694_v47 = vpack.c.bf16 %v1548_v43, %v1412_v45 }
 0x2e1   : > { %2913 = vmatpush3.bf16.xpose.msra.mxu0 %v1845_v26  ;;  %2918 = vmatprep.subr.bf16.mxu1 %v3071_v17 }
 0x2e2   : > { %2924 = vmatprep.subr.bf16.mxu0 %v3071_v17 }
 0x2e7   : > { %2909 = vmatmul.mubr.msk.bf16.vlgmr.msra.gmra.mrb[8].mxu1 %vm1699_vm3, %v1693_v46 }
 0x2e8   : > { %2915 = vmatmul.mubr.msk.bf16.vlgmr.msra.gmra.mrb[4].mxu0 %vm1699_vm3, %v1694_v47  ;;  %2920 = vmatprep.mubr.msk.bf16.mxu1 %vm3072_vm2, %v3071_v17 }
 0x2e9   : > { %2926 = vmatprep.mubr.msk.bf16.mxu0 %vm3072_vm2, %v3071_v17 }
 0x3b1   : > { %v1740_v48 = vpop.f32.mrb[4].mxu1 }
 0x3b2   : > { %v1787_v49 = vpop.f32.mrb[0].mxu0  ;;  %v1888_v51 = vmul.f32 0.35355338, %v1740_v48  ;;  %v2898_v53 = vpop.f32.mrb[5].mxu1 }
 0x3b3   : > { %v1890_v52 = vmul.f32 0.35355338, %v1787_v49  ;;  %v2904_v54 = vpop.f32.mrb[1].mxu0  ;;  %v1743_v56 = vpop.f32.mrb[6].mxu1 }
 0x3b4   : > { %v1790_v57 = vpop.f32.mrb[2].mxu0  ;;  %v1889_v59 = vmul.f32 0.35355338, %v1743_v56  ;;  %v2899_v60 = vpop.f32.mrb[7].mxu1  ;;  %v1896_v63 = vadd.f32 %v1888_v51, %v1689_v50 }
 0x3b5   : > { %v2905_v61 = vpop.f32.mrb[3].mxu0  ;;  %v1891_v0 = vmul.f32 0.35355338, %v1790_v57  ;;  %v1898_v3 = vadd.f32 %v1890_v52, %v1689_v50 }
 0x3b6   : > { %v1905_v1 = vsel %vm1904_vm4, %v1896_v63, -inf  ;;  %v1897_v2 = vadd.f32 %v1889_v59, %v1690_v58 }
 0x3b7   : > { %1906 = vmax.xlane.f32.xlu0 %v1905_v1  ;;  %v1911_v7 = vsel %vm1904_vm4, %v1898_v3, -inf  ;;  %v1899_v8 = vadd.f32 %v1891_v0, %v1690_v58 }
 0x3b8   : > { %v1908_v4 = vsel %vm1904_vm4, %v1897_v2, -inf }
 0x3b9   : > { %1909 = vmax.xlane.f32.xlu1 %v1908_v4  ;;  %v1914_v19 = vsel %vm1904_vm4, %v1899_v8, -inf }
 0x3ba   : > { %v1834_v6 = vpop.f32.mrb[8].mxu1 }
 0x3bb   : > { %v1881_v5 = vpop.f32.mrb[4].mxu0  ;;  %v1892_v9 = vmul.f32 0.35355338, %v1834_v6  ;;  %v2910_v28 = vpop.f32.mrb[9].mxu1  ;;  %1912 = vmax.xlane.f32.xlu0 %v1911_v7 }
 0x3bc   : > { %v2916_v29 = vpop.f32.mrb[5].mxu0  ;;  %v1837_v35 = vpop.f32.mrb[10].mxu1  ;;  %v1894_v13 = vmul.f32 0.35355338, %v1881_v5 }
 0x3bd   : > { %v1884_v34 = vpop.f32.mrb[6].mxu0  ;;  %v2911_v11 = vpop.f32.mrb[11].mxu1  ;;  %v1900_v20 = vadd.f32 %v1892_v9, %v1689_v50  ;;  %v1893_v15 = vmul.f32 0.35355338, %v1837_v35 }
 0x3be   : > { %v1895_v10 = vmul.f32 0.35355338, %v1884_v34  ;;  %v2917_v12 = vpop.f32.mrb[7].mxu0  ;;  %v1902_v27 = vadd.f32 %v1894_v13, %v1689_v50 }
 0x3bf   : > { %1915 = vmax.xlane.f32.xlu0 %v1914_v19  ;;  %v1917_v22 = vsel %vm1904_vm4, %v1900_v20, -inf  ;;  %v1901_v30 = vadd.f32 %v1893_v15, %v1690_v58 }
 0x3c0   : > { %v3446_v21 = vadd.f32 %v1895_v10, %v1690_v58  ;;  %v1923_v14 = vsel %vm1904_vm4, %v1902_v27, -inf }
 0x3c1   : > { %v1920_v16 = vsel %vm1904_vm4, %v1901_v30, -inf }
 0x3c2   : > { %v1926_v18 = vsel %vm1904_vm4, %v3446_v21, -inf }
 0x3c3   : > { %1918 = vmax.xlane.f32.xlu0 %v1917_v22 }
 0x3c7   : > { %1924 = vmax.xlane.f32.xlu0 %v1923_v14 }
 0x3ca   : > { %851 = vrot.lane.b32.xlu1 %v3282_v42, %s3082_s20 }
 0x3ce   : > { %855 = vrot.lane.b32.xlu1 %v3278_v38, %s3083_s21 }
 0x3d2   : > { %857 = vrot.lane.b32.xlu1 %v3282_v42, %s3083_s21 }
 0x3dd   : > { %849 = vrot.lane.b32.xlu0 %v3278_v38, %s3082_s20 }
 0x3e1   : > { %861 = vrot.lane.b32.xlu0 %v3278_v38, %s3084_s16 }
 0x3e5   : > { %867 = vrot.lane.b32.xlu0 %v3278_v38, %s3085_s24 }
 0x3f6   : > { %1921 = vmax.xlane.f32.xlu1 %v1920_v16 }
 0x3fa   : > { %1927 = vmax.xlane.f32.xlu1 %v1926_v18 }
 0x40b   : > { %863 = vrot.lane.b32.xlu1 %v3282_v42, %s3084_s16  ;;  %s3688_s16 = sld [smem:[#allocation9_spill]] (!%p2842_p5) }
 0x444   : > { %v1907_v31 = vpop.xlane.xlu0 %1906 }
 0x445   : > { %v1929_v32 = vsub.f32 %v1896_v63, %v1907_v31 }
 0x446   : > { %v1910_v33 = vpop.xlane.xlu1 %1909 }
 0x447   : > { %v1937_v36 = vmul.f32 1.442695, %v1929_v32  ;;  %v1930_v37 = vsub.f32 %v1897_v2, %v1910_v33 }
 0x448   : > { %v1913_v39 = vpop.xlane.xlu0 %1912 }
 0x449   : > { %3021 = vpow2.f32 %v1937_v36  ;;  %v1939_v40 = vmul.f32 1.442695, %v1930_v37  ;;  %v1931_v38 = vsub.f32 %v1898_v3, %v1913_v39 }
 0x44a   : > { %v852_v61 = vpop.permute.xlu1 %851 }
 0x44b   : > { %3023 = vpow2.f32 %v1939_v40  ;;  %v1941_v23 = vmul.f32 1.442695, %v1931_v38 }
 0x44c   : > { %v1916_v24 = vpop.xlane.xlu0 %1915 }
 0x44d   : > { %3025 = vpow2.f32 %v1941_v23  ;;  %v1932_v25 = vsub.f32 %v1899_v8, %v1916_v24 }
 0x44e   : > { %v856_v63 = vpop.permute.xlu1 %855 }
 0x44f   : > { %v1943_v26 = vmul.f32 1.442695, %v1932_v25 }
 0x450   : > { %v1919_v41 = vpop.xlane.xlu0 %1918 }
 0x451   : > { %3027 = vpow2.f32 %v1943_v26  ;;  %v1933_v43 = vsub.f32 %v1900_v20, %v1919_v41 }
 0x452   : > { %v858_v0 = vpop.permute.xlu1 %857 }
 0x453   : > { %v3461_v44 = vpop.eup %3021  ;;  %v1945_v45 = vmul.f32 1.442695, %v1933_v43 }
 0x454   : > { %v1925_v46 = vpop.xlane.xlu0 %1924  ;;  %v1953_v47 = vsel %vm1904_vm4, %v3461_v44, 0.0 }
 0x455   : > { %v3465_v48 = vpop.eup %3023  ;;  %3029 = vpow2.f32 %v1945_v45  ;;  %v1935_v49 = vsub.f32 %v1902_v27, %v1925_v46  ;;  %1954 = vadd.xlane.f32.xlu0 %v1953_v47 }
 0x456   : > { %v1956_v50 = vsel %vm1904_vm4, %v3465_v48, 0.0 }
 0x457   : > { %v3469_v51 = vpop.eup %3025  ;;  %v1949_v52 = vmul.f32 1.442695, %v1935_v49  ;;  %1957 = vadd.xlane.f32.xlu1 %v1956_v50 }
 0x458   : > { %v1959_v53 = vsel %vm1904_vm4, %v3469_v51, 0.0  ;;  %v850_v28 = vpop.permute.xlu0 %849 }
 0x459   : > { %3031 = vpow2.f32 %v1949_v52  ;;  %1960 = vadd.xlane.f32.xlu0 %v1959_v53 }
 0x45b   : > { %v3473_v54 = vpop.eup %3027 }
 0x45c   : > { %v1962_v56 = vsel %vm1904_vm4, %v3473_v54, 0.0  ;;  %v862_v29 = vpop.permute.xlu0 %861 }
 0x45d   : > { %1963 = vadd.xlane.f32.xlu1 %v1962_v56  ;;  %v1009_v10 = vcombine.low %v850_v28, %v862_v29  ;;  %v1010_v12 = vcombine.high %v850_v28, %v862_v29 }
 0x45f   : > { %v3477_v57 = vpop.eup %3029  ;;  %v1017_v19 = vrot.slane %v1009_v10, %v3296_v55  ;;  %v1024_v22 = vrot.slane %v1010_v12, %v3296_v55 }
 0x460   : > { %v1965_v58 = vsel %vm1904_vm4, %v3477_v57, 0.0  ;;  %v868_v34 = vpop.permute.xlu0 %867 }
 0x461   : > { %1966 = vadd.xlane.f32.xlu0 %v1965_v58  ;;  %v1025_v35 = vcombine.low %v856_v63, %v868_v34  ;;  %v1026_v11 = vcombine.high %v856_v63, %v868_v34 }
 0x463   : > { %v3481_v59 = vpop.eup %3031  ;;  %v1033_v13 = vrot.slane %v1025_v35, %v3296_v55  ;;  %v1040_v20 = vrot.slane %v1026_v11, %v3296_v55 }
 0x464   : > { %v1971_v60 = vsel %vm1904_vm4, %v3481_v59, 0.0 }
 0x465   : > { %1972 = vadd.xlane.f32.xlu0 %v1971_v60  ;;  %v1041_v27 = vcombine.low %v1017_v19, %v1033_v13  ;;  %v1042_v14 = vcombine.high %v1017_v19, %v1033_v13  ;;  %v1057_v15 = vcombine.low %v1024_v22, %v1040_v20 }
 0x467   : > { %v1049_v18 = vrot.slane %v1041_v27, %v3298_v62  ;;  %v1056_v31 = vrot.slane %v1042_v14, %v3298_v62  ;;  %v1065_v32 = vrot.slane %v1057_v15, %v3298_v62 }
 0x469   : > { %v1553_v39 = vcombine.low %v1049_v18, %v1056_v31  ;;  %v2813_v23 = vcombine.high %v1049_v18, %v1056_v31 }
 0x46b   : > { %v1560_v45 = vrot.slane %v1553_v39, %v3296_v55  ;;  %v1568_v53 = vrot.slane %v2813_v23, %v3296_v55 }
 0x46e   : > { %869 = vrot.lane.b32.xlu1 %v3282_v42, %s3085_s24 }
 0x483   : > { %v1922_v1 = vpop.xlane.xlu1 %1921 }
 0x484   : > { %v1934_v2 = vsub.f32 %v1901_v30, %v1922_v1  ;;  %v1058_v30 = vcombine.high %v1024_v22, %v1040_v20 }
 0x486   : > { %v1947_v3 = vmul.f32 1.442695, %v1934_v2  ;;  %v1072_v33 = vrot.slane %v1058_v30, %v3298_v62 }
 0x487   : > { %v1928_v4 = vpop.xlane.xlu1 %1927 }
 0x488   : > { %3033 = vpow2.f32 %v1947_v3  ;;  %v1936_v5 = vsub.f32 %v3446_v21, %v1928_v4  ;;  %v1569_v24 = vcombine.low %v1065_v32, %v1072_v33  ;;  %v2814_v25 = vcombine.high %v1065_v32, %v1072_v33 }
 0x48a   : > { %v1951_v6 = vmul.f32 1.442695, %v1936_v5  ;;  %v1576_v56 = vrot.slane %v1569_v24, %v3296_v55  ;;  %v1584_v58 = vrot.slane %v2814_v25, %v3296_v55  ;;  %v1585_v5 = vcombine.low %v1560_v45, %v1568_v53 }
 0x48b   : > { %v864_v21 = vpop.permute.xlu1 %863 }
 0x48c   : > { %3035 = vpow2.f32 %v1951_v6  ;;  %v1213_v40 = vcombine.low %v852_v61, %v864_v21  ;;  %v1214_v38 = vcombine.high %v852_v61, %v864_v21  ;;  %v1601_v6 = vcombine.low %v1576_v56, %v1584_v58 }
 0x48d   : > { %v1593_v20 = vrot.slane %v1585_v5, %v3298_v62 }
 0x48e   : > { %v1221_v46 = vrot.slane %v1213_v40, %v3296_v55  ;;  %v1228_v47 = vrot.slane %v1214_v38, %v3296_v55  ;;  %v1609_v21 = vrot.slane %v1601_v6, %v3298_v62 }
 0x490   : > { %v1617_v39 = vcombine.low %v1593_v20, %v1609_v21  ;;  %v1618_v40 = vcombine.high %v1593_v20, %v1609_v21 }
 0x492   : > { %v3488_v7 = vpop.eup %3033 }
 0x493   : > { %v1968_v8 = vsel %vm1904_vm4, %v3488_v7, 0.0 }
 0x494   : > { %1969 = vadd.xlane.f32.xlu1 %v1968_v8  ;;  %v1586_v8 = vcombine.high %v1560_v45, %v1568_v53 }
 0x496   : > { %v3492_v9 = vpop.eup %3035  ;;  %v1600_v22 = vrot.slane %v1586_v8, %v3298_v62 }
 0x497   : > { %v1974_v42 = vsel %vm1904_vm4, %v3492_v9, 0.0 }
 0x498   : > { %1975 = vadd.xlane.f32.xlu0 %v1974_v42  ;;  %v1602_v42 = vcombine.high %v1576_v56, %v1584_v58 }
 0x49a   : > { %v1616_v27 = vrot.slane %v1602_v42, %v3298_v62  ;;  %v2277_v42 = vld [vmem:[%s3685_s25 + $0x8] sm:$0xf] }
 0x49b   : > { %v2282_v20 = vsel %vm2184_vm5, %v2277_v42, 0  ;;  %v3011_v42 = vld [vmem:[%s3223_s4] sm:$0xff]  }
 0x49c   : > { %v1619_v24 = vcombine.low %v1600_v22, %v1616_v27 }
 0x4e2   : > { %v1955_v37 = vpop.xlane.xlu0 %1954 }
 0x4e3   : > { %3037 = vrcp.f32 %v1955_v37 }
 0x4e4   : > { %v1958_v16 = vpop.xlane.xlu1 %1957 }
 0x4e5   : > { %3039 = vrcp.f32 %v1958_v16 }
 0x4e6   : > { %v1961_v49 = vpop.xlane.xlu0 %1960 }
 0x4ea   : > { %v1964_v36 = vpop.xlane.xlu1 %1963 }
 0x4eb   : > { %3041 = vrcp.f32 %v1964_v36 }
 0x4ec   : > { %3043 = vrcp.f32 %v1961_v49 }
 0x4ed   : > { %v3038_v19 = vpop.eup %3037 }
 0x4ee   : > { %v870_v26 = vpop.permute.xlu1 %869 }
 0x4ef   : > { %v1229_v41 = vcombine.low %v858_v0, %v870_v26  ;;  %v1230_v43 = vcombine.high %v858_v0, %v870_v26  ;;  %v3040_v14 = vpop.eup %3039 }
 0x4f0   : > { %v1986_v26 = vmul.f32 %v3040_v14, %v3465_v48 }
 0x4f1   : > { %v1237_v50 = vrot.slane %v1229_v41, %v3296_v55  ;;  %v1244_v52 = vrot.slane %v1230_v43, %v3296_v55  ;;  %v1620_v43 = vcombine.high %v1600_v22, %v1616_v27 }
 0x4f3   : > { %v1245_v60 = vcombine.low %v1221_v46, %v1237_v50  ;;  %v1246_v61 = vcombine.high %v1221_v46, %v1237_v50  ;;  %v1261_v63 = vcombine.low %v1228_v47, %v1244_v52  ;;  %v1262_v0 = vcombine.high %v1228_v47, %v1244_v52 }
 0x4f4   : > { %v1985_v50 = vmul.f32 %v3038_v19, %v3461_v44  ;;  %v1967_v44 = vpop.xlane.xlu0 %1966 }
 0x4f5   : > { %v1253_v1 = vrot.slane %v1245_v60, %v3298_v62  ;;  %v1260_v2 = vrot.slane %v1246_v61, %v3298_v62  ;;  %v1269_v3 = vrot.slane %v1261_v63, %v3298_v62  ;;  %v1276_v4 = vrot.slane %v1262_v0, %v3298_v62  ;;  %v3042_v31 = vpop.eup %3041 }
 0x4f6   : > { %v3044_v37 = vpop.eup %3043  ;;  %v1988_v41 = vmul.f32 %v3042_v31, %v3473_v54  ;;  %v1993_v53 = vpack.c.bf16 %v1986_v26, %v1985_v50  ;;  %3045 = vrcp.f32 %v1967_v44 }
 0x4f7   : > { %v1621_v28 = vcombine.low %v1253_v1, %v1260_v2  ;;  %v2815_v29 = vcombine.high %v1253_v1, %v1260_v2  ;;  %v1637_v34 = vcombine.low %v1269_v3, %v1276_v4  ;;  %v2816_v35 = vcombine.high %v1269_v3, %v1276_v4 }
 0x4f8   : > { %v1973_v48 = vpop.xlane.xlu0 %1972 }
 0x4f9   : > { %v1628_v10 = vrot.slane %v1621_v28, %v3296_v55  ;;  %v1636_v11 = vrot.slane %v2815_v29, %v3296_v55  ;;  %v1644_v12 = vrot.slane %v1637_v34, %v3296_v55  ;;  %v1652_v13 = vrot.slane %v2816_v35, %v3296_v55  ;;  %v2328_v28 = vld [vmem:[%s3685_s25 + $0xc] sm:$0xf] }
 0x4fa   : > { %v2333_v21 = vsel %vm2184_vm5, %v2328_v28, 0  ;;  %v3012_v28 = vld [vmem:[%s3223_s4 + $0x8] sm:$0xff]  }
 0x4fb   : > { %v1653_v15 = vcombine.low %v1628_v10, %v1636_v11  ;;  %v1669_v30 = vcombine.low %v1644_v12, %v1652_v13  ;;  %v1654_v16 = vcombine.high %v1628_v10, %v1636_v11  ;;  %v1670_v18 = vcombine.high %v1644_v12, %v1652_v13 }
 0x4fd   : > { %v1661_v32 = vrot.slane %v1653_v15, %v3298_v62  ;;  %v1677_v33 = vrot.slane %v1669_v30, %v3298_v62  ;;  %v1668_v55 = vrot.slane %v1654_v16, %v3298_v62  ;;  %v1684_v36 = vrot.slane %v1670_v18, %v3298_v62 }
 0x4fe   : > { %v1987_v62 = vmul.f32 %v3044_v37, %v3469_v51 }
 0x4ff   : > { %v1685_v38 = vcombine.low %v1661_v32, %v1677_v33  ;;  %v1686_v23 = vcombine.high %v1661_v32, %v1677_v33  ;;  %v1687_v25 = vcombine.low %v1668_v55, %v1684_v36  ;;  %v1688_v45 = vcombine.high %v1668_v55, %v1684_v36 }
 0x500   : > { %v1994_v56 = vpack.c.bf16 %v1988_v41, %v1987_v62  ;;  %v3046_v58 = vpop.eup %3045  ;;  %v2829_v62 = vld [vmem:[%s3686_s29] ss:$0 sm:$0xff] }
 0x501   : > { %v1997_v46 = vpack.c.bf16 %v1685_v38, %v1617_v39  ;;  %v1998_v47 = vpack.c.bf16 %v1686_v23, %v1618_v40  ;;  %v1999_v49 = vpack.c.bf16 %v1687_v25, %v1619_v24  ;;  %v2000_v52 = vpack.c.bf16 %v1688_v45, %v1620_v43 }
 0x502   : > { %v1989_v61 = vmul.f32 %v3046_v58, %v3477_v57  ;;  %v2180_v57 = vld [vmem:[%s3685_s25 + $0x4] sm:$0xf] }
 0x503   : > { %2919 = vmatpush3.bf16.msra.mxu1 %v1997_v46  ;;  %2925 = vmatpush3.bf16.msra.mxu0 %v1998_v47 }
 0x504   : > { %2930 = vmatprep.subr.bf16.mxu1 %v3071_v17  ;;  %2936 = vmatprep.subr.bf16.mxu0 %v3071_v17 }
 0x506   : > { %2921 = vmatmul.mubr.msk.bf16.vlgmr.msra.gmra.mrb[12].mxu1 %vm1904_vm4, %v1993_v53  ;;  %2927 = vmatmul.mubr.msk.bf16.vlgmr.msra.gmra.mrb[8].mxu0 %vm1904_vm4, %v1994_v56 }
 0x507   : > { %2931 = vmatpush3.bf16.msra.mxu1 %v1999_v49  ;;  %2937 = vmatpush3.bf16.msra.mxu0 %v2000_v52 }
 0x508   : > { %2932 = vmatprep.mubr.msk.bf16.mxu1 %vm3072_vm2, %v3071_v17  ;;  %2938 = vmatprep.mubr.msk.bf16.mxu0 %vm3072_vm2, %v3071_v17 }
 0x509   : > { %2942 = vmatprep.subr.bf16.mxu1 %v3071_v17  ;;  %2948 = vmatprep.subr.bf16.mxu0 %v3071_v17 }
 0x521   : > { %v1970_v51 = vpop.xlane.xlu1 %1969 }
 0x522   : > { %3047 = vrcp.f32 %v1970_v51 }
 0x523   : > { %3049 = vrcp.f32 %v1973_v48 }
 0x525   : > { %v1976_v54 = vpop.xlane.xlu0 %1975 }
 0x526   : > { %3051 = vrcp.f32 %v1976_v54  ;;  %v3057_v54 = vld [vmem:[#allocation2] sm:$0xff] }
 0x52c   : > { %v3048_v60 = vpop.eup %3047 }
 0x52d   : > { %v1990_v63 = vmul.f32 %v3048_v60, %v3488_v7  ;;  %v3050_v0 = vpop.eup %3049  ;;  %v2178_v7 = vld [vmem:[%s3685_s25] sm:$0xf] }
 0x52e   : > { %v1991_v3 = vmul.f32 %v3050_v0, %v3481_v59  ;;  %v2186_v59 = vsel %vm2184_vm5, %v2180_v57, 0 }
 0x52f   : > { %v1995_v1 = vpack.c.bf16 %v1990_v63, %v1989_v61  ;;  %v3058_v61 = vld [vmem:[#allocation2 + $0x8] sm:$0xff] }
 0x530   : > { %v3052_v2 = vpop.eup %3051 }
 0x531   : > { %v1992_v4 = vmul.f32 %v3052_v2, %v3492_v9  ;;  %2933 = vmatmul.mubr.msk.bf16.vlgmr.msra.gmra.mrb[16].mxu1 %vm1904_vm4, %v1995_v1  ;;  %v2233_v9 = vsel %vm2184_vm5, %v2178_v7, 0 }
 0x532   : > { %2944 = vmatprep.mubr.msk.bf16.mxu1 %vm3072_vm2, %v3071_v17  ;;  %2943 = vmatpush3.bf16.msra.mxu1 %v2186_v59 }
 0x533   : > { %v1996_v5 = vpack.c.bf16 %v1992_v4, %v1991_v3  ;;  %2954 = vmatprep.subr.bf16.mxu1 %v3071_v17 }
 0x535   : > { %2939 = vmatmul.mubr.msk.bf16.vlgmr.msra.gmra.mrb[12].mxu0 %vm1904_vm4, %v1996_v5 }
 0x536   : > { %2950 = vmatprep.mubr.msk.bf16.mxu0 %vm3072_vm2, %v3071_v17  ;;  %2949 = vmatpush3.bf16.msra.mxu0 %v2233_v9 }
 0x537   : > { %2960 = vmatprep.subr.bf16.mxu0 %v3071_v17 }
 0x5d9   : > { %v2038_v6 = vpop.f32.mrb[12].mxu1  ;;  %v2082_v8 = vpop.f32.mrb[8].mxu0 }
 0x5da   : > { %v2922_v29 = vpop.f32.mrb[13].mxu1  ;;  %v2928_v34 = vpop.f32.mrb[9].mxu0 }
 0x5db   : > { %v2041_v35 = vpop.f32.mrb[14].mxu1  ;;  %v2085_v10 = vpop.f32.mrb[10].mxu0  ;;  %v3013_v29 = vld [vmem:[%s3233_s27] sm:$0xff]   ;;  %v3014_v34 = vld [vmem:[%s3233_s27 + $0x8] sm:$0xff]  }
 0x5dc   : > { %v2177_v11 = vpack.c.bf16 %v2041_v35, %v2038_v6  ;;  %v2179_v12 = vpack.c.bf16 %v2085_v10, %v2082_v8  ;;  %v2923_v13 = vpop.f32.mrb[15].mxu1  ;;  %v2929_v19 = vpop.f32.mrb[11].mxu0 }
 0x5de   : > { %2945 = vmatmul.mubr.msk.bf16.vlgmr.msra.gmra.mrb[20].mxu1 %vm1699_vm3, %v2179_v12  ;;  %2951 = vmatmul.mubr.msk.bf16.vlgmr.msra.gmra.mrb[16].mxu0 %vm1699_vm3, %v2177_v11 }
 0x5df   : > { %2955 = vmatpush3.bf16.msra.mxu1 %v2282_v20  ;;  %2961 = vmatpush3.bf16.msra.mxu0 %v2333_v21  ;;  %v2830_v21 = vld [vmem:[%s659_s14] ss:$0 sm:$0xff] }
 0x5e0   : > { %2956 = vmatprep.mubr.msk.bf16.mxu1 %vm3072_vm2, %v3071_v17  ;;  %2962 = vmatprep.mubr.msk.bf16.mxu0 %vm3072_vm2, %v3071_v17 }
 0x5e1   : > { %2966 = vmatprep.subr.bf16.mxu1 %v3071_v17  ;;  %2974 = vmatprep.subr.bf16.mxu0 %v3071_v17 }
 0x604   : > { %v2126_v22 = vpop.f32.mrb[16].mxu1 }
 0x605   : > { %v2934_v27 = vpop.f32.mrb[17].mxu1 }
 0x606   : > { %v2129_v14 = vpop.f32.mrb[18].mxu1 }
 0x607   : > { %v2276_v15 = vpack.c.bf16 %v2129_v14, %v2126_v22  ;;  %v2935_v30 = vpop.f32.mrb[19].mxu1 }
 0x608   : > { %v2170_v16 = vpop.f32.mrb[12].mxu0  ;;  %v2831_v30 = vld [vmem:[%s662_s18] ss:$0 sm:$0xff] }
 0x609   : > { %v2940_v18 = vpop.f32.mrb[13].mxu0  ;;  %2957 = vmatmul.mubr.msk.bf16.vlgmr.msra.gmra.mrb[24].mxu1 %vm1699_vm3, %v2276_v15 }
 0x60a   : > { %v2173_v31 = vpop.f32.mrb[14].mxu0  ;;  %2970 = vmatprep.mubr.msk.bf16.mxu1 %vm3072_vm2, %v3071_v17  ;;  %2967 = vmatpush3.bf16.msra.mxu1 %v3011_v42 }
 0x60b   : > { %v2327_v32 = vpack.c.bf16 %v2173_v31, %v2170_v16  ;;  %v2941_v33 = vpop.f32.mrb[15].mxu0  ;;  %2968 = vmatprep.subr.bf16.mxu1 %v3071_v17 }
 0x60c   : > { %v3015_v33 = vld [vmem:[%s3233_s27 + $0x10] sm:$0xff]  }
 0x60d   : > { %2963 = vmatmul.mubr.msk.bf16.vlgmr.msra.gmra.mrb[20].mxu0 %vm1699_vm3, %v2327_v32 }
 0x60e   : > { %2982 = vmatprep.mubr.msk.bf16.mxu0 %vm3072_vm2, %v3071_v17  ;;  %2969 = vmatpush3.bf16.msra.mxu1 %v3012_v28 }
 0x60f   : > { %2975 = vmatpush3.bf16.msra.mxu0 %v3013_v29 }
 0x610   : > { %2976 = vmatprep.subr.bf16.mxu0 %v3071_v17 }
 0x613   : > { %2977 = vmatpush3.bf16.msra.mxu0 %v3014_v34 }
 0x614   : > { %2978 = vmatprep.subr.bf16.mxu0 %v3071_v17 }
 0x617   : > { %2979 = vmatpush3.bf16.msra.mxu0 %v3015_v33 }
 0x618   : > { %2980 = vmatprep.subr.bf16.mxu0 %v3071_v17  ;;  %v2836_v17 = vld [vmem:[%s678_s0] ss:$0 sm:$0xff] }
 0x6b1   : > { %v2222_v55 = vpop.f32.mrb[20].mxu1  ;;  %v2269_v36 = vpop.f32.mrb[16].mxu0 }
 0x6b2   : > { %v2270_v37 = vadd.f32 %v2269_v36, %v2222_v55  ;;  %v2946_v39 = vpop.f32.mrb[21].mxu1  ;;  %v2952_v40 = vpop.f32.mrb[17].mxu0  ;;  %v3016_v55 = vld [vmem:[%s3233_s27 + $0x18] sm:$0xff]   ;;  %v2832_v36 = vld [vmem:[%s670_s6] ss:$0 sm:$0xff] }
 0x6b3   : > { %v2225_v38 = vpop.f32.mrb[22].mxu1  ;;  %v2272_v23 = vpop.f32.mrb[18].mxu0  ;;  %2981 = vmatpush3.bf16.msra.mxu0 %v3016_v55 }
 0x6b4   : > { %v2273_v24 = vadd.f32 %v2272_v23, %v2225_v38  ;;  %v2947_v25 = vpop.f32.mrb[23].mxu1  ;;  %v2953_v26 = vpop.f32.mrb[19].mxu0 }
 0x6dc   : > { %v2318_v41 = vpop.f32.mrb[24].mxu1 }
 0x6dd   : > { %v2325_v43 = vadd.f32 %v2318_v41, %v2270_v37  ;;  %v2958_v45 = vpop.f32.mrb[25].mxu1 }
 0x6de   : > { %v2321_v46 = vpop.f32.mrb[26].mxu1 }
 0x6df   : > { %v2326_v47 = vadd.f32 %v2321_v46, %v2273_v24  ;;  %v2959_v49 = vpop.f32.mrb[27].mxu1 }
 0x6e0   : > { %v2369_v50 = vpop.f32.mrb[20].mxu0 }
 0x6e1   : > { %v2376_v52 = vadd.f32 %v2369_v50, %v2325_v43  ;;  %v2964_v53 = vpop.f32.mrb[21].mxu0 }
 0x6e2   : > { %v2372_v56 = vpop.f32.mrb[22].mxu0 }
 0x6e3   : > { %v2385_v44 = vadd.f32 %v2829_v62, %v2376_v52  ;;  %v2377_v48 = vadd.f32 %v2372_v56, %v2326_v47  ;;  %v2965_v51 = vpop.f32.mrb[23].mxu0 }
 0x6e5   : > { %v3581_v58 = vadd.f32 %v3057_v54, %v2385_v44  ;;  %v2386_v60 = vadd.f32 %v2829_v62, %v2377_v48 }
 0x6e7   : > { %v3583_v63 = vadd.f32 %v3058_v61, %v2386_v60  ;;  %v2391_v0 = vsel %vm693_vm1, %v3581_v58, 0.0 }
 0x6e8   : > { %2392 = vadd.xlane.f32.xlu0 %v2391_v0 }
 0x6e9   : > { %v2394_v1 = vsel %vm693_vm1, %v3583_v63, 0.0 }
 0x6ea   : > { %2395 = vadd.xlane.f32.xlu1 %v2394_v1 }
 0x775   : > { %v2393_v2 = vpop.xlane.xlu0 %2392 }
 0x776   : > { %v2397_v3 = vmul.f32 0.03125, %v2393_v2 }
 0x777   : > { %v2396_v4 = vpop.xlane.xlu1 %2395 }
 0x778   : > { %v2399_v5 = vsub.f32 %v3581_v58, %v2397_v3  ;;  %v2398_v57 = vmul.f32 0.03125, %v2396_v4 }
 0x77a   : > { %v2400_v7 = vsub.f32 %v3583_v63, %v2398_v57  ;;  %v2401_v59 = vmul.f32 %v2399_v5, %v2399_v5 }
 0x77c   : > { %v2403_v9 = vsel %vm693_vm1, %v2401_v59, 0.0  ;;  %v2402_v6 = vmul.f32 %v2400_v7, %v2400_v7 }
 0x77d   : > { %2404 = vadd.xlane.f32.xlu0 %v2403_v9  ;;  %v2843_v9 = vld [vmem:[%s3687_s23] ss:$0 sm:$0xff] (!%p2842_p5) }
 0x77e   : > { %v2406_v8 = vsel %vm693_vm1, %v2402_v6, 0.0 }
 0x77f   : > { %2407 = vadd.xlane.f32.xlu1 %v2406_v8  ;;  %v2844_v8 = vld [vmem:[%s3688_s16] ss:$0 sm:$0xff] (!%p2842_p5) }
 0x80a   : > { %v2405_v35 = vpop.xlane.xlu0 %2404 }
 0x80b   : > { %v2409_v10 = vmul.f32 0.03125, %v2405_v35 }
 0x80c   : > { %v2408_v11 = vpop.xlane.xlu1 %2407 }
 0x80d   : > { %v2411_v12 = vadd.f32 1e-05, %v2409_v10  ;;  %v2410_v13 = vmul.f32 0.03125, %v2408_v11 }
 0x80f   : > { %3053 = vrsqrt.f32 %v2411_v12  ;;  %v2412_v19 = vadd.f32 1e-05, %v2410_v13 }
 0x811   : > { %3055 = vrsqrt.f32 %v2412_v19 }
 0x819   : > { %v3054_v20 = vpop.eup %3053 }
 0x81a   : > { %v2415_v22 = vmul.f32 %v3054_v20, %v2399_v5 }
 0x81b   : > { %v3056_v27 = vpop.eup %3055 }
 0x81c   : > { %v2423_v14 = vmul.f32 %v2830_v21, %v2415_v22  ;;  %v2416_v15 = vmul.f32 %v3056_v27, %v2400_v7 }
 0x81e   : > { %v2424_v16 = vmul.f32 %v2830_v21, %v2416_v15  ;;  %v2431_v18 = vadd.f32 %v2831_v30, %v2423_v14 }
 0x820   : > { %v2432_v31 = vadd.f32 %v2831_v30, %v2424_v16 }
 0x822   : > { %v2433_v32 = vpack.c.bf16 %v2432_v31, %v2431_v18 }
 0x824   : > { %2971 = vmatmul.mubr.msk.bf16.vlgmr.msra.gmra.mrb[28].mxu1 %vm693_vm1, %v2433_v32 }
 0x8f7   : > { %v2494_v37 = vpop.f32.mrb[28].mxu1 }
 0x8f8   : > { %v2495_v39 = vadd.f32 %v2832_v36, %v2494_v37  ;;  %v2972_v40 = vpop.f32.mrb[29].mxu1 }
 0x8f9   : > { %v2497_v38 = vpop.f32.mrb[30].mxu1 }
 0x8fa   : > { %v2498_v23 = vadd.f32 %v2832_v36, %v2497_v38  ;;  %v2973_v24 = vpop.f32.mrb[31].mxu1  ;;  %v2501_v25 = vmax.f32 %v2495_v39, 0.0 }
 0x8fc   : > { %v2502_v26 = vmax.f32 %v2498_v23, 0.0 }
 0x8fe   : > { %v2503_v41 = vpack.c.bf16 %v2502_v26, %v2501_v25 }
 0x900   : > { %2983 = vmatmul.mubr.msk.bf16.vlgmr.msra.gmra.mrb[24].mxu0 %vm2543_vm6, %v2503_v41 }
 0x9d3   : > { %v2581_v43 = vpop.f32.mrb[24].mxu0 }
 0x9d4   : > { %v2582_v45 = vadd.f32 %v2836_v17, %v2581_v43  ;;  %v2984_v46 = vpop.f32.mrb[25].mxu0  ;;  %2595 = sbr.rel (%p2842_p5) target bundleno = 2838 (0xb16), region = 92 }
 0x9d5   : > { %v2584_v47 = vpop.f32.mrb[26].mxu0 }
 0x9d6   : > { %v2588_v49 = vadd.f32 %v2582_v45, %v3581_v58  ;;  %v2585_v50 = vadd.f32 %v2836_v17, %v2584_v47  ;;  %v2985_v62 = vpop.f32.mrb[27].mxu0 }
 0x9d8   : > { %2590 = vst.msk [vmem:[#allocation2] sm:$0xff] %vm693_vm1, %v2588_v49  ;;  %v2589_v52 = vadd.f32 %v2585_v50, %v3583_v63  ;;  %v2598_v53 = vsel (!%p2842_p5), %vm693_vm1, %v2588_v49, 0.0 }
 0x9d9   : > { %2599 = vadd.xlane.f32.xlu0 (!%p2842_p5), %v2598_v53 }
 0x9da   : > { %2591 = vst.msk [vmem:[#allocation2 + $0x8] sm:$0xff] %vm693_vm1, %v2589_v52  ;;  %v2601_v56 = vsel (!%p2842_p5), %vm693_vm1, %v2589_v52, 0.0 }
 0x9dd   : > { %2602 = vadd.xlane.f32.xlu0 %v2601_v56 }
 0xa66   : > { %v2600_v44 = vpop.xlane.xlu0 %2599 }
 0xa67   : > { %v2604_v48 = vmul.f32 0.03125, %v2600_v44 }
 0xa69   : > { %v2606_v51 = vsub.f32 %v2588_v49, %v2604_v48 }
 0xa6a   : > { %v2603_v54 = vpop.xlane.xlu0 %2602 }
 0xa6b   : > { %v2605_v58 = vmul.f32 0.03125, %v2603_v54  ;;  %v2608_v60 = vmul.f32 %v2606_v51, %v2606_v51 }
 0xa6d   : > { %v2607_v61 = vsub.f32 %v2589_v52, %v2605_v58  ;;  %v2610_v63 = vsel %vm693_vm1, %v2608_v60, 0.0 }
 0xa6e   : > { %2611 = vadd.xlane.f32.xlu1 %v2610_v63 }
 0xa6f   : > { %v2609_v0 = vmul.f32 %v2607_v61, %v2607_v61 }
 0xa71   : > { %v2613_v1 = vsel %vm693_vm1, %v2609_v0, 0.0 }
 0xa72   : > { %2614 = vadd.xlane.f32.xlu1 %v2613_v1 }
 0xafb   : > { %v2612_v2 = vpop.xlane.xlu1 %2611 }
 0xafc   : > { %v2616_v3 = vmul.f32 0.03125, %v2612_v2 }
 0xafe   : > { %v2618_v4 = vadd.f32 1e-05, %v2616_v3 }
 0xaff   : > { %v2615_v5 = vpop.xlane.xlu1 %2614 }
 0xb00   : > { %3059 = vrsqrt.f32 %v2618_v4  ;;  %v2617_v57 = vmul.f32 0.03125, %v2615_v5 }
 0xb02   : > { %v2619_v7 = vadd.f32 1e-05, %v2617_v57 }
 0xb04   : > { %3061 = vrsqrt.f32 %v2619_v7 }
 0xb0a   : > { %v3060_v59 = vpop.eup %3059 }
 0xb0b   : > { %v2622_v6 = vmul.f32 %v3060_v59, %v2606_v51 }
 0xb0d   : > { %v2630_v42 = vmul.f32 %v2843_v9, %v2622_v6 }
 0xb0e   : > { %v3062_v28 = vpop.eup %3061 }
 0xb0f   : > { %v2638_v29 = vadd.f32 %v2844_v8, %v2630_v42  ;;  %v2623_v34 = vmul.f32 %v3062_v28, %v2607_v61 }
 0xb11   : > { %2640 = vst.msk [vmem:[%s3689_s15] sm:$0xff] %vm693_vm1, %v2638_v29  ;;  %v2631_v35 = vmul.f32 %v2843_v9, %v2623_v34 }
 0xb13   : > { %v2639_v10 = vadd.f32 %v2844_v8, %v2631_v35 }
 0xb15   : > { %2641 = vst.msk [vmem:[%s3689_s15 + $0x8] sm:$0xff] %vm693_vm1, %v2639_v10 }
 0xb16 PF: > { %s3690_s4 = sld [smem:[#allocation3_spill]] }
 0xb1c   : > { %s26_s21 = sadd.s32 1, %s3690_s4  }
 0xb1d   : > { %p23_p6 = scmp.ge.s32.totalorder %s26_s21, 4  }
 0xb1f   :  { %25 = sbr.rel (!%p23_p6) target bundleno = 7 (0x7), region = 151 }

// kernel: script_wrapper_forward.3
= control target key start
LH: loop header
LB: loop body
LE: loop exit
PB: predicated region body
PF: predicated region fallthrough
CT: control target
= control target key end

     0   :  { %s6758_s0 = inlined_call_operand.vmem [shape: f32[16,32], index: 0, kind: input, shape index: {}]   ;;  %s6759_s1 = inlined_call_operand.vmem [shape: f32[16,32], index: 1, kind: input, shape index: {}]   ;;  %s6760_s2 = inlined_call_operand.vmem [shape: f32[16,16], index: 2, kind: input, shape index: {}]   ;;  %s6761_s3 = inlined_call_operand.vmem [shape: f32[16,16], index: 3, kind: input, shape index: {}]   ;;  %s6762_s4 = inlined_call_operand.vmem [shape: f32[2,1,32], index: 4, kind: input, shape index: {}]   ;;  %s6763_s5 = inlined_call_operand.vmem [shape: f32[2,1,32], index: 5, kind: input, shape index: {}]   ;;  %s6764_s6 = inlined_call_operand.vmem [shape: bf16[2,32,96], index: 6, kind: input, shape index: {}]   ;;  %s6765_s7 = inlined_call_operand.vmem [shape: f32[2,1,96], index: 7, kind: input, shape index: {}]   ;;  %s6766_s8 = inlined_call_operand.vmem [shape: bf16[2,32,32], index: 8, kind: input, shape index: {}]   ;;  %s6767_s9 = inlined_call_operand.vmem [shape: f32[2,1,32], index: 9, kind: input, shape index: {}]   ;;  %s6768_s10 = inlined_call_operand.vmem [shape: f32[2,1,32], index: 10, kind: input, shape index: {}]   ;;  %s6769_s11 = inlined_call_operand.vmem [shape: f32[2,1,32], index: 11, kind: input, shape index: {}]   ;;  %s6770_s12 = inlined_call_operand.vmem [shape: bf16[2,32,32], index: 12, kind: input, shape index: {}]   ;;  %s6771_s13 = inlined_call_operand.vmem [shape: f32[2,1,32], index: 13, kind: input, shape index: {}]   ;;  %s6772_s14 = inlined_call_operand.vmem [shape: bf16[2,32,64], index: 14, kind: input, shape index: {}]   ;;  %s6773_s15 = inlined_call_operand.vmem [shape: f32[2,1,64], index: 15, kind: input, shape index: {}]   ;;  %s6774_s16 = inlined_call_operand.vmem [shape: bf16[2,32,32], index: 16, kind: input, shape index: {}]   ;;  %s6775_s17 = inlined_call_operand.vmem [shape: f32[2,1,32], index: 17, kind: input, shape index: {}]   ;;  %s6776_s18 = inlined_call_operand.vmem [shape: f32[2,1,32], index: 18, kind: input, shape index: {}]   ;;  %s6777_s19 = inlined_call_operand.vmem [shape: f32[2,1,32], index: 19, kind: input, shape index: {}]   ;;  %s6778_s20 = inlined_call_operand.vmem [shape: bf16[2,32,64], index: 20, kind: input, shape index: {}]   ;;  %s6779_s21 = inlined_call_operand.vmem [shape: f32[2,1,64], index: 21, kind: input, shape index: {}]   ;;  %s6780_s22 = inlined_call_operand.vmem [shape: bf16[2,64,32], index: 22, kind: input, shape index: {}]   ;;  %s6781_s23 = inlined_call_operand.vmem [shape: f32[2,1,32], index: 23, kind: input, shape index: {}]   ;;  %s6782_s24 = inlined_call_operand.vmem [shape: f32[1,32], index: 24, kind: input, shape index: {}]   ;;  %s6783_s25 = inlined_call_operand.vmem [shape: f32[1,32], index: 25, kind: input, shape index: {}]   ;;  %s6784_s26 = inlined_call_operand.vmem [shape: bf16[128,32], index: 26, kind: input, shape index: {}]   ;;  %s6785_s27 = inlined_call_operand.vmem [shape: f32[16,128], index: 27, kind: output, shape index: {}]  }
   0x1   :  { %6795 = sst [smem:[#allocation6_spill]] %s6758_s0 }
   0x2   :  { %6796 = sst [smem:[#allocation7_spill]] %s6759_s1 }
   0x3   :  { %6797 = sst [smem:[#allocation8_spill]] %s6760_s2 }
   0x4   :  { %6798 = sst [smem:[#allocation9_spill]] %s6761_s3 }
   0x5   :  { %6799 = sst [smem:[#allocation10_spill]] %s6762_s4 }
   0x6   :  { %6800 = sst [smem:[#allocation11_spill]] %s6763_s5 }
   0x7   :  { %6801 = sst [smem:[#allocation12_spill]] %s6764_s6 }
   0x8   :  { %6802 = sst [smem:[#allocation13_spill]] %s6765_s7  ;;  %s5878_s7 = smov 0  }
   0x9   :  { %6803 = sst [smem:[#allocation14_spill]] %s6766_s8 }
   0xa   :  { %6804 = sst [smem:[#allocation15_spill]] %s6767_s9 }
   0xb   :  { %6805 = sst [smem:[#allocation16_spill]] %s6768_s10 }
   0xc   :  { %6806 = sst [smem:[#allocation17_spill]] %s6769_s11 }
   0xd   :  { %6807 = sst [smem:[#allocation18_spill]] %s6770_s12 }
   0xe   :  { %6808 = sst [smem:[#allocation19_spill]] %s6772_s14 }
   0xf   :  { %6809 = sst [smem:[#allocation20_spill]] %s6780_s22 }
  0x10   :  { %6810 = sst [smem:[#allocation21_spill]] %s6781_s23 }
  0x11   :  { %6811 = sst [smem:[#allocation22_spill]] %s6782_s24 }
  0x12   :  { %6812 = sst [smem:[#allocation23_spill]] %s6783_s25 }
  0x13   :  { %6813 = sst [smem:[#allocation24_spill]] %s6784_s26 }
  0x14   :  { %6814 = sst [smem:[#allocation25_spill]] %s6785_s27 }
  0x15 LB: > { %6815 = sst [smem:[#allocation3_spill]] %s5719_s7  ;;  %s5884_s4 = sadd.s32 4294967295, %s5719_s7   ;;  %s5719_s7 = sphi %s5878_s7, %s37_s7  }
  0x16   : > { %6816 = sst [smem:[#allocation4_spill]] %s5884_s4  ;;  %p5173_p0 = scmp.ge.s32.totalorder %s5719_s7, 1 }
  0x17   : > { %p896_p1 = scmp.lt.s32.totalorder %s5719_s7, 3 }
  0x19   : > { %p897_p2 = pnand %p5173_p0, %p896_p1 }
  0x1b   : > { %900 = sbr.rel (%p897_p2) target bundleno = 4789 (0x12b5), region = 128 }
  0x22   : > { %p1032_p3 = scmp.lt.s32.totalorder %s5884_s4, 1  ;;  %s6820_s27 = sld [smem:[#allocation12_spill]] }
  0x23   : > { %s6822_s5 = sld [smem:[#allocation14_spill]]  ;;  %s6826_s12 = sld [smem:[#allocation18_spill]] }
  0x24   : > { %s5890_s8 = scalar_select %p1032_p3, %s5884_s4, 1 }
  0x25   : > { %s6827_s14 = sld [smem:[#allocation19_spill]]  ;;  %s6828_s9 = sld [smem:[#allocation20_spill]] }
  0x26   : > { %s5297_s6 = sshll.u32 %s5890_s8, 4  ;;  %s1089_s3 = scalar_lea.vmem %s6777_s19, %s5890_s8 }
  0x27   : > { %s5948_s7 = scalar_lea.vmem %s6774_s16, %s5297_s6  ;;  %s5965_s11 = scalar_lea.vmem %s6778_s20, %s5297_s6 }
  0x28   : > { %s5908_s25 = scalar_lea.vmem %s6820_s27, %s5297_s6  ;;  %s6830_s10 = sld [smem:[#allocation4_spill]] }
  0x29   : > { %6821 = sst [smem:[#allocation5_spill]] %s5908_s25  ;;  %s5913_s28 = scalar_lea.vmem %s6822_s5, %s5297_s6 }
  0x2a   : > { %s5930_s22 = scalar_lea.vmem %s6826_s12, %s5297_s6  ;;  %s5303_s12 = sshll.u32 %s5890_s8, 5 }
  0x2b   : > { %s5939_s29 = scalar_lea.vmem %s6827_s14, %s5297_s6  ;;  %s5975_s14 = scalar_lea.vmem %s6828_s9, %s5303_s12 }
  0x2e   : > { %p5188_p4 = scmp.ne.s32.totalorder %s6830_s10, 0 }
  0x2f   : > { %s6831_s4 = sld [smem:[#allocation6_spill]] (!%p5188_p4)  ;;  %vm1113_vm0 = vcmask (!%p5188_p4), 261120  }
  0x30   : > { %1110 = sbr.rel (%p5188_p4) target bundleno = 55 (0x37), region = 132 }
  0x35   : > { %v1111_v0 = vld [vmem:[%s6831_s4] sm:$0xff] (!%p5188_p4)  ;;  %v1112_v1 = vld [vmem:[%s6831_s4 + $0x8] sm:$0xff] (!%p5188_p4) }
  0x36   : > { %1114 = vst.msk [vmem:[#allocation2] sm:$0xff] (!%p5188_p4), %vm1113_vm0, %v1111_v0  ;;  %1115 = vst.msk [vmem:[#allocation2 + $0x8] sm:$0xff] (!%p5188_p4), %vm1113_vm0, %v1112_v1 }
  0x37 PF: > { %vm1122_vm1 = vcmask 261120   ;;  %s6832_s12 = sld [smem:[#allocation5_spill]]  ;;  %v5721_v17 = vmov 0.0   ;;  %vm5722_vm2 = vmmov 0   ;;  %s6833_s25 = sld [smem:[#allocation10_spill]]  ;;  %v1307_v45 = vlaneseq }
  0x38   : > { %5378 = vmatprep.subr.bf16.mxu1 %v5721_v17  ;;  %5392 = vmatprep.subr.bf16.mxu0 %v5721_v17  ;;  %s6835_s10 = sld [smem:[#allocation11_spill]]  ;;  %s6837_s30 = sld [smem:[#allocation13_spill]]  ;;  %v5730_v43 = vmov 1983009808   ;;  %v5731_v48 = vmov 1934713408  }
  0x39   : > { %5382 = vmatprep.mubr.msk.bf16.mxu1 %vm5722_vm2, %v5721_v17  ;;  %5394 = vmatprep.mubr.msk.bf16.mxu0 %vm5722_vm2, %v5721_v17  ;;  %s5723_s9 = smov 88   ;;  %s5724_s5 = smov 96   ;;  %v1305_v44 = vunpack.c.l.s4 %v5730_v43  ;;  %v1369_v49 = vunpack.c.l.s4 %v5731_v48  ;;  %v1308_v51 = vshrl.u32 %v1307_v45, 7  ;;  %vm2128_vm3 = vcmask 64512  }
  0x3a   : > { %s5727_s24 = smov 120   ;;  %s5728_s26 = smov 112   ;;  %vm2333_vm4 = vcmask 130048   ;;  %vm2613_vm5 = vcmask 1043456   ;;  %vm4729_vm6 = vcmask 523264  }
  0x3b   : > { %v1306_v50 = vunpack.c.0.s8 %v1305_v44  ;;  %v1370_v54 = vunpack.c.0.s8 %v1369_v49  ;;  %s6839_s23 = sld [smem:[#allocation8_spill]]  ;;  %s5733_s6 = smov 56  }
  0x3c   : > { %s6846_s0 = sld [smem:[#allocation17_spill]] }
  0x3d   : > { %v1116_v2 = vld [vmem:[#allocation2] sm:$0xff]  ;;  %v1117_v3 = vld [vmem:[#allocation2 + $0x8] sm:$0xff]  ;;  %s6834_s27 = scalar_lea.vmem %s6833_s25, %s5890_s8  ;;  %s5725_s25 = smov 80   ;;  %v6052_v55 = vsub.s32 %v1306_v50, %v1308_v51  ;;  %v6054_v62 = vsub.s32 %v1370_v54, %v1308_v51 }
  0x3e   : > { %v1123_v4 = vsel %vm1122_vm1, %v1116_v2, 0.0  ;;  %v1126_v5 = vsel %vm1122_vm1, %v1117_v3, 0.0  ;;  %v5611_v16 = vld [vmem:[%s6832_s12] sm:$0xff]   ;;  %v5612_v18 = vld [vmem:[%s6832_s12 + $0x8] sm:$0xff]   ;;  %s6836_s1 = scalar_lea.vmem %s6835_s10, %s5890_s8  ;;  %s6838_s12 = scalar_lea.vmem %s6837_s30, %s5890_s8 }
  0x3f   : > { %1124 = vadd.xlane.f32.xlu0 %v1123_v4  ;;  %5379 = vmatpush3.bf16.msra.mxu1 %v5611_v16  ;;  %v5189_v27 = vld [vmem:[%s6834_s27] ss:$0 sm:$0xff]  ;;  %s5726_s27 = smov 72   ;;  %s5729_s10 = smov 104  }
  0x40   : > { %5380 = vmatprep.subr.bf16.mxu1 %v5721_v17  ;;  %v5190_v31 = vld [vmem:[%s6836_s1] ss:$0 sm:$0xff]  ;;  %s5732_s1 = smov 64   ;;  %s5734_s30 = smov 48  }
  0x41   : > { %v5191_v36 = vld [vmem:[%s6838_s12] ss:$0 sm:$0xff]  ;;  %s5735_s12 = smov 40  }
  0x42   : > { %s6847_s2 = scalar_lea.vmem %s6846_s0, %s5890_s8  ;;  %s6852_s0 = scalar_lea.vmem %s6779_s21, %s5890_s8 }
  0x43   : > { %1127 = vadd.xlane.f32.xlu0 %v1126_v5  ;;  %5381 = vmatpush3.bf16.msra.mxu1 %v5612_v18 }
  0x44   : > { %5386 = vmatprep.subr.bf16.mxu1 %v5721_v17 }
  0xcc   : > { %v1125_v6 = vpop.xlane.xlu0 %1124 }
  0xcd   : > { %v1130_v7 = vmul.f32 0.03125, %v1125_v6 }
  0xcf   : > { %v1132_v8 = vsub.f32 %v1116_v2, %v1130_v7 }
  0xd0   : > { %v1128_v9 = vpop.xlane.xlu0 %1127 }
  0xd1   : > { %v1131_v10 = vmul.f32 0.03125, %v1128_v9  ;;  %v1134_v11 = vmul.f32 %v1132_v8, %v1132_v8 }
  0xd3   : > { %v1133_v12 = vsub.f32 %v1117_v3, %v1131_v10  ;;  %v1136_v13 = vsel %vm1122_vm1, %v1134_v11, 0.0 }
  0xd4   : > { %1137 = vadd.xlane.f32.xlu1 %v1136_v13 }
  0xd5   : > { %v1135_v14 = vmul.f32 %v1133_v12, %v1133_v12 }
  0xd7   : > { %v1139_v15 = vsel %vm1122_vm1, %v1135_v14, 0.0 }
  0xd8   : > { %1140 = vadd.xlane.f32.xlu1 %v1139_v15 }
 0x161   : > { %v1138_v19 = vpop.xlane.xlu1 %1137 }
 0x162   : > { %v1142_v20 = vmul.f32 0.03125, %v1138_v19 }
 0x164   : > { %v1144_v21 = vadd.f32 1e-05, %v1142_v20 }
 0x165   : > { %v1141_v22 = vpop.xlane.xlu1 %1140 }
 0x166   : > { %5623 = vrsqrt.f32 %v1144_v21  ;;  %v1143_v23 = vmul.f32 0.03125, %v1141_v22 }
 0x168   : > { %v1145_v24 = vadd.f32 1e-05, %v1143_v23 }
 0x16a   : > { %5625 = vrsqrt.f32 %v1145_v24 }
 0x170   : > { %v5624_v25 = vpop.eup %5623 }
 0x171   : > { %v1148_v26 = vmul.f32 %v5624_v25, %v1132_v8 }
 0x173   : > { %v1156_v30 = vmul.f32 %v5189_v27, %v1148_v26 }
 0x174   : > { %v5626_v28 = vpop.eup %5625 }
 0x175   : > { %v1149_v29 = vmul.f32 %v5626_v28, %v1133_v12  ;;  %v1164_v33 = vadd.f32 %v5190_v31, %v1156_v30 }
 0x177   : > { %v1157_v32 = vmul.f32 %v5189_v27, %v1149_v29 }
 0x179   : > { %v1165_v34 = vadd.f32 %v5190_v31, %v1157_v32 }
 0x17b   : > { %v1166_v35 = vpack.c.bf16 %v1165_v34, %v1164_v33 }
 0x17d   : > { %5383 = vmatmul.mubr.msk.bf16.vlgmr.msra.gmra.mrb[0].mxu1 %vm1122_vm1, %v1166_v35 }
 0x17e   : > { %5388 = vmatprep.mubr.msk.bf16.mxu1 %vm5722_vm2, %v5721_v17 }
 0x250   : > { %v1227_v37 = vpop.f32.mrb[0].mxu1 }
 0x251   : > { %v6020_v38 = vadd.f32 %v5191_v36, %v1227_v37  ;;  %v5384_v39 = vpop.f32.mrb[1].mxu1 }
 0x252   : > { %v1230_v40 = vpop.f32.mrb[2].mxu1 }
 0x253   : > { %1260 = vrot.lane.b32.xlu1 %v6020_v38, %s5723_s9  ;;  %1254 = vrot.lane.b32.xlu0 %v6020_v38, %s5724_s5  ;;  %v5385_v41 = vpop.f32.mrb[3].mxu1  ;;  %v6026_v42 = vadd.f32 %v5191_v36, %v1230_v40 }
 0x257   : > { %1266 = vrot.lane.b32.xlu0 %v6020_v38, %s5725_s25  ;;  %1256 = vrot.lane.b32.xlu1 %v6026_v42, %s5724_s5 }
 0x25b   : > { %1272 = vrot.lane.b32.xlu0 %v6020_v38, %s5726_s27  ;;  %1262 = vrot.lane.b32.xlu1 %v6026_v42, %s5723_s9 }
 0x25f   : > { %1236 = vrot.lane.b32.xlu0 %v6020_v38, %s5727_s24  ;;  %1268 = vrot.lane.b32.xlu1 %v6026_v42, %s5725_s25 }
 0x263   : > { %1242 = vrot.lane.b32.xlu0 %v6020_v38, %s5728_s26  ;;  %1274 = vrot.lane.b32.xlu1 %v6026_v42, %s5726_s27 }
 0x267   : > { %1248 = vrot.lane.b32.xlu0 %v6020_v38, %s5729_s10  ;;  %1238 = vrot.lane.b32.xlu1 %v6026_v42, %s5727_s24 }
 0x26b   : > { %1244 = vrot.lane.b32.xlu1 %v6026_v42, %s5728_s26 }
 0x26f   : > { %1250 = vrot.lane.b32.xlu1 %v6026_v42, %s5729_s10 }
 0x2c5   : > { %v1261_v46 = vpop.permute.xlu1 %1260  ;;  %v1255_v47 = vpop.permute.xlu0 %1254 }
 0x2c9   : > { %v1267_v52 = vpop.permute.xlu0 %1266  ;;  %v1257_v53 = vpop.permute.xlu1 %1256 }
 0x2ca   : > { %v1334_v56 = vcombine.low %v1255_v47, %v1267_v52  ;;  %v1335_v57 = vcombine.high %v1255_v47, %v1267_v52 }
 0x2cc   : > { %v1342_v63 = vrot.slane %v1334_v56, %v6052_v55  ;;  %v1349_v0 = vrot.slane %v1335_v57, %v6052_v55 }
 0x2cd   : > { %v1273_v58 = vpop.permute.xlu0 %1272  ;;  %v1263_v59 = vpop.permute.xlu1 %1262 }
 0x2ce   : > { %v1350_v60 = vcombine.low %v1261_v46, %v1273_v58  ;;  %v1351_v61 = vcombine.high %v1261_v46, %v1273_v58 }
 0x2d0   : > { %v1358_v1 = vrot.slane %v1350_v60, %v6052_v55  ;;  %v1365_v2 = vrot.slane %v1351_v61, %v6052_v55 }
 0x2d1   : > { %v1237_v3 = vpop.permute.xlu0 %1236  ;;  %v1269_v4 = vpop.permute.xlu1 %1268 }
 0x2d2   : > { %v1398_v5 = vcombine.low %v1342_v63, %v1358_v1  ;;  %v1399_v6 = vcombine.high %v1342_v63, %v1358_v1  ;;  %v1414_v7 = vcombine.low %v1349_v0, %v1365_v2  ;;  %v1415_v8 = vcombine.high %v1349_v0, %v1365_v2 }
 0x2d3   : > { %v1538_v9 = vcombine.low %v1257_v53, %v1269_v4  ;;  %v1539_v10 = vcombine.high %v1257_v53, %v1269_v4 }
 0x2d4   : > { %v1406_v11 = vrot.slane %v1398_v5, %v6054_v62  ;;  %v1413_v12 = vrot.slane %v1399_v6, %v6054_v62  ;;  %v1422_v13 = vrot.slane %v1414_v7, %v6054_v62  ;;  %v1429_v14 = vrot.slane %v1415_v8, %v6054_v62 }
 0x2d5   : > { %v1243_v15 = vpop.permute.xlu0 %1242  ;;  %v1275_v16 = vpop.permute.xlu1 %1274  ;;  %v1546_v24 = vrot.slane %v1538_v9, %v6052_v55  ;;  %v1553_v25 = vrot.slane %v1539_v10, %v6052_v55 }
 0x2d6   : > { %v5196_v18 = vcombine.low %v1406_v11, %v1413_v12  ;;  %v5198_v19 = vcombine.high %v1406_v11, %v1413_v12  ;;  %v5200_v20 = vcombine.low %v1422_v13, %v1429_v14  ;;  %v5202_v21 = vcombine.high %v1422_v13, %v1429_v14 }
 0x2d7   : > { %v1554_v22 = vcombine.low %v1263_v59, %v1275_v16  ;;  %v1555_v23 = vcombine.high %v1263_v59, %v1275_v16  ;;  %v1302_v26 = vcombine.low %v6020_v38, %v1243_v15  ;;  %v1303_v27 = vcombine.high %v6020_v38, %v1243_v15 }
 0x2d8   : > { %v6069_v28 = vrot.slane %v5196_v18, %v6052_v55  ;;  %v6072_v29 = vrot.slane %v5198_v19, %v6052_v55  ;;  %v6077_v34 = vrot.slane %v5200_v20, %v6052_v55  ;;  %v6080_v35 = vrot.slane %v5202_v21, %v6052_v55 }
 0x2d9   : > { %v1562_v30 = vrot.slane %v1554_v22, %v6052_v55  ;;  %v1569_v31 = vrot.slane %v1555_v23, %v6052_v55  ;;  %v1249_v32 = vpop.permute.xlu0 %1248  ;;  %v1239_v33 = vpop.permute.xlu1 %1238  ;;  %v1310_v44 = vrot.slane %v1302_v26, %v6052_v55  ;;  %v1317_v45 = vrot.slane %v1303_v27, %v6052_v55 }
 0x2da   : > { %v1318_v36 = vcombine.low %v1237_v3, %v1249_v32  ;;  %v1319_v37 = vcombine.high %v1237_v3, %v1249_v32  ;;  %v1790_v4 = vcombine.low %v6069_v28, %v6072_v29  ;;  %v1822_v5 = vcombine.low %v6077_v34, %v6080_v35 }
 0x2db   : > { %v1602_v39 = vcombine.low %v1546_v24, %v1562_v30  ;;  %v1603_v40 = vcombine.high %v1546_v24, %v1562_v30  ;;  %v1618_v41 = vcombine.low %v1553_v25, %v1569_v31  ;;  %v1619_v43 = vcombine.high %v1553_v25, %v1569_v31 }
 0x2dc   : > { %v1326_v46 = vrot.slane %v1318_v36, %v6052_v55  ;;  %v1333_v47 = vrot.slane %v1319_v37, %v6052_v55  ;;  %v1830_v36 = vrot.slane %v1822_v5, %v6054_v62 }
 0x2dd   : > { %v1610_v48 = vrot.slane %v1602_v39, %v6054_v62  ;;  %v1617_v49 = vrot.slane %v1603_v40, %v6054_v62  ;;  %v1626_v50 = vrot.slane %v1618_v41, %v6054_v62  ;;  %v1633_v51 = vrot.slane %v1619_v43, %v6054_v62  ;;  %v1245_v52 = vpop.permute.xlu1 %1244 }
 0x2de   : > { %v1366_v53 = vcombine.low %v1310_v44, %v1326_v46  ;;  %v1367_v54 = vcombine.high %v1310_v44, %v1326_v46  ;;  %v1382_v56 = vcombine.low %v1317_v45, %v1333_v47  ;;  %v1383_v57 = vcombine.high %v1317_v45, %v1333_v47 }
 0x2df   : > { %v5204_v58 = vcombine.low %v1610_v48, %v1617_v49  ;;  %v5206_v59 = vcombine.high %v1610_v48, %v1617_v49  ;;  %v5208_v60 = vcombine.low %v1626_v50, %v1633_v51  ;;  %v5210_v61 = vcombine.high %v1626_v50, %v1633_v51 }
 0x2e0   : > { %v1374_v63 = vrot.slane %v1366_v53, %v6054_v62  ;;  %v1381_v0 = vrot.slane %v1367_v54, %v6054_v62  ;;  %v1390_v1 = vrot.slane %v1382_v56, %v6054_v62  ;;  %v1397_v2 = vrot.slane %v1383_v57, %v6054_v62 }
 0x2e1   : > { %v1251_v3 = vpop.permute.xlu1 %1250  ;;  %v1506_v10 = vcombine.low %v6026_v42, %v1245_v52  ;;  %v1507_v11 = vcombine.high %v6026_v42, %v1245_v52  ;;  %v6101_v14 = vrot.slane %v5204_v58, %v6052_v55  ;;  %v6104_v15 = vrot.slane %v5206_v59, %v6052_v55 }
 0x2e2   : > { %v5195_v6 = vcombine.low %v1374_v63, %v1381_v0  ;;  %v5197_v7 = vcombine.high %v1374_v63, %v1381_v0  ;;  %v5199_v8 = vcombine.low %v1390_v1, %v1397_v2  ;;  %v5201_v9 = vcombine.high %v1390_v1, %v1397_v2 }
 0x2e3   : > { %v1522_v12 = vcombine.low %v1239_v33, %v1251_v3  ;;  %v1523_v13 = vcombine.high %v1239_v33, %v1251_v3  ;;  %v6107_v16 = vrot.slane %v5208_v60, %v6052_v55  ;;  %v6110_v18 = vrot.slane %v5210_v61, %v6052_v55 }
 0x2e4   : > { %v1514_v19 = vrot.slane %v1506_v10, %v6052_v55  ;;  %v1521_v20 = vrot.slane %v1507_v11, %v6052_v55  ;;  %v6117_v23 = vrot.slane %v5195_v6, %v6052_v55  ;;  %v6120_v24 = vrot.slane %v5197_v7, %v6052_v55 }
 0x2e5   : > { %v1530_v21 = vrot.slane %v1522_v12, %v6052_v55  ;;  %v1537_v22 = vrot.slane %v1523_v13, %v6052_v55  ;;  %v6123_v25 = vrot.slane %v5199_v8, %v6052_v55  ;;  %v6126_v26 = vrot.slane %v5201_v9, %v6052_v55 }
 0x2e6   : > { %v1798_v33 = vrot.slane %v1790_v4, %v6054_v62  ;;  %v1774_v43 = vcombine.low %v6117_v23, %v6120_v24  ;;  %v1926_v45 = vcombine.low %v6101_v14, %v6104_v15  ;;  %v1958_v46 = vcombine.low %v6107_v16, %v6110_v18 }
 0x2e7   : > { %v1570_v27 = vcombine.low %v1514_v19, %v1530_v21  ;;  %v1571_v30 = vcombine.high %v1514_v19, %v1530_v21  ;;  %v1586_v31 = vcombine.low %v1521_v20, %v1537_v22  ;;  %v1587_v32 = vcombine.high %v1521_v20, %v1537_v22 }
 0x2e8   : > { %v1806_v44 = vcombine.low %v6123_v25, %v6126_v26  ;;  %v1842_v51 = vcombine.low %v1798_v33, %v1830_v36  ;;  %v1934_v52 = vrot.slane %v1926_v45, %v6054_v62  ;;  %v1966_v53 = vrot.slane %v1958_v46, %v6054_v62 }
 0x2e9   : > { %v1578_v37 = vrot.slane %v1570_v27, %v6054_v62  ;;  %v1585_v39 = vrot.slane %v1571_v30, %v6054_v62  ;;  %v1594_v40 = vrot.slane %v1586_v31, %v6054_v62  ;;  %v1601_v41 = vrot.slane %v1587_v32, %v6054_v62 }
 0x2ea   : > { %v1843_v54 = vcombine.high %v1798_v33, %v1830_v36  ;;  %v1978_v60 = vcombine.low %v1934_v52, %v1966_v53  ;;  %v1979_v61 = vcombine.high %v1934_v52, %v1966_v53  ;;  %v1791_v63 = vcombine.high %v6069_v28, %v6072_v29 }
 0x2eb   : > { %v5203_v47 = vcombine.low %v1578_v37, %v1585_v39  ;;  %v5205_v48 = vcombine.high %v1578_v37, %v1585_v39  ;;  %v5207_v49 = vcombine.low %v1594_v40, %v1601_v41  ;;  %v5209_v50 = vcombine.high %v1594_v40, %v1601_v41 }
 0x2ec   : > { %v1823_v0 = vcombine.high %v6077_v34, %v6080_v35  ;;  %v1782_v3 = vrot.slane %v1774_v43, %v6054_v62  ;;  %v1814_v4 = vrot.slane %v1806_v44, %v6054_v62  ;;  %v2124_v5 = vpack.c.bf16 %v1978_v60, %v1842_v51 }
 0x2ed   : > { %v1854_v56 = vrot.slane %v5203_v47, %v6052_v55  ;;  %v1870_v57 = vrot.slane %v5205_v48, %v6052_v55  ;;  %v1886_v58 = vrot.slane %v5207_v49, %v6052_v55  ;;  %v1902_v59 = vrot.slane %v5209_v50, %v6052_v55  ;;  %v2118_v50 = vld [vmem:[%s6839_s23] sm:$0xff] }
 0x2ee   : > { %v2125_v6 = vpack.c.bf16 %v1979_v61, %v1843_v54  ;;  %v1805_v9 = vrot.slane %v1791_v63, %v6054_v62  ;;  %v2133_v28 = vsel %vm2128_vm3, %v2124_v5, 0  ;;  %v1837_v34 = vrot.slane %v1823_v0, %v6054_v62 }
 0x2ef   : > { %v1910_v1 = vcombine.low %v1854_v56, %v1870_v57  ;;  %v1942_v2 = vcombine.low %v1886_v58, %v1902_v59  ;;  %v1927_v35 = vcombine.high %v6101_v14, %v6104_v15  ;;  %5387 = vmatpush3.bf16.xpose.msra.mxu1 %v2133_v28  ;;  %v1959_v12 = vcombine.high %v6107_v16, %v6110_v18 }
 0x2f0   : > { %v2180_v29 = vsel %vm2128_vm3, %v2125_v6, 0  ;;  %5398 = vmatprep.subr.bf16.mxu1 %v5721_v17  ;;  %v1838_v13 = vcombine.low %v1782_v3, %v1814_v4  ;;  %v1839_v19 = vcombine.high %v1782_v3, %v1814_v4  ;;  %v1911_v21 = vcombine.high %v1854_v56, %v1870_v57 }
 0x2f1   : > { %v1918_v7 = vrot.slane %v1910_v1, %v6054_v62  ;;  %v1950_v8 = vrot.slane %v1942_v2, %v6054_v62  ;;  %5393 = vmatpush3.bf16.xpose.msra.mxu0 %v2180_v29  ;;  %v1941_v20 = vrot.slane %v1927_v35, %v6054_v62  ;;  %v1943_v22 = vcombine.high %v1886_v58, %v1902_v59  ;;  %v2119_v58 = vld [vmem:[%s6839_s23 + $0x8] sm:$0xff] }
 0x2f2   : > { %5404 = vmatprep.subr.bf16.mxu0 %v5721_v17  ;;  %v1973_v27 = vrot.slane %v1959_v12, %v6054_v62  ;;  %v1775_v14 = vcombine.high %v6117_v23, %v6120_v24  ;;  %v1807_v15 = vcombine.high %v6123_v25, %v6126_v26  ;;  %v1844_v18 = vcombine.low %v1805_v9, %v1837_v34 }
 0x2f3   : > { %v1974_v10 = vcombine.low %v1918_v7, %v1950_v8  ;;  %v1975_v11 = vcombine.high %v1918_v7, %v1950_v8  ;;  %v1845_v32 = vcombine.high %v1805_v9, %v1837_v34  ;;  %v1925_v36 = vrot.slane %v1911_v21, %v6054_v62 }
 0x2f4   : > { %v1980_v31 = vcombine.low %v1941_v20, %v1973_v27  ;;  %v1981_v33 = vcombine.high %v1941_v20, %v1973_v27  ;;  %v1957_v37 = vrot.slane %v1943_v22, %v6054_v62  ;;  %v1789_v23 = vrot.slane %v1775_v14, %v6054_v62 }
 0x2f5   : > { %v2120_v30 = vpack.c.bf16 %v1974_v10, %v1838_v13  ;;  %v2121_v16 = vpack.c.bf16 %v1975_v11, %v1839_v19  ;;  %v1821_v24 = vrot.slane %v1807_v15, %v6054_v62 }
 0x2f6   : > { %v2126_v39 = vpack.c.bf16 %v1980_v31, %v1844_v18  ;;  %v2127_v40 = vpack.c.bf16 %v1981_v33, %v1845_v32  ;;  %v1976_v41 = vcombine.low %v1925_v36, %v1957_v37  ;;  %v1977_v43 = vcombine.high %v1925_v36, %v1957_v37 }
 0x2f7   : > { %5389 = vmatmul.mubr.msk.bf16.vlgmr.msra.gmra.mrb[4].mxu1 %vm2128_vm3, %v2120_v30  ;;  %v1840_v44 = vcombine.low %v1789_v23, %v1821_v24  ;;  %v1841_v45 = vcombine.high %v1789_v23, %v1821_v24 }
 0x2f8   : > { %5395 = vmatmul.mubr.msk.bf16.vlgmr.msra.gmra.mrb[0].mxu0 %vm2128_vm3, %v2121_v16  ;;  %v2227_v25 = vsel %vm2128_vm3, %v2126_v39, 0  ;;  %v2274_v26 = vsel %vm2128_vm3, %v2127_v40, 0  ;;  %5400 = vmatprep.mubr.msk.bf16.mxu1 %vm5722_vm2, %v5721_v17 }
 0x2f9   : > { %5406 = vmatprep.mubr.msk.bf16.mxu0 %vm5722_vm2, %v5721_v17  ;;  %5399 = vmatpush3.bf16.xpose.msra.mxu1 %v2227_v25  ;;  %v2122_v46 = vpack.c.bf16 %v1976_v41, %v1840_v44  ;;  %v2123_v47 = vpack.c.bf16 %v1977_v43, %v1841_v45 }
 0x2fa   : > { %5405 = vmatpush3.bf16.xpose.msra.mxu0 %v2274_v26  ;;  %5410 = vmatprep.subr.bf16.mxu1 %v5721_v17 }
 0x2fb   : > { %5416 = vmatprep.subr.bf16.mxu0 %v5721_v17 }
 0x300   : > { %5401 = vmatmul.mubr.msk.bf16.vlgmr.msra.gmra.mrb[8].mxu1 %vm2128_vm3, %v2122_v46 }
 0x301   : > { %5407 = vmatmul.mubr.msk.bf16.vlgmr.msra.gmra.mrb[4].mxu0 %vm2128_vm3, %v2123_v47  ;;  %5412 = vmatprep.mubr.msk.bf16.mxu1 %vm5722_vm2, %v5721_v17 }
 0x302   : > { %5418 = vmatprep.mubr.msk.bf16.mxu0 %vm5722_vm2, %v5721_v17 }
 0x3ca   : > { %v2169_v48 = vpop.f32.mrb[4].mxu1 }
 0x3cb   : > { %v2216_v49 = vpop.f32.mrb[0].mxu0  ;;  %v2317_v51 = vmul.f32 0.35355338, %v2169_v48  ;;  %v5390_v53 = vpop.f32.mrb[5].mxu1 }
 0x3cc   : > { %v2319_v52 = vmul.f32 0.35355338, %v2216_v49  ;;  %v5396_v54 = vpop.f32.mrb[1].mxu0  ;;  %v2172_v56 = vpop.f32.mrb[6].mxu1 }
 0x3cd   : > { %v2219_v57 = vpop.f32.mrb[2].mxu0  ;;  %v2318_v59 = vmul.f32 0.35355338, %v2172_v56  ;;  %v5391_v60 = vpop.f32.mrb[7].mxu1  ;;  %v2325_v63 = vadd.f32 %v2317_v51, %v2118_v50 }
 0x3ce   : > { %v5397_v61 = vpop.f32.mrb[3].mxu0  ;;  %v2320_v0 = vmul.f32 0.35355338, %v2219_v57  ;;  %v2327_v3 = vadd.f32 %v2319_v52, %v2118_v50 }
 0x3cf   : > { %v2334_v1 = vsel %vm2333_vm4, %v2325_v63, -inf  ;;  %v2326_v2 = vadd.f32 %v2318_v59, %v2119_v58 }
 0x3d0   : > { %2335 = vmax.xlane.f32.xlu0 %v2334_v1  ;;  %v2340_v7 = vsel %vm2333_vm4, %v2327_v3, -inf  ;;  %v2328_v8 = vadd.f32 %v2320_v0, %v2119_v58 }
 0x3d1   : > { %v2337_v4 = vsel %vm2333_vm4, %v2326_v2, -inf }
 0x3d2   : > { %2338 = vmax.xlane.f32.xlu1 %v2337_v4  ;;  %v2343_v19 = vsel %vm2333_vm4, %v2328_v8, -inf }
 0x3d3   : > { %v2263_v6 = vpop.f32.mrb[8].mxu1 }
 0x3d4   : > { %v2310_v5 = vpop.f32.mrb[4].mxu0  ;;  %v2321_v9 = vmul.f32 0.35355338, %v2263_v6  ;;  %v5402_v28 = vpop.f32.mrb[9].mxu1  ;;  %2341 = vmax.xlane.f32.xlu0 %v2340_v7 }
 0x3d5   : > { %v5408_v29 = vpop.f32.mrb[5].mxu0  ;;  %v2266_v35 = vpop.f32.mrb[10].mxu1  ;;  %v2323_v13 = vmul.f32 0.35355338, %v2310_v5 }
 0x3d6   : > { %v2313_v34 = vpop.f32.mrb[6].mxu0  ;;  %v5403_v11 = vpop.f32.mrb[11].mxu1  ;;  %v2329_v20 = vadd.f32 %v2321_v9, %v2118_v50  ;;  %v2322_v15 = vmul.f32 0.35355338, %v2266_v35 }
 0x3d7   : > { %v2324_v10 = vmul.f32 0.35355338, %v2313_v34  ;;  %v5409_v12 = vpop.f32.mrb[7].mxu0  ;;  %v2331_v27 = vadd.f32 %v2323_v13, %v2118_v50 }
 0x3d8   : > { %2344 = vmax.xlane.f32.xlu0 %v2343_v19  ;;  %v2346_v22 = vsel %vm2333_vm4, %v2329_v20, -inf  ;;  %v2330_v30 = vadd.f32 %v2322_v15, %v2119_v58 }
 0x3d9   : > { %v6202_v21 = vadd.f32 %v2324_v10, %v2119_v58  ;;  %v2352_v14 = vsel %vm2333_vm4, %v2331_v27, -inf }
 0x3da   : > { %v2349_v16 = vsel %vm2333_vm4, %v2330_v30, -inf }
 0x3db   : > { %v2355_v18 = vsel %vm2333_vm4, %v6202_v21, -inf }
 0x3dc   : > { %2347 = vmax.xlane.f32.xlu0 %v2346_v22 }
 0x3e0   : > { %2353 = vmax.xlane.f32.xlu0 %v2352_v14 }
 0x3e3   : > { %1280 = vrot.lane.b32.xlu1 %v6026_v42, %s5732_s1 }
 0x3e7   : > { %1284 = vrot.lane.b32.xlu1 %v6020_v38, %s5733_s6 }
 0x3eb   : > { %1286 = vrot.lane.b32.xlu1 %v6026_v42, %s5733_s6  ;;  %s6840_s6 = sld [smem:[#allocation15_spill]] }
 0x3f6   : > { %1278 = vrot.lane.b32.xlu0 %v6020_v38, %s5732_s1  ;;  %s6842_s1 = sld [smem:[#allocation7_spill]] }
 0x3fa   : > { %1290 = vrot.lane.b32.xlu0 %v6020_v38, %s5734_s30 }
 0x3fe   : > { %1296 = vrot.lane.b32.xlu0 %v6020_v38, %s5735_s12 }
 0x40f   : > { %2350 = vmax.xlane.f32.xlu1 %v2349_v16 }
 0x413   : > { %2356 = vmax.xlane.f32.xlu1 %v2355_v18 }
 0x424   : > { %1292 = vrot.lane.b32.xlu1 %v6026_v42, %s5734_s30  ;;  %s6841_s30 = scalar_lea.vmem %s6840_s6, %s5890_s8 }
 0x45d   : > { %v2336_v31 = vpop.xlane.xlu0 %2335 }
 0x45e   : > { %v2358_v32 = vsub.f32 %v2325_v63, %v2336_v31 }
 0x45f   : > { %v2339_v33 = vpop.xlane.xlu1 %2338 }
 0x460   : > { %v2366_v36 = vmul.f32 1.442695, %v2358_v32  ;;  %v2359_v37 = vsub.f32 %v2326_v2, %v2339_v33 }
 0x461   : > { %v2342_v39 = vpop.xlane.xlu0 %2341 }
 0x462   : > { %5627 = vpow2.f32 %v2366_v36  ;;  %v2368_v40 = vmul.f32 1.442695, %v2359_v37  ;;  %v2360_v38 = vsub.f32 %v2327_v3, %v2342_v39 }
 0x463   : > { %v1281_v61 = vpop.permute.xlu1 %1280 }
 0x464   : > { %5629 = vpow2.f32 %v2368_v40  ;;  %v2370_v23 = vmul.f32 1.442695, %v2360_v38 }
 0x465   : > { %v2345_v24 = vpop.xlane.xlu0 %2344 }
 0x466   : > { %5631 = vpow2.f32 %v2370_v23  ;;  %v2361_v25 = vsub.f32 %v2328_v8, %v2345_v24 }
 0x467   : > { %v1285_v63 = vpop.permute.xlu1 %1284 }
 0x468   : > { %v2372_v26 = vmul.f32 1.442695, %v2361_v25 }
 0x469   : > { %v2348_v41 = vpop.xlane.xlu0 %2347 }
 0x46a   : > { %5633 = vpow2.f32 %v2372_v26  ;;  %v2362_v43 = vsub.f32 %v2329_v20, %v2348_v41 }
 0x46b   : > { %v1287_v0 = vpop.permute.xlu1 %1286 }
 0x46c   : > { %v6217_v44 = vpop.eup %5627  ;;  %v2374_v45 = vmul.f32 1.442695, %v2362_v43 }
 0x46d   : > { %v2354_v46 = vpop.xlane.xlu0 %2353  ;;  %v2382_v47 = vsel %vm2333_vm4, %v6217_v44, 0.0 }
 0x46e   : > { %v6221_v48 = vpop.eup %5629  ;;  %5635 = vpow2.f32 %v2374_v45  ;;  %v2364_v49 = vsub.f32 %v2331_v27, %v2354_v46  ;;  %2383 = vadd.xlane.f32.xlu0 %v2382_v47 }
 0x46f   : > { %v2385_v50 = vsel %vm2333_vm4, %v6221_v48, 0.0 }
 0x470   : > { %v6225_v51 = vpop.eup %5631  ;;  %v2378_v52 = vmul.f32 1.442695, %v2364_v49  ;;  %2386 = vadd.xlane.f32.xlu1 %v2385_v50 }
 0x471   : > { %v2388_v53 = vsel %vm2333_vm4, %v6225_v51, 0.0  ;;  %v1279_v28 = vpop.permute.xlu0 %1278 }
 0x472   : > { %5637 = vpow2.f32 %v2378_v52  ;;  %2389 = vadd.xlane.f32.xlu0 %v2388_v53 }
 0x474   : > { %v6229_v54 = vpop.eup %5633 }
 0x475   : > { %v2391_v56 = vsel %vm2333_vm4, %v6229_v54, 0.0  ;;  %v1291_v29 = vpop.permute.xlu0 %1290 }
 0x476   : > { %2392 = vadd.xlane.f32.xlu1 %v2391_v56  ;;  %v1438_v10 = vcombine.low %v1279_v28, %v1291_v29  ;;  %v1439_v12 = vcombine.high %v1279_v28, %v1291_v29 }
 0x478   : > { %v6233_v57 = vpop.eup %5635  ;;  %v1446_v19 = vrot.slane %v1438_v10, %v6052_v55  ;;  %v1453_v22 = vrot.slane %v1439_v12, %v6052_v55 }
 0x479   : > { %v2394_v58 = vsel %vm2333_vm4, %v6233_v57, 0.0  ;;  %v1297_v34 = vpop.permute.xlu0 %1296 }
 0x47a   : > { %2395 = vadd.xlane.f32.xlu0 %v2394_v58  ;;  %v1454_v35 = vcombine.low %v1285_v63, %v1297_v34  ;;  %v1455_v11 = vcombine.high %v1285_v63, %v1297_v34 }
 0x47c   : > { %v6237_v59 = vpop.eup %5637  ;;  %v1462_v13 = vrot.slane %v1454_v35, %v6052_v55  ;;  %v1469_v20 = vrot.slane %v1455_v11, %v6052_v55 }
 0x47d   : > { %v2400_v60 = vsel %vm2333_vm4, %v6237_v59, 0.0 }
 0x47e   : > { %2401 = vadd.xlane.f32.xlu0 %v2400_v60  ;;  %v1470_v27 = vcombine.low %v1446_v19, %v1462_v13  ;;  %v1471_v14 = vcombine.high %v1446_v19, %v1462_v13  ;;  %v1486_v15 = vcombine.low %v1453_v22, %v1469_v20 }
 0x480   : > { %v1478_v18 = vrot.slane %v1470_v27, %v6054_v62  ;;  %v1485_v31 = vrot.slane %v1471_v14, %v6054_v62  ;;  %v1494_v32 = vrot.slane %v1486_v15, %v6054_v62 }
 0x482   : > { %v1982_v39 = vcombine.low %v1478_v18, %v1485_v31  ;;  %v5211_v23 = vcombine.high %v1478_v18, %v1485_v31 }
 0x484   : > { %v1989_v45 = vrot.slane %v1982_v39, %v6052_v55  ;;  %v1997_v53 = vrot.slane %v5211_v23, %v6052_v55 }
 0x487   : > { %1298 = vrot.lane.b32.xlu1 %v6026_v42, %s5735_s12 }
 0x49c   : > { %v2351_v1 = vpop.xlane.xlu1 %2350 }
 0x49d   : > { %v2363_v2 = vsub.f32 %v2330_v30, %v2351_v1  ;;  %v1487_v30 = vcombine.high %v1453_v22, %v1469_v20 }
 0x49f   : > { %v2376_v3 = vmul.f32 1.442695, %v2363_v2  ;;  %v1501_v33 = vrot.slane %v1487_v30, %v6054_v62 }
 0x4a0   : > { %v2357_v4 = vpop.xlane.xlu1 %2356 }
 0x4a1   : > { %5639 = vpow2.f32 %v2376_v3  ;;  %v2365_v5 = vsub.f32 %v6202_v21, %v2357_v4  ;;  %v1998_v24 = vcombine.low %v1494_v32, %v1501_v33  ;;  %v5212_v25 = vcombine.high %v1494_v32, %v1501_v33 }
 0x4a3   : > { %v2380_v6 = vmul.f32 1.442695, %v2365_v5  ;;  %v2005_v56 = vrot.slane %v1998_v24, %v6052_v55  ;;  %v2013_v58 = vrot.slane %v5212_v25, %v6052_v55  ;;  %v2014_v5 = vcombine.low %v1989_v45, %v1997_v53 }
 0x4a4   : > { %v1293_v21 = vpop.permute.xlu1 %1292 }
 0x4a5   : > { %5641 = vpow2.f32 %v2380_v6  ;;  %v1642_v40 = vcombine.low %v1281_v61, %v1293_v21  ;;  %v1643_v38 = vcombine.high %v1281_v61, %v1293_v21  ;;  %v2030_v6 = vcombine.low %v2005_v56, %v2013_v58 }
 0x4a6   : > { %v2022_v20 = vrot.slane %v2014_v5, %v6054_v62 }
 0x4a7   : > { %v1650_v46 = vrot.slane %v1642_v40, %v6052_v55  ;;  %v1657_v47 = vrot.slane %v1643_v38, %v6052_v55  ;;  %v2038_v21 = vrot.slane %v2030_v6, %v6054_v62 }
 0x4a9   : > { %v2046_v40 = vcombine.low %v2022_v20, %v2038_v21  ;;  %v2047_v38 = vcombine.high %v2022_v20, %v2038_v21 }
 0x4ab   : > { %v6244_v7 = vpop.eup %5639 }
 0x4ac   : > { %v2397_v8 = vsel %vm2333_vm4, %v6244_v7, 0.0 }
 0x4ad   : > { %2398 = vadd.xlane.f32.xlu1 %v2397_v8  ;;  %v2015_v8 = vcombine.high %v1989_v45, %v1997_v53 }
 0x4af   : > { %v6248_v9 = vpop.eup %5641  ;;  %v2029_v22 = vrot.slane %v2015_v8, %v6054_v62 }
 0x4b0   : > { %v2403_v42 = vsel %vm2333_vm4, %v6248_v9, 0.0 }
 0x4b1   : > { %2404 = vadd.xlane.f32.xlu0 %v2403_v42  ;;  %v2031_v42 = vcombine.high %v2005_v56, %v2013_v58 }
 0x4b3   : > { %v2045_v27 = vrot.slane %v2031_v42, %v6054_v62 }
 0x4b5   : > { %v2048_v25 = vcombine.low %v2029_v22, %v2045_v27  ;;  %v2049_v45 = vcombine.high %v2029_v22, %v2045_v27 }
 0x4fb   : > { %v2384_v37 = vpop.xlane.xlu0 %2383 }
 0x4fc   : > { %5643 = vrcp.f32 %v2384_v37 }
 0x4fd   : > { %v2387_v16 = vpop.xlane.xlu1 %2386 }
 0x4fe   : > { %5645 = vrcp.f32 %v2387_v16 }
 0x4ff   : > { %v2390_v49 = vpop.xlane.xlu0 %2389 }
 0x503   : > { %v2393_v36 = vpop.xlane.xlu1 %2392 }
 0x504   : > { %5647 = vrcp.f32 %v2393_v36 }
 0x505   : > { %5649 = vrcp.f32 %v2390_v49 }
 0x506   : > { %v5644_v19 = vpop.eup %5643 }
 0x507   : > { %v1299_v26 = vpop.permute.xlu1 %1298 }
 0x508   : > { %v1658_v41 = vcombine.low %v1287_v0, %v1299_v26  ;;  %v1659_v43 = vcombine.high %v1287_v0, %v1299_v26  ;;  %v5646_v14 = vpop.eup %5645 }
 0x50a   : > { %v1666_v50 = vrot.slane %v1658_v41, %v6052_v55  ;;  %v1673_v52 = vrot.slane %v1659_v43, %v6052_v55  ;;  %v2415_v41 = vmul.f32 %v5646_v14, %v6221_v48 }
 0x50c   : > { %v1674_v60 = vcombine.low %v1650_v46, %v1666_v50  ;;  %v1675_v61 = vcombine.high %v1650_v46, %v1666_v50  ;;  %v1690_v63 = vcombine.low %v1657_v47, %v1673_v52  ;;  %v1691_v0 = vcombine.high %v1657_v47, %v1673_v52 }
 0x50d   : > { %v2414_v52 = vmul.f32 %v5644_v19, %v6217_v44  ;;  %v2396_v44 = vpop.xlane.xlu0 %2395 }
 0x50e   : > { %v1682_v1 = vrot.slane %v1674_v60, %v6054_v62  ;;  %v1689_v2 = vrot.slane %v1675_v61, %v6054_v62  ;;  %v1698_v3 = vrot.slane %v1690_v63, %v6054_v62  ;;  %v1705_v4 = vrot.slane %v1691_v0, %v6054_v62  ;;  %v5648_v31 = vpop.eup %5647 }
 0x50f   : > { %v5650_v39 = vpop.eup %5649  ;;  %v2417_v43 = vmul.f32 %v5648_v31, %v6229_v54  ;;  %v2422_v58 = vpack.c.bf16 %v2415_v41, %v2414_v52  ;;  %5651 = vrcp.f32 %v2396_v44 }
 0x510   : > { %v2050_v28 = vcombine.low %v1682_v1, %v1689_v2  ;;  %v5213_v29 = vcombine.high %v1682_v1, %v1689_v2  ;;  %v2066_v34 = vcombine.low %v1698_v3, %v1705_v4  ;;  %v5214_v35 = vcombine.high %v1698_v3, %v1705_v4 }
 0x511   : > { %v2416_v53 = vmul.f32 %v5650_v39, %v6225_v51  ;;  %v2402_v48 = vpop.xlane.xlu0 %2401 }
 0x512   : > { %v2057_v10 = vrot.slane %v2050_v28, %v6052_v55  ;;  %v2065_v11 = vrot.slane %v5213_v29, %v6052_v55  ;;  %v2073_v12 = vrot.slane %v2066_v34, %v6052_v55  ;;  %v2081_v13 = vrot.slane %v5214_v35, %v6052_v55  ;;  %v2706_v29 = vld [vmem:[%s5913_s28 + $0x8] sm:$0xf]  ;;  %v2757_v34 = vld [vmem:[%s5913_s28 + $0xc] sm:$0xf] }
 0x513   : > { %v2423_v60 = vpack.c.bf16 %v2417_v43, %v2416_v53  ;;  %v2711_v22 = vsel %vm2613_vm5, %v2706_v29, 0  ;;  %v2762_v27 = vsel %vm2613_vm5, %v2757_v34, 0 }
 0x514   : > { %v2082_v15 = vcombine.low %v2057_v10, %v2065_v11  ;;  %v2098_v30 = vcombine.low %v2073_v12, %v2081_v13  ;;  %v2083_v16 = vcombine.high %v2057_v10, %v2065_v11  ;;  %v2099_v18 = vcombine.high %v2073_v12, %v2081_v13 }
 0x516   : > { %v2090_v32 = vrot.slane %v2082_v15, %v6054_v62  ;;  %v2106_v33 = vrot.slane %v2098_v30, %v6054_v62  ;;  %v2097_v36 = vrot.slane %v2083_v16, %v6054_v62  ;;  %v2113_v37 = vrot.slane %v2099_v18, %v6054_v62 }
 0x518   : > { %v2114_v23 = vcombine.low %v2090_v32, %v2106_v33  ;;  %v2115_v24 = vcombine.high %v2090_v32, %v2106_v33  ;;  %v2116_v26 = vcombine.low %v2097_v36, %v2113_v37  ;;  %v2117_v46 = vcombine.high %v2097_v36, %v2113_v37 }
 0x519   : > { %v5652_v61 = vpop.eup %5651 }
 0x51a   : > { %v2426_v47 = vpack.c.bf16 %v2114_v23, %v2046_v40  ;;  %v2427_v49 = vpack.c.bf16 %v2115_v24, %v2047_v38  ;;  %v2428_v50 = vpack.c.bf16 %v2116_v26, %v2048_v25  ;;  %v2429_v56 = vpack.c.bf16 %v2117_v46, %v2049_v45 }
 0x51b   : > { %v2418_v0 = vmul.f32 %v5652_v61, %v6233_v57  ;;  %v2609_v57 = vld [vmem:[%s5913_s28 + $0x4] sm:$0xf] }
 0x51c   : > { %5411 = vmatpush3.bf16.msra.mxu1 %v2426_v47  ;;  %5417 = vmatpush3.bf16.msra.mxu0 %v2427_v49 }
 0x51d   : > { %5422 = vmatprep.subr.bf16.mxu1 %v5721_v17  ;;  %5428 = vmatprep.subr.bf16.mxu0 %v5721_v17 }
 0x51f   : > { %5413 = vmatmul.mubr.msk.bf16.vlgmr.msra.gmra.mrb[12].mxu1 %vm2333_vm4, %v2422_v58  ;;  %5419 = vmatmul.mubr.msk.bf16.vlgmr.msra.gmra.mrb[8].mxu0 %vm2333_vm4, %v2423_v60  ;;  %v5227_v58 = vld [vmem:[%s6841_s30] ss:$0 sm:$0xff]  ;;  %s6844_s30 = sld [smem:[#allocation16_spill]] }
 0x520   : > { %5423 = vmatpush3.bf16.msra.mxu1 %v2428_v50  ;;  %5429 = vmatpush3.bf16.msra.mxu0 %v2429_v56 }
 0x521   : > { %5424 = vmatprep.mubr.msk.bf16.mxu1 %vm5722_vm2, %v5721_v17  ;;  %5430 = vmatprep.mubr.msk.bf16.mxu0 %vm5722_vm2, %v5721_v17 }
 0x522   : > { %5434 = vmatprep.subr.bf16.mxu1 %v5721_v17  ;;  %5440 = vmatprep.subr.bf16.mxu0 %v5721_v17 }
 0x53a   : > { %v2399_v51 = vpop.xlane.xlu1 %2398 }
 0x53b   : > { %5653 = vrcp.f32 %v2399_v51 }
 0x53c   : > { %5655 = vrcp.f32 %v2402_v48 }
 0x53e   : > { %v2405_v54 = vpop.xlane.xlu0 %2404 }
 0x53f   : > { %5657 = vrcp.f32 %v2405_v54 }
 0x545   : > { %v5654_v63 = vpop.eup %5653 }
 0x546   : > { %v2419_v1 = vmul.f32 %v5654_v63, %v6244_v7  ;;  %v5656_v2 = vpop.eup %5655  ;;  %v2607_v7 = vld [vmem:[%s5913_s28] sm:$0xf]  ;;  %s6843_s28 = scalar_lea.vmem %s6773_s15, %s5890_s8 }
 0x547   : > { %v2420_v5 = vmul.f32 %v5656_v2, %v6237_v59  ;;  %v2615_v59 = vsel %vm2613_vm5, %v2609_v57, 0  ;;  %v5699_v63 = vld [vmem:[#allocation2] sm:$0xff]  ;;  %v5700_v2 = vld [vmem:[#allocation2 + $0x8] sm:$0xff] }
 0x548   : > { %v2424_v3 = vpack.c.bf16 %v2419_v1, %v2418_v0  ;;  %v1118_v57 = vld [vmem:[%s6842_s1] sm:$0xff] }
 0x549   : > { %v5658_v4 = vpop.eup %5657 }
 0x54a   : > { %v2421_v6 = vmul.f32 %v5658_v4, %v6248_v9  ;;  %5425 = vmatmul.mubr.msk.bf16.vlgmr.msra.gmra.mrb[16].mxu1 %vm2333_vm4, %v2424_v3  ;;  %v2662_v9 = vsel %vm2613_vm5, %v2607_v7, 0  ;;  %v1119_v7 = vld [vmem:[%s6842_s1 + $0x8] sm:$0xff] }
 0x54b   : > { %5436 = vmatprep.mubr.msk.bf16.mxu1 %vm5722_vm2, %v5721_v17  ;;  %5435 = vmatpush3.bf16.msra.mxu1 %v2615_v59  ;;  %v2930_v59 = vpack.c.bf16 %v1119_v7, %v1118_v57 }
 0x54c   : > { %v2425_v8 = vpack.c.bf16 %v2421_v6, %v2420_v5  ;;  %5446 = vmatprep.subr.bf16.mxu1 %v5721_v17  ;;  %v5613_v6 = vld [vmem:[%s5939_s29] sm:$0xff]  }
 0x54e   : > { %5431 = vmatmul.mubr.msk.bf16.vlgmr.msra.gmra.mrb[12].mxu0 %vm2333_vm4, %v2425_v8  ;;  %v5614_v8 = vld [vmem:[%s5939_s29 + $0x8] sm:$0xff]   ;;  %s6845_s29 = scalar_lea.vmem %s6844_s30, %s5890_s8 }
 0x54f   : > { %5442 = vmatprep.mubr.msk.bf16.mxu0 %vm5722_vm2, %v5721_v17  ;;  %5441 = vmatpush3.bf16.msra.mxu0 %v2662_v9 }
 0x550   : > { %5452 = vmatprep.subr.bf16.mxu0 %v5721_v17 }
 0x5f2   : > { %v2467_v42 = vpop.f32.mrb[12].mxu1  ;;  %v2511_v28 = vpop.f32.mrb[8].mxu0 }
 0x5f3   : > { %v5414_v35 = vpop.f32.mrb[13].mxu1  ;;  %v5420_v10 = vpop.f32.mrb[9].mxu0 }
 0x5f4   : > { %v2470_v11 = vpop.f32.mrb[14].mxu1  ;;  %v2514_v12 = vpop.f32.mrb[10].mxu0 }
 0x5f5   : > { %v2606_v13 = vpack.c.bf16 %v2470_v11, %v2467_v42  ;;  %v2608_v19 = vpack.c.bf16 %v2514_v12, %v2511_v28  ;;  %v5415_v20 = vpop.f32.mrb[15].mxu1  ;;  %v5421_v21 = vpop.f32.mrb[11].mxu0 }
 0x5f6   : > { %v5616_v20 = vld [vmem:[%s5930_s22 + $0x8] sm:$0xff]   ;;  %v5234_v21 = vld [vmem:[%s6843_s28] ss:$0 sm:$0xff] }
 0x5f7   : > { %5437 = vmatmul.mubr.msk.bf16.vlgmr.msra.gmra.mrb[20].mxu1 %vm2128_vm3, %v2608_v19  ;;  %5443 = vmatmul.mubr.msk.bf16.vlgmr.msra.gmra.mrb[16].mxu0 %vm2128_vm3, %v2606_v13  ;;  %v5615_v19 = vld [vmem:[%s5930_s22] sm:$0xff]   ;;  %s6848_s22 = scalar_lea.vmem %s6771_s13, %s5890_s8 }
 0x5f8   : > { %5447 = vmatpush3.bf16.msra.mxu1 %v2711_v22  ;;  %5453 = vmatpush3.bf16.msra.mxu0 %v2762_v27 }
 0x5f9   : > { %5448 = vmatprep.mubr.msk.bf16.mxu1 %vm5722_vm2, %v5721_v17  ;;  %5454 = vmatprep.mubr.msk.bf16.mxu0 %vm5722_vm2, %v5721_v17 }
 0x5fa   : > { %5466 = vmatprep.subr.bf16.mxu0 %v5721_v17  ;;  %5458 = vmatprep.subr.bf16.mxu1 %v5721_v17 }
 0x61d   : > { %v2555_v14 = vpop.f32.mrb[16].mxu1 }
 0x61e   : > { %v5426_v15 = vpop.f32.mrb[17].mxu1 }
 0x61f   : > { %v2558_v30 = vpop.f32.mrb[18].mxu1 }
 0x620   : > { %v2705_v16 = vpack.c.bf16 %v2558_v30, %v2555_v14  ;;  %v5427_v18 = vpop.f32.mrb[19].mxu1 }
 0x621   : > { %v2599_v31 = vpop.f32.mrb[12].mxu0 }
 0x622   : > { %v5432_v32 = vpop.f32.mrb[13].mxu0  ;;  %5449 = vmatmul.mubr.msk.bf16.vlgmr.msra.gmra.mrb[24].mxu1 %vm2128_vm3, %v2705_v16 }
 0x623   : > { %v2602_v33 = vpop.f32.mrb[14].mxu0  ;;  %5462 = vmatprep.mubr.msk.bf16.mxu1 %vm5722_vm2, %v5721_v17  ;;  %5459 = vmatpush3.bf16.msra.mxu1 %v5615_v19 }
 0x624   : > { %v2756_v36 = vpack.c.bf16 %v2602_v33, %v2599_v31  ;;  %v5433_v37 = vpop.f32.mrb[15].mxu0  ;;  %5460 = vmatprep.subr.bf16.mxu1 %v5721_v17 }
 0x626   : > { %5455 = vmatmul.mubr.msk.bf16.vlgmr.msra.gmra.mrb[20].mxu0 %vm2128_vm3, %v2756_v36 }
 0x627   : > { %5470 = vmatprep.mubr.msk.bf16.mxu0 %vm5722_vm2, %v5721_v17  ;;  %5467 = vmatpush3.bf16.msra.mxu0 %v5613_v6 }
 0x628   : > { %5468 = vmatprep.subr.bf16.mxu0 %v5721_v17  ;;  %5461 = vmatpush3.bf16.msra.mxu1 %v5616_v20 }
 0x629   : > { %5474 = vmatprep.subr.bf16.mxu1 %v5721_v17 }
 0x62b   : > { %5469 = vmatpush3.bf16.msra.mxu0 %v5614_v8 }
 0x62c   : > { %5480 = vmatprep.subr.bf16.mxu0 %v5721_v17 }
 0x62e   : > { %5471 = vmatmul.mubr.msk.bf16.vlgmr.msra.gmra.mrb[24].mxu0 %vm1122_vm1, %v2930_v59 }
 0x62f   : > { %5482 = vmatprep.mubr.msk.bf16.mxu0 %vm5722_vm2, %v5721_v17 }
 0x6ca   : > { %v2651_v39 = vpop.f32.mrb[20].mxu1  ;;  %v2698_v40 = vpop.f32.mrb[16].mxu0 }
 0x6cb   : > { %v2699_v38 = vadd.f32 %v2698_v40, %v2651_v39  ;;  %v5438_v23 = vpop.f32.mrb[21].mxu1  ;;  %v5444_v24 = vpop.f32.mrb[17].mxu0  ;;  %v5228_v40 = vld [vmem:[%s6845_s29] ss:$0 sm:$0xff] }
 0x6cc   : > { %v2654_v25 = vpop.f32.mrb[22].mxu1  ;;  %v2701_v26 = vpop.f32.mrb[18].mxu0 }
 0x6cd   : > { %v2702_v41 = vadd.f32 %v2701_v26, %v2654_v25  ;;  %v5439_v43 = vpop.f32.mrb[23].mxu1  ;;  %v5445_v45 = vpop.f32.mrb[19].mxu0  ;;  %v5229_v26 = vld [vmem:[%s6847_s2] ss:$0 sm:$0xff] }
 0x6f5   : > { %v2747_v46 = vpop.f32.mrb[24].mxu1 }
 0x6f6   : > { %v2754_v47 = vadd.f32 %v2747_v46, %v2699_v38  ;;  %v5450_v49 = vpop.f32.mrb[25].mxu1 }
 0x6f7   : > { %v2750_v50 = vpop.f32.mrb[26].mxu1 }
 0x6f8   : > { %v2755_v52 = vadd.f32 %v2750_v50, %v2702_v41  ;;  %v5451_v53 = vpop.f32.mrb[27].mxu1 }
 0x6f9   : > { %v2798_v56 = vpop.f32.mrb[20].mxu0 }
 0x6fa   : > { %v2805_v60 = vadd.f32 %v2798_v56, %v2754_v47  ;;  %v5456_v44 = vpop.f32.mrb[21].mxu0 }
 0x6fb   : > { %v2801_v48 = vpop.f32.mrb[22].mxu0 }
 0x6fc   : > { %v2814_v51 = vadd.f32 %v5227_v58, %v2805_v60  ;;  %v2806_v54 = vadd.f32 %v2801_v48, %v2755_v52  ;;  %v5457_v61 = vpop.f32.mrb[23].mxu0 }
 0x6fe   : > { %v6337_v0 = vadd.f32 %v5699_v63, %v2814_v51  ;;  %v2815_v1 = vadd.f32 %v5227_v58, %v2806_v54 }
 0x700   : > { %v6339_v3 = vadd.f32 %v5700_v2, %v2815_v1  ;;  %v2820_v4 = vsel %vm1122_vm1, %v6337_v0, 0.0 }
 0x701   : > { %2821 = vadd.xlane.f32.xlu0 %v2820_v4  ;;  %v2991_v22 = vpop.f32.mrb[24].mxu0 }
 0x702   : > { %v2823_v5 = vsel %vm1122_vm1, %v6339_v3, 0.0  ;;  %v6371_v27 = vadd.f32 %v5234_v21, %v2991_v22  ;;  %v5472_v14 = vpop.f32.mrb[25].mxu0 }
 0x703   : > { %2824 = vadd.xlane.f32.xlu1 %v2823_v5  ;;  %v2994_v15 = vpop.f32.mrb[26].mxu0 }
 0x704   : > { %v6373_v30 = vadd.f32 %v5234_v21, %v2994_v15  ;;  %v5473_v16 = vpop.f32.mrb[27].mxu0 }
 0x78e   : > { %v2822_v9 = vpop.xlane.xlu0 %2821 }
 0x78f   : > { %v2826_v42 = vmul.f32 0.03125, %v2822_v9 }
 0x790   : > { %v2825_v28 = vpop.xlane.xlu1 %2824 }
 0x791   : > { %v2828_v29 = vsub.f32 %v6337_v0, %v2826_v42  ;;  %v2827_v34 = vmul.f32 0.03125, %v2825_v28 }
 0x793   : > { %v2829_v35 = vsub.f32 %v6339_v3, %v2827_v34  ;;  %v2830_v10 = vmul.f32 %v2828_v29, %v2828_v29 }
 0x795   : > { %v2832_v11 = vsel %vm1122_vm1, %v2830_v10, 0.0  ;;  %v2831_v12 = vmul.f32 %v2829_v35, %v2829_v35 }
 0x796   : > { %2833 = vadd.xlane.f32.xlu0 %v2832_v11 }
 0x797   : > { %v2835_v13 = vsel %vm1122_vm1, %v2831_v12, 0.0 }
 0x798   : > { %2836 = vadd.xlane.f32.xlu1 %v2835_v13 }
 0x7a9   : > { %3294 = vrot.lane.b32.xlu1 %v6373_v30, %s5727_s24 }
 0x7ac   : > { %3292 = vrot.lane.b32.xlu0 %v6371_v27, %s5727_s24 }
 0x7ad   : > { %3298 = vrot.lane.b32.xlu1 %v6371_v27, %s5728_s26 }
 0x7b0   : > { %3304 = vrot.lane.b32.xlu0 %v6371_v27, %s5729_s10 }
 0x7b1   : > { %3300 = vrot.lane.b32.xlu1 %v6373_v30, %s5728_s26 }
 0x7b5   : > { %3306 = vrot.lane.b32.xlu1 %v6373_v30, %s5729_s10 }
 0x823   : > { %v2834_v18 = vpop.xlane.xlu0 %2833 }
 0x824   : > { %v2838_v31 = vmul.f32 0.03125, %v2834_v18 }
 0x825   : > { %v2837_v32 = vpop.xlane.xlu1 %2836 }
 0x826   : > { %v2840_v33 = vadd.f32 1e-05, %v2838_v31  ;;  %v2839_v36 = vmul.f32 0.03125, %v2837_v32 }
 0x827   : > { %v3293_v50 = vpop.permute.xlu0 %3292 }
 0x828   : > { %5659 = vrsqrt.f32 %v2840_v33  ;;  %v2841_v37 = vadd.f32 1e-05, %v2839_v36 }
 0x829   : > { %v3295_v47 = vpop.permute.xlu1 %3294 }
 0x82a   : > { %5661 = vrsqrt.f32 %v2841_v37 }
 0x82b   : > { %v3305_v53 = vpop.permute.xlu0 %3304 }
 0x82c   : > { %v3350_v44 = vcombine.low %v3293_v50, %v3305_v53  ;;  %v3351_v48 = vcombine.high %v3293_v50, %v3305_v53 }
 0x82d   : > { %v3299_v49 = vpop.permute.xlu1 %3298 }
 0x82e   : > { %v3334_v58 = vcombine.low %v6371_v27, %v3299_v49  ;;  %v3335_v60 = vcombine.high %v6371_v27, %v3299_v49  ;;  %v3358_v4 = vrot.slane %v3350_v44, %v6052_v55  ;;  %v3365_v5 = vrot.slane %v3351_v48, %v6052_v55 }
 0x830   : > { %v3342_v1 = vrot.slane %v3334_v58, %v6052_v55  ;;  %v3349_v2 = vrot.slane %v3335_v60, %v6052_v55 }
 0x831   : > { %v3301_v52 = vpop.permute.xlu1 %3300 }
 0x832   : > { %v5660_v39 = vpop.eup %5659  ;;  %v3470_v51 = vcombine.low %v6373_v30, %v3301_v52  ;;  %v3471_v54 = vcombine.high %v6373_v30, %v3301_v52  ;;  %v3398_v59 = vcombine.low %v3342_v1, %v3358_v4  ;;  %v3399_v9 = vcombine.high %v3342_v1, %v3358_v4 }
 0x833   : > { %v2844_v38 = vmul.f32 %v5660_v39, %v2828_v29  ;;  %v3414_v42 = vcombine.low %v3349_v2, %v3365_v5  ;;  %v3415_v28 = vcombine.high %v3349_v2, %v3365_v5 }
 0x834   : > { %v5662_v23 = vpop.eup %5661  ;;  %v3478_v6 = vrot.slane %v3470_v51, %v6052_v55  ;;  %v3485_v8 = vrot.slane %v3471_v54, %v6052_v55  ;;  %v3406_v11 = vrot.slane %v3398_v59, %v6054_v62  ;;  %v3413_v12 = vrot.slane %v3399_v9, %v6054_v62 }
 0x835   : > { %v2852_v24 = vmul.f32 %v5228_v40, %v2844_v38  ;;  %v2845_v25 = vmul.f32 %v5662_v23, %v2829_v35  ;;  %v3307_v56 = vpop.permute.xlu1 %3306  ;;  %v3422_v13 = vrot.slane %v3414_v42, %v6054_v62  ;;  %v3429_v19 = vrot.slane %v3415_v28, %v6054_v62 }
 0x836   : > { %v3486_v61 = vcombine.low %v3295_v47, %v3307_v56  ;;  %v3487_v63 = vcombine.high %v3295_v47, %v3307_v56  ;;  %v5242_v15 = vcombine.low %v3406_v11, %v3413_v12  ;;  %v5244_v16 = vcombine.high %v3406_v11, %v3413_v12 }
 0x837   : > { %v2853_v41 = vmul.f32 %v5228_v40, %v2845_v25  ;;  %v2860_v43 = vadd.f32 %v5229_v26, %v2852_v24  ;;  %v5246_v18 = vcombine.low %v3422_v13, %v3429_v19  ;;  %v5248_v31 = vcombine.high %v3422_v13, %v3429_v19 }
 0x838   : > { %v3494_v57 = vrot.slane %v3486_v61, %v6052_v55  ;;  %v3501_v7 = vrot.slane %v3487_v63, %v6052_v55  ;;  %v3614_v39 = vrot.slane %v5242_v15, %v6052_v55  ;;  %v3630_v40 = vrot.slane %v5244_v16, %v6052_v55 }
 0x839   : > { %v2861_v45 = vadd.f32 %v5229_v26, %v2853_v41  ;;  %v3646_v38 = vrot.slane %v5246_v18, %v6052_v55  ;;  %v3662_v23 = vrot.slane %v5248_v31, %v6052_v55 }
 0x83a   : > { %v3534_v29 = vcombine.low %v3478_v6, %v3494_v57  ;;  %v3535_v34 = vcombine.high %v3478_v6, %v3494_v57  ;;  %v3550_v35 = vcombine.low %v3485_v8, %v3501_v7  ;;  %v3551_v10 = vcombine.high %v3485_v8, %v3501_v7 }
 0x83b   : > { %v2862_v46 = vpack.c.bf16 %v2861_v45, %v2860_v43  ;;  %v3670_v43 = vcombine.low %v3614_v39, %v3630_v40  ;;  %v3702_v45 = vcombine.low %v3646_v38, %v3662_v23  ;;  %v3671_v63 = vcombine.high %v3614_v39, %v3630_v40 }
 0x83c   : > { %v3542_v20 = vrot.slane %v3534_v29, %v6054_v62  ;;  %v3549_v21 = vrot.slane %v3535_v34, %v6054_v62  ;;  %v3558_v22 = vrot.slane %v3550_v35, %v6054_v62  ;;  %v3565_v14 = vrot.slane %v3551_v10, %v6054_v62  ;;  %v5230_v34 = vld [vmem:[%s6848_s22] ss:$0 sm:$0xff]  ;;  %s6853_s22 = sld [smem:[#allocation21_spill]] }
 0x83d   : > { %5463 = vmatmul.mubr.msk.bf16.vlgmr.msra.gmra.mrb[28].mxu1 %vm1122_vm1, %v2862_v46  ;;  %v3678_v49 = vrot.slane %v3670_v43, %v6054_v62  ;;  %v3710_v50 = vrot.slane %v3702_v45, %v6054_v62  ;;  %v3703_v1 = vcombine.high %v3646_v38, %v3662_v23  ;;  %v3685_v5 = vrot.slane %v3671_v63, %v6054_v62 }
 0x83e   : > { %5476 = vmatprep.mubr.msk.bf16.mxu1 %vm5722_vm2, %v5721_v17  ;;  %v5250_v32 = vcombine.low %v3542_v20, %v3549_v21  ;;  %v5252_v33 = vcombine.high %v3542_v20, %v3549_v21  ;;  %v5254_v36 = vcombine.low %v3558_v22, %v3565_v14  ;;  %v5256_v37 = vcombine.high %v3558_v22, %v3565_v14 }
 0x83f   : > { %v3734_v56 = vcombine.low %v3678_v49, %v3710_v50  ;;  %v3735_v60 = vcombine.high %v3678_v49, %v3710_v50  ;;  %v3717_v6 = vrot.slane %v3703_v1, %v6054_v62 }
 0x840   : > { %v3750_v24 = vrot.slane %v5250_v32, %v6052_v55  ;;  %v3766_v25 = vrot.slane %v5252_v33, %v6052_v55  ;;  %v3782_v26 = vrot.slane %v5254_v36, %v6052_v55  ;;  %v3798_v41 = vrot.slane %v5256_v37, %v6052_v55 }
 0x841   : > { %v3736_v7 = vcombine.low %v3685_v5, %v3717_v6  ;;  %v3737_v59 = vcombine.high %v3685_v5, %v3717_v6 }
 0x842   : > { %v3806_v46 = vcombine.low %v3750_v24, %v3766_v25  ;;  %v3838_v47 = vcombine.low %v3782_v26, %v3798_v41  ;;  %v3807_v2 = vcombine.high %v3750_v24, %v3766_v25  ;;  %v3839_v4 = vcombine.high %v3782_v26, %v3798_v41 }
 0x844   : > { %v3814_v52 = vrot.slane %v3806_v46, %v6054_v62  ;;  %v3846_v53 = vrot.slane %v3838_v47, %v6054_v62  ;;  %v3821_v8 = vrot.slane %v3807_v2, %v6054_v62  ;;  %v3853_v57 = vrot.slane %v3839_v4, %v6054_v62 }
 0x846   : > { %v3870_v58 = vcombine.low %v3814_v52, %v3846_v53  ;;  %v3871_v44 = vcombine.high %v3814_v52, %v3846_v53  ;;  %v3872_v9 = vcombine.low %v3821_v8, %v3853_v57  ;;  %v3873_v42 = vcombine.high %v3821_v8, %v3853_v57 }
 0x848   : > { %v3884_v48 = vpack.c.bf16 %v3870_v58, %v3734_v56  ;;  %v3885_v51 = vpack.c.bf16 %v3871_v44, %v3735_v60  ;;  %v6440_v28 = vpack.c.bf16 %v3872_v9, %v3736_v7  ;;  %v6442_v29 = vpack.c.bf16 %v3873_v42, %v3737_v59 }
 0x84a   : > { %v3892_v54 = vsel %vm2128_vm3, %v3884_v48, 0  ;;  %v3939_v61 = vsel %vm2128_vm3, %v3885_v51, 0 }
 0x84b   : > { %5475 = vmatpush3.bf16.xpose.msra.mxu1 %v3892_v54  ;;  %5481 = vmatpush3.bf16.xpose.msra.mxu0 %v3939_v61 }
 0x84c   : > { %5486 = vmatprep.subr.bf16.mxu1 %v5721_v17  ;;  %5492 = vmatprep.subr.bf16.mxu0 %v5721_v17 }
 0x910   : > { %v2923_v35 = vpop.f32.mrb[28].mxu1 }
 0x911   : > { %v2924_v10 = vadd.f32 %v5230_v34, %v2923_v35  ;;  %v5464_v11 = vpop.f32.mrb[29].mxu1 }
 0x912   : > { %v2926_v12 = vpop.f32.mrb[30].mxu1 }
 0x913   : > { %v2927_v13 = vadd.f32 %v5230_v34, %v2926_v12  ;;  %3000 = vrot.lane.b32.xlu0 %v2924_v10, %s5727_s24  ;;  %v5465_v19 = vpop.f32.mrb[31].mxu1 }
 0x915   : > { %3002 = vrot.lane.b32.xlu1 %v2927_v13, %s5727_s24  ;;  %s6854_s24 = scalar_lea.vmem %s6853_s22, %s5890_s8 }
 0x917   : > { %3006 = vrot.lane.b32.xlu0 %v2924_v10, %s5728_s26 }
 0x919   : > { %3008 = vrot.lane.b32.xlu1 %v2927_v13, %s5728_s26  ;;  %s6855_s26 = sld [smem:[#allocation4_spill]] }
 0x91b   : > { %3012 = vrot.lane.b32.xlu0 %v2924_v10, %s5729_s10 }
 0x91d   : > { %3014 = vrot.lane.b32.xlu1 %v2927_v13, %s5729_s10  ;;  %s6849_s10 = sld [smem:[#allocation9_spill]] }
 0x91f   : > { %p5283_p5 = scmp.ne.s32.totalorder %s6855_s26, 1 }
 0x920   : > { %s6856_s30 = sld [smem:[#allocation24_spill]] (!%p5283_p5)  ;;  %vm5737_vm7 = vmmov (!%p5283_p5), 0  }
 0x985   : > { %v3001_v20 = vpop.permute.xlu0 %3000 }
 0x987   : > { %v3003_v21 = vpop.permute.xlu1 %3002 }
 0x989   : > { %v3007_v22 = vpop.permute.xlu0 %3006 }
 0x98a   : > { %v3018_v14 = vcombine.low %v2924_v10, %v3007_v22  ;;  %v3019_v15 = vcombine.high %v2924_v10, %v3007_v22 }
 0x98b   : > { %v3009_v16 = vpop.permute.xlu1 %3008 }
 0x98c   : > { %v3026_v33 = vrot.slane %v3018_v14, %v6052_v55  ;;  %v3033_v36 = vrot.slane %v3019_v15, %v6052_v55  ;;  %v3086_v37 = vcombine.low %v2927_v13, %v3009_v16  ;;  %v3087_v39 = vcombine.high %v2927_v13, %v3009_v16 }
 0x98d   : > { %v3013_v18 = vpop.permute.xlu0 %3012 }
 0x98e   : > { %v3034_v31 = vcombine.low %v3001_v20, %v3013_v18  ;;  %v3035_v32 = vcombine.high %v3001_v20, %v3013_v18  ;;  %v3094_v46 = vrot.slane %v3086_v37, %v6052_v55  ;;  %v3101_v47 = vrot.slane %v3087_v39, %v6052_v55 }
 0x98f   : > { %v3015_v40 = vpop.permute.xlu1 %3014 }
 0x990   : > { %v3042_v38 = vrot.slane %v3034_v31, %v6052_v55  ;;  %v3049_v23 = vrot.slane %v3035_v32, %v6052_v55  ;;  %v3102_v24 = vcombine.low %v3003_v21, %v3015_v40  ;;  %v3103_v25 = vcombine.high %v3003_v21, %v3015_v40 }
 0x992   : > { %v3050_v26 = vcombine.low %v3026_v33, %v3042_v38  ;;  %v3051_v41 = vcombine.high %v3026_v33, %v3042_v38  ;;  %v3066_v43 = vcombine.low %v3033_v36, %v3049_v23  ;;  %v3067_v45 = vcombine.high %v3033_v36, %v3049_v23 }
 0x993   : > { %v3110_v49 = vrot.slane %v3102_v24, %v6052_v55  ;;  %v3117_v50 = vrot.slane %v3103_v25, %v6052_v55 }
 0x994   : > { %v3058_v52 = vrot.slane %v3050_v26, %v6054_v62  ;;  %v3065_v53 = vrot.slane %v3051_v41, %v6054_v62  ;;  %v3074_v56 = vrot.slane %v3066_v43, %v6054_v62  ;;  %v3081_v58 = vrot.slane %v3067_v45, %v6054_v62 }
 0x995   : > { %v3118_v60 = vcombine.low %v3094_v46, %v3110_v49  ;;  %v3119_v44 = vcombine.high %v3094_v46, %v3110_v49  ;;  %v3134_v48 = vcombine.low %v3101_v47, %v3117_v50  ;;  %v3135_v51 = vcombine.high %v3101_v47, %v3117_v50 }
 0x996   : > { %v3154_v54 = vcombine.low %v3058_v52, %v3065_v53  ;;  %v5238_v61 = vcombine.high %v3058_v52, %v3065_v53  ;;  %v3170_v63 = vcombine.low %v3074_v56, %v3081_v58  ;;  %v5239_v1 = vcombine.high %v3074_v56, %v3081_v58  ;;  %v3878_v58 = vld [vmem:[%s6849_s10] sm:$0xff] }
 0x997   : > { %v3126_v2 = vrot.slane %v3118_v60, %v6054_v62  ;;  %v3133_v4 = vrot.slane %v3119_v44, %v6054_v62  ;;  %v3142_v5 = vrot.slane %v3134_v48, %v6054_v62  ;;  %v3149_v6 = vrot.slane %v3135_v51, %v6054_v62 }
 0x998   : > { %v3161_v8 = vrot.slane %v3154_v54, %v6052_v55  ;;  %v3169_v57 = vrot.slane %v5238_v61, %v6052_v55  ;;  %v3177_v7 = vrot.slane %v3170_v63, %v6052_v55  ;;  %v3185_v59 = vrot.slane %v5239_v1, %v6052_v55  ;;  %v3879_v63 = vld [vmem:[%s6849_s10 + $0x8] sm:$0xff] }
 0x999   : > { %v3222_v9 = vcombine.low %v3126_v2, %v3133_v4  ;;  %v5240_v42 = vcombine.high %v3126_v2, %v3133_v4  ;;  %v3238_v34 = vcombine.low %v3142_v5, %v3149_v6  ;;  %v5241_v35 = vcombine.high %v3142_v5, %v3149_v6 }
 0x99a   : > { %v3186_v10 = vcombine.low %v3161_v8, %v3169_v57  ;;  %v3202_v11 = vcombine.low %v3177_v7, %v3185_v59  ;;  %v3187_v33 = vcombine.high %v3161_v8, %v3169_v57  ;;  %v3203_v36 = vcombine.high %v3177_v7, %v3185_v59 }
 0x99b   : > { %v3229_v12 = vrot.slane %v3222_v9, %v6052_v55  ;;  %v3237_v13 = vrot.slane %v5240_v42, %v6052_v55  ;;  %v3245_v19 = vrot.slane %v3238_v34, %v6052_v55  ;;  %v3253_v20 = vrot.slane %v5241_v35, %v6052_v55 }
 0x99c   : > { %v3194_v21 = vrot.slane %v3186_v10, %v6054_v62  ;;  %v3210_v22 = vrot.slane %v3202_v11, %v6054_v62  ;;  %v3201_v41 = vrot.slane %v3187_v33, %v6054_v62  ;;  %v3217_v43 = vrot.slane %v3203_v36, %v6054_v62 }
 0x99d   : > { %v3254_v14 = vcombine.low %v3229_v12, %v3237_v13  ;;  %v3270_v15 = vcombine.low %v3245_v19, %v3253_v20  ;;  %v3255_v16 = vcombine.high %v3229_v12, %v3237_v13  ;;  %v3271_v31 = vcombine.high %v3245_v19, %v3253_v20 }
 0x99e   : > { %v3218_v37 = vcombine.low %v3194_v21, %v3210_v22  ;;  %v3219_v40 = vcombine.high %v3194_v21, %v3210_v22  ;;  %v3986_v45 = vsel %vm2128_vm3, %v6440_v28, 0  ;;  %v4033_v46 = vsel %vm2128_vm3, %v6442_v29, 0 }
 0x99f   : > { %v3262_v18 = vrot.slane %v3254_v14, %v6054_v62  ;;  %v3278_v32 = vrot.slane %v3270_v15, %v6054_v62  ;;  %v3269_v23 = vrot.slane %v3255_v16, %v6054_v62  ;;  %v3285_v24 = vrot.slane %v3271_v31, %v6054_v62 }
 0x9a0   : > { %v3220_v50 = vcombine.low %v3201_v41, %v3217_v43  ;;  %v3221_v52 = vcombine.high %v3201_v41, %v3217_v43 }
 0x9a1   : > { %v3286_v39 = vcombine.low %v3262_v18, %v3278_v32  ;;  %v3287_v38 = vcombine.high %v3262_v18, %v3278_v32  ;;  %v3288_v47 = vcombine.low %v3269_v23, %v3285_v24  ;;  %v3289_v49 = vcombine.high %v3269_v23, %v3285_v24 }
 0x9a3   : > { %v3880_v25 = vpack.c.bf16 %v3286_v39, %v3218_v37  ;;  %v3881_v26 = vpack.c.bf16 %v3287_v38, %v3219_v40  ;;  %v3882_v28 = vpack.c.bf16 %v3288_v47, %v3220_v50  ;;  %v3883_v53 = vpack.c.bf16 %v3289_v49, %v3221_v52 }
 0x9a5   : > { %5477 = vmatmul.mubr.msk.bf16.vlgmr.msra.gmra.mrb[32].mxu1 %vm2128_vm3, %v3880_v25  ;;  %5483 = vmatmul.mubr.msk.bf16.vlgmr.msra.gmra.mrb[28].mxu0 %vm2128_vm3, %v3881_v26 }
 0x9a6   : > { %5487 = vmatpush3.bf16.xpose.msra.mxu1 %v3986_v45  ;;  %5493 = vmatpush3.bf16.xpose.msra.mxu0 %v4033_v46 }
 0x9a7   : > { %5488 = vmatprep.mubr.msk.bf16.mxu1 %vm5722_vm2, %v5721_v17  ;;  %5494 = vmatprep.mubr.msk.bf16.mxu0 %vm5722_vm2, %v5721_v17 }
 0x9a8   : > { %5498 = vmatprep.subr.bf16.mxu1 %v5721_v17  ;;  %5504 = vmatprep.subr.bf16.mxu0 %v5721_v17 }
 0x9ad   : > { %5489 = vmatmul.mubr.msk.bf16.vlgmr.msra.gmra.mrb[36].mxu1 %vm2128_vm3, %v3882_v28  ;;  %5495 = vmatmul.mubr.msk.bf16.vlgmr.msra.gmra.mrb[32].mxu0 %vm2128_vm3, %v3883_v53 }
 0x9ae   : > { %5500 = vmatprep.mubr.msk.bf16.mxu1 %vm5722_vm2, %v5721_v17  ;;  %5506 = vmatprep.mubr.msk.bf16.mxu0 %vm5722_vm2, %v5721_v17 }
 0xa78   : > { %v3928_v29 = vpop.f32.mrb[32].mxu1  ;;  %v3975_v56 = vpop.f32.mrb[28].mxu0 }
 0xa79   : > { %v4076_v60 = vmul.f32 0.35355338, %v3928_v29  ;;  %v4078_v44 = vmul.f32 0.35355338, %v3975_v56  ;;  %v5478_v48 = vpop.f32.mrb[33].mxu1  ;;  %v5484_v51 = vpop.f32.mrb[29].mxu0 }
 0xa7a   : > { %v3931_v54 = vpop.f32.mrb[34].mxu1  ;;  %v3978_v61 = vpop.f32.mrb[30].mxu0 }
 0xa7b   : > { %v4077_v1 = vmul.f32 0.35355338, %v3931_v54  ;;  %v5479_v2 = vpop.f32.mrb[35].mxu1  ;;  %v5485_v4 = vpop.f32.mrb[31].mxu0  ;;  %v4084_v5 = vadd.f32 %v4076_v60, %v3878_v58  ;;  %v4079_v6 = vmul.f32 0.35355338, %v3978_v61  ;;  %v4086_v7 = vadd.f32 %v4078_v44, %v3878_v58 }
 0xa7d   : > { %v4092_v8 = vsel %vm2333_vm4, %v4084_v5, -inf  ;;  %v4085_v57 = vadd.f32 %v4077_v1, %v3879_v63  ;;  %v4098_v11 = vsel %vm2333_vm4, %v4086_v7, -inf  ;;  %v4087_v12 = vadd.f32 %v4079_v6, %v3879_v63 }
 0xa7e   : > { %4093 = vmax.xlane.f32.xlu0 %v4092_v8 }
 0xa7f   : > { %v4095_v59 = vsel %vm2333_vm4, %v4085_v57, -inf  ;;  %v4101_v15 = vsel %vm2333_vm4, %v4087_v12, -inf }
 0xa80   : > { %v4069_v9 = vpop.f32.mrb[32].mxu0  ;;  %4096 = vmax.xlane.f32.xlu1 %v4095_v59  ;;  %v4022_v42 = vpop.f32.mrb[36].mxu1 }
 0xa81   : > { %v4080_v34 = vmul.f32 0.35355338, %v4022_v42  ;;  %v5490_v35 = vpop.f32.mrb[37].mxu1  ;;  %v5496_v10 = vpop.f32.mrb[33].mxu0  ;;  %v4082_v14 = vmul.f32 0.35355338, %v4069_v9 }
 0xa82   : > { %v4072_v13 = vpop.f32.mrb[34].mxu0  ;;  %4099 = vmax.xlane.f32.xlu0 %v4098_v11  ;;  %v4025_v19 = vpop.f32.mrb[38].mxu1 }
 0xa83   : > { %v4083_v20 = vmul.f32 0.35355338, %v4072_v13  ;;  %v5491_v21 = vpop.f32.mrb[39].mxu1  ;;  %v5497_v22 = vpop.f32.mrb[35].mxu0  ;;  %v4088_v16 = vadd.f32 %v4080_v34, %v3878_v58  ;;  %v4090_v32 = vadd.f32 %v4082_v14, %v3878_v58  ;;  %v4081_v36 = vmul.f32 0.35355338, %v4025_v19 }
 0xa85   : > { %v6515_v18 = vadd.f32 %v4083_v20, %v3879_v63  ;;  %v4104_v31 = vsel %vm2333_vm4, %v4088_v16, -inf  ;;  %v4110_v33 = vsel %vm2333_vm4, %v4090_v32, -inf  ;;  %v4089_v37 = vadd.f32 %v4081_v36, %v3879_v63 }
 0xa86   : > { %4102 = vmax.xlane.f32.xlu0 %v4101_v15 }
 0xa87   : > { %v4107_v39 = vsel %vm2333_vm4, %v4089_v37, -inf  ;;  %v4113_v40 = vsel %vm2333_vm4, %v6515_v18, -inf }
 0xa8a   : > { %4105 = vmax.xlane.f32.xlu0 %v4104_v31 }
 0xa8e   : > { %4111 = vmax.xlane.f32.xlu0 %v4110_v33 }
 0xa91   : > { %3312 = vrot.lane.b32.xlu1 %v6373_v30, %s5724_s5 }
 0xa95   : > { %3316 = vrot.lane.b32.xlu1 %v6371_v27, %s5723_s9 }
 0xa99   : > { %3318 = vrot.lane.b32.xlu1 %v6373_v30, %s5723_s9  ;;  %s6858_s9 = sld [smem:[#allocation23_spill]] (!%p5283_p5) }
 0xaa4   : > { %3310 = vrot.lane.b32.xlu0 %v6371_v27, %s5724_s5  ;;  %s6850_s5 = scalar_lea.vmem %s6775_s17, %s5890_s8 }
 0xaa8   : > { %3322 = vrot.lane.b32.xlu0 %v6371_v27, %s5725_s25 }
 0xaac   : > { %3328 = vrot.lane.b32.xlu0 %v6371_v27, %s5726_s27 }
 0xabd   : > { %4108 = vmax.xlane.f32.xlu1 %v4107_v39 }
 0xac1   : > { %4114 = vmax.xlane.f32.xlu1 %v4113_v40 }
 0xad2   : > { %3324 = vrot.lane.b32.xlu1 %v6373_v30, %s5725_s25  ;;  %s6859_s25 = sld [smem:[#allocation25_spill]] (!%p5283_p5) }
 0xb0b   : > { %v4094_v38 = vpop.xlane.xlu0 %4093 }
 0xb0c   : > { %v4116_v23 = vsub.f32 %v4084_v5, %v4094_v38 }
 0xb0d   : > { %v4097_v24 = vpop.xlane.xlu1 %4096 }
 0xb0e   : > { %v4124_v25 = vmul.f32 1.442695, %v4116_v23  ;;  %v4117_v26 = vsub.f32 %v4085_v57, %v4097_v24 }
 0xb0f   : > { %v4100_v41 = vpop.xlane.xlu0 %4099 }
 0xb10   : > { %5663 = vpow2.f32 %v4124_v25  ;;  %v4126_v27 = vmul.f32 1.442695, %v4117_v26  ;;  %v4118_v43 = vsub.f32 %v4086_v7, %v4100_v41 }
 0xb11   : > { %v3313_v6 = vpop.permute.xlu1 %3312 }
 0xb12   : > { %5665 = vpow2.f32 %v4126_v27  ;;  %v4128_v45 = vmul.f32 1.442695, %v4118_v43 }
 0xb13   : > { %v4103_v46 = vpop.xlane.xlu0 %4102 }
 0xb14   : > { %5667 = vpow2.f32 %v4128_v45  ;;  %v4119_v47 = vsub.f32 %v4087_v12, %v4103_v46 }
 0xb15   : > { %v3317_v8 = vpop.permute.xlu1 %3316 }
 0xb16   : > { %v4130_v49 = vmul.f32 1.442695, %v4119_v47 }
 0xb17   : > { %v4106_v50 = vpop.xlane.xlu0 %4105 }
 0xb18   : > { %5669 = vpow2.f32 %v4130_v49  ;;  %v4120_v52 = vsub.f32 %v4088_v16, %v4106_v50 }
 0xb19   : > { %v3319_v57 = vpop.permute.xlu1 %3318 }
 0xb1a   : > { %v6536_v28 = vpop.eup %5663  ;;  %v4132_v53 = vmul.f32 1.442695, %v4120_v52 }
 0xb1b   : > { %v4112_v29 = vpop.xlane.xlu0 %4111  ;;  %v4140_v56 = vsel %vm2333_vm4, %v6536_v28, 0.0 }
 0xb1c   : > { %v6540_v58 = vpop.eup %5665  ;;  %5671 = vpow2.f32 %v4132_v53  ;;  %v4122_v60 = vsub.f32 %v4090_v32, %v4112_v29  ;;  %4141 = vadd.xlane.f32.xlu0 %v4140_v56 }
 0xb1d   : > { %v4143_v44 = vsel %vm2333_vm4, %v6540_v58, 0.0 }
 0xb1e   : > { %v6544_v48 = vpop.eup %5667  ;;  %v4136_v51 = vmul.f32 1.442695, %v4122_v60  ;;  %4144 = vadd.xlane.f32.xlu1 %v4143_v44 }
 0xb1f   : > { %v4146_v54 = vsel %vm2333_vm4, %v6544_v48, 0.0  ;;  %v3311_v13 = vpop.permute.xlu0 %3310 }
 0xb20   : > { %5673 = vpow2.f32 %v4136_v51  ;;  %4147 = vadd.xlane.f32.xlu0 %v4146_v54 }
 0xb22   : > { %v6548_v61 = vpop.eup %5669 }
 0xb23   : > { %v4149_v63 = vsel %vm2333_vm4, %v6548_v61, 0.0  ;;  %v3323_v19 = vpop.permute.xlu0 %3322 }
 0xb24   : > { %4150 = vadd.xlane.f32.xlu1 %v4149_v63  ;;  %v3366_v22 = vcombine.low %v3311_v13, %v3323_v19  ;;  %v3367_v15 = vcombine.high %v3311_v13, %v3323_v19 }
 0xb26   : > { %v6552_v1 = vpop.eup %5671  ;;  %v3381_v33 = vrot.slane %v3367_v15, %v6052_v55 }
 0xb27   : > { %v4152_v2 = vsel %vm2333_vm4, %v6552_v1, 0.0  ;;  %v3329_v20 = vpop.permute.xlu0 %3328 }
 0xb28   : > { %4153 = vadd.xlane.f32.xlu0 %v4152_v2  ;;  %v3382_v21 = vcombine.low %v3317_v8, %v3329_v20  ;;  %v3383_v14 = vcombine.high %v3317_v8, %v3329_v20 }
 0xb2a   : > { %v6556_v4 = vpop.eup %5673  ;;  %v3390_v16 = vrot.slane %v3382_v21, %v6052_v55  ;;  %v3397_v31 = vrot.slane %v3383_v14, %v6052_v55 }
 0xb2b   : > { %v4158_v5 = vsel %vm2333_vm4, %v6556_v4, 0.0 }
 0xb2c   : > { %4159 = vadd.xlane.f32.xlu0 %v4158_v5  ;;  %v3446_v39 = vcombine.low %v3381_v33, %v3397_v31  ;;  %v3447_v40 = vcombine.high %v3381_v33, %v3397_v31 }
 0xb2e   : > { %v3454_v25 = vrot.slane %v3446_v39, %v6054_v62  ;;  %v3461_v26 = vrot.slane %v3447_v40, %v6054_v62 }
 0xb30   : > { %v5247_v49 = vcombine.low %v3454_v25, %v3461_v26  ;;  %v5249_v50 = vcombine.high %v3454_v25, %v3461_v26 }
 0xb32   : > { %v3653_v5 = vrot.slane %v5247_v49, %v6052_v55 }
 0xb35   : > { %3330 = vrot.lane.b32.xlu1 %v6373_v30, %s5726_s27  ;;  %s6851_s27 = scalar_lea.vmem %s6776_s18, %s5890_s8  ;;  %s6857_s8 = sld [smem:[#allocation22_spill]] (!%p5283_p5) }
 0xb4a   : > { %v4109_v7 = vpop.xlane.xlu1 %4108 }
 0xb4b   : > { %v4121_v59 = vsub.f32 %v4089_v37, %v4109_v7 }
 0xb4d   : > { %v4134_v9 = vmul.f32 1.442695, %v4121_v59 }
 0xb4e   : > { %v4115_v42 = vpop.xlane.xlu1 %4114 }
 0xb4f   : > { %5675 = vpow2.f32 %v4134_v9  ;;  %v4123_v34 = vsub.f32 %v6515_v18, %v4115_v42  ;;  %v3374_v18 = vrot.slane %v3366_v22, %v6052_v55 }
 0xb51   : > { %v4138_v35 = vmul.f32 1.442695, %v4123_v34  ;;  %v3430_v36 = vcombine.low %v3374_v18, %v3390_v16  ;;  %v3431_v37 = vcombine.high %v3374_v18, %v3390_v16 }
 0xb52   : > { %v3325_v32 = vpop.permute.xlu1 %3324 }
 0xb53   : > { %5677 = vpow2.f32 %v4138_v35  ;;  %v3438_v23 = vrot.slane %v3430_v36, %v6054_v62  ;;  %v3445_v24 = vrot.slane %v3431_v37, %v6054_v62  ;;  %v3502_v45 = vcombine.low %v3313_v6, %v3325_v32 }
 0xb54   : > { %v3503_v46 = vcombine.high %v3313_v6, %v3325_v32  ;;  %v3669_v6 = vrot.slane %v5249_v50, %v6052_v55 }
 0xb55   : > { %v5243_v43 = vcombine.low %v3438_v23, %v3445_v24  ;;  %v5245_v47 = vcombine.high %v3438_v23, %v3445_v24  ;;  %v3510_v60 = vrot.slane %v3502_v45, %v6052_v55 }
 0xb56   : > { %v3517_v44 = vrot.slane %v3503_v46, %v6052_v55  ;;  %v3719_v19 = vcombine.high %v3653_v5, %v3669_v6 }
 0xb57   : > { %v3621_v56 = vrot.slane %v5243_v43, %v6052_v55  ;;  %v3637_v2 = vrot.slane %v5245_v47, %v6052_v55 }
 0xb58   : > { %v3733_v39 = vrot.slane %v3719_v19, %v6054_v62 }
 0xb59   : > { %v6563_v10 = vpop.eup %5675  ;;  %v3687_v13 = vcombine.high %v3621_v56, %v3637_v2 }
 0xb5a   : > { %v4155_v11 = vsel %vm2333_vm4, %v6563_v10, 0.0 }
 0xb5b   : > { %4156 = vadd.xlane.f32.xlu1 %v4155_v11  ;;  %v3686_v11 = vcombine.low %v3621_v56, %v3637_v2  ;;  %v3701_v37 = vrot.slane %v3687_v13, %v6054_v62 }
 0xb5d   : > { %v6567_v12 = vpop.eup %5677  ;;  %v3694_v33 = vrot.slane %v3686_v11, %v6054_v62 }
 0xb5e   : > { %v4161_v30 = vsel %vm2333_vm4, %v6567_v12, 0.0 }
 0xb5f   : > { %4162 = vadd.xlane.f32.xlu0 %v4161_v30  ;;  %v3718_v30 = vcombine.low %v3653_v5, %v3669_v6 }
 0xb61   : > { %v3726_v36 = vrot.slane %v3718_v30, %v6054_v62 }
 0xb63   : > { %v3738_v46 = vcombine.low %v3694_v33, %v3726_v36  ;;  %v3739_v47 = vcombine.high %v3694_v33, %v3726_v36 }
 0xba9   : > { %v4142_v27 = vpop.xlane.xlu0 %4141 }
 0xbaa   : > { %5679 = vrcp.f32 %v4142_v27 }
 0xbab   : > { %v4145_v38 = vpop.xlane.xlu1 %4144 }
 0xbac   : > { %5681 = vrcp.f32 %v4145_v38 }
 0xbad   : > { %v4148_v51 = vpop.xlane.xlu0 %4147 }
 0xbb1   : > { %v4151_v41 = vpop.xlane.xlu1 %4150 }
 0xbb2   : > { %5683 = vrcp.f32 %v4151_v41 }
 0xbb3   : > { %5685 = vrcp.f32 %v4148_v51 }
 0xbb4   : > { %v5680_v32 = vpop.eup %5679 }
 0xbb5   : > { %v3331_v52 = vpop.permute.xlu1 %3330  ;;  %v4172_v2 = vmul.f32 %v5680_v32, %v6536_v28  ;;  %v4154_v28 = vpop.xlane.xlu0 %4153 }
 0xbb6   : > { %v3518_v53 = vcombine.low %v3319_v57, %v3331_v52  ;;  %v3519_v29 = vcombine.high %v3319_v57, %v3331_v52  ;;  %v5682_v40 = vpop.eup %5681  ;;  %v3740_v52 = vcombine.low %v3701_v37, %v3733_v39  ;;  %5687 = vrcp.f32 %v4154_v28 }
 0xbb8   : > { %v3526_v54 = vrot.slane %v3518_v53, %v6052_v55  ;;  %v3533_v63 = vrot.slane %v3519_v29, %v6052_v55  ;;  %v4173_v29 = vmul.f32 %v5682_v40, %v6540_v58 }
 0xbb9   : > { %v4160_v58 = vpop.xlane.xlu0 %4159 }
 0xbba   : > { %v3566_v8 = vcombine.low %v3510_v60, %v3526_v54  ;;  %v3567_v57 = vcombine.high %v3510_v60, %v3526_v54  ;;  %v3582_v7 = vcombine.low %v3517_v44, %v3533_v63  ;;  %v3583_v59 = vcombine.high %v3517_v44, %v3533_v63 }
 0xbbb   : > { %v3741_v60 = vcombine.high %v3701_v37, %v3733_v39  ;;  %v4180_v6 = vpack.c.bf16 %v4173_v29, %v4172_v2 }
 0xbbc   : > { %v3574_v9 = vrot.slane %v3566_v8, %v6054_v62  ;;  %v3581_v42 = vrot.slane %v3567_v57, %v6054_v62  ;;  %v3590_v34 = vrot.slane %v3582_v7, %v6054_v62  ;;  %v3597_v35 = vrot.slane %v3583_v59, %v6054_v62  ;;  %v5684_v26 = vpop.eup %5683 }
 0xbbd   : > { %v5686_v45 = vpop.eup %5685  ;;  %v4175_v56 = vmul.f32 %v5684_v26, %v6548_v61 }
 0xbbe   : > { %v5251_v20 = vcombine.low %v3574_v9, %v3581_v42  ;;  %v5253_v21 = vcombine.high %v3574_v9, %v3581_v42  ;;  %v5255_v22 = vcombine.low %v3590_v34, %v3597_v35  ;;  %v5257_v14 = vcombine.high %v3590_v34, %v3597_v35 }
 0xbc0   : > { %v3757_v15 = vrot.slane %v5251_v20, %v6052_v55  ;;  %v3773_v16 = vrot.slane %v5253_v21, %v6052_v55  ;;  %v3789_v18 = vrot.slane %v5255_v22, %v6052_v55  ;;  %v3805_v31 = vrot.slane %v5257_v14, %v6052_v55  ;;  %v5688_v57 = vpop.eup %5687  ;;  %v4463_v21 = vld [vmem:[%s5948_s7 + $0x8] sm:$0xf]  ;;  %v4514_v22 = vld [vmem:[%s5948_s7 + $0xc] sm:$0xf] }
 0xbc1   : > { %v4176_v59 = vmul.f32 %v5688_v57, %v6552_v1  ;;  %v4367_v1 = vld [vmem:[%s5948_s7 + $0x4] sm:$0xf]  ;;  %v4468_v37 = vsel %vm2613_vm5, %v4463_v21, 0  ;;  %v4519_v39 = vsel %vm2613_vm5, %v4514_v22, 0  ;;  %v5620_v22 = vld [vmem:[%s5975_s14 + $0x8] sm:$0xff]  }
 0xbc2   : > { %v3822_v38 = vcombine.low %v3757_v15, %v3773_v16  ;;  %v3854_v23 = vcombine.low %v3789_v18, %v3805_v31  ;;  %v3823_v24 = vcombine.high %v3757_v15, %v3773_v16  ;;  %v3855_v25 = vcombine.high %v3789_v18, %v3805_v31  ;;  %v5619_v21 = vld [vmem:[%s5975_s14] sm:$0xff]  }
 0xbc3   : > { %v4372_v19 = vsel %vm2613_vm5, %v4367_v1, 0 }
 0xbc4   : > { %v3830_v41 = vrot.slane %v3822_v38, %v6054_v62  ;;  %v3862_v27 = vrot.slane %v3854_v23, %v6054_v62  ;;  %v3837_v55 = vrot.slane %v3823_v24, %v6054_v62  ;;  %v3869_v43 = vrot.slane %v3855_v25, %v6054_v62 }
 0xbc5   : > { %v4174_v62 = vmul.f32 %v5686_v45, %v6544_v48 }
 0xbc6   : > { %v3874_v49 = vcombine.low %v3830_v41, %v3862_v27  ;;  %v3875_v50 = vcombine.high %v3830_v41, %v3862_v27  ;;  %v3876_v53 = vcombine.low %v3837_v55, %v3869_v43  ;;  %v3877_v44 = vcombine.high %v3837_v55, %v3869_v43 }
 0xbc7   : > { %v4181_v8 = vpack.c.bf16 %v4175_v56, %v4174_v62 }
 0xbc8   : > { %v4184_v51 = vpack.c.bf16 %v3874_v49, %v3738_v46  ;;  %v4185_v54 = vpack.c.bf16 %v3875_v50, %v3739_v47  ;;  %v4186_v63 = vpack.c.bf16 %v3876_v53, %v3740_v52  ;;  %v4187_v5 = vpack.c.bf16 %v3877_v44, %v3741_v60 }
 0xbca   : > { %5499 = vmatpush3.bf16.msra.mxu1 %v4184_v51  ;;  %5505 = vmatpush3.bf16.msra.mxu0 %v4185_v54 }
 0xbcb   : > { %5510 = vmatprep.subr.bf16.mxu1 %v5721_v17  ;;  %5516 = vmatprep.subr.bf16.mxu0 %v5721_v17 }
 0xbcd   : > { %5501 = vmatmul.mubr.msk.bf16.vlgmr.msra.gmra.mrb[40].mxu1 %vm2333_vm4, %v4180_v6  ;;  %5507 = vmatmul.mubr.msk.bf16.vlgmr.msra.gmra.mrb[36].mxu0 %vm2333_vm4, %v4181_v8  ;;  %v5270_v6 = vld [vmem:[%s6850_s5] ss:$0 sm:$0xff] }
 0xbce   : > { %5511 = vmatpush3.bf16.msra.mxu1 %v4186_v63  ;;  %5517 = vmatpush3.bf16.msra.mxu0 %v4187_v5 }
 0xbcf   : > { %5512 = vmatprep.mubr.msk.bf16.mxu1 %vm5722_vm2, %v5721_v17  ;;  %5518 = vmatprep.mubr.msk.bf16.mxu0 %vm5722_vm2, %v5721_v17 }
 0xbd0   : > { %5522 = vmatprep.subr.bf16.mxu1 %v5721_v17  ;;  %5528 = vmatprep.subr.bf16.mxu0 %v5721_v17 }
 0xbe8   : > { %v4157_v48 = vpop.xlane.xlu1 %4156 }
 0xbe9   : > { %5689 = vrcp.f32 %v4157_v48 }
 0xbea   : > { %5691 = vrcp.f32 %v4160_v58 }
 0xbec   : > { %v4163_v61 = vpop.xlane.xlu0 %4162 }
 0xbed   : > { %5693 = vrcp.f32 %v4163_v61 }
 0xbf3   : > { %v5690_v7 = vpop.eup %5689 }
 0xbf4   : > { %v4177_v9 = vmul.f32 %v5690_v7, %v6563_v10  ;;  %v5692_v42 = vpop.eup %5691  ;;  %v4365_v10 = vld [vmem:[%s5948_s7] sm:$0xf] }
 0xbf5   : > { %v4178_v11 = vmul.f32 %v5692_v42, %v6556_v4  ;;  %v4419_v4 = vsel %vm2613_vm5, %v4365_v10, 0 }
 0xbf6   : > { %v4182_v34 = vpack.c.bf16 %v4177_v9, %v4176_v59 }
 0xbf7   : > { %v5694_v35 = vpop.eup %5693 }
 0xbf8   : > { %v4179_v30 = vmul.f32 %v5694_v35, %v6567_v12  ;;  %5513 = vmatmul.mubr.msk.bf16.vlgmr.msra.gmra.mrb[44].mxu1 %vm2333_vm4, %v4182_v34 }
 0xbf9   : > { %5524 = vmatprep.mubr.msk.bf16.mxu1 %vm5722_vm2, %v5721_v17  ;;  %5523 = vmatpush3.bf16.msra.mxu1 %v4372_v19 }
 0xbfa   : > { %v4183_v13 = vpack.c.bf16 %v4179_v30, %v4178_v11  ;;  %5534 = vmatprep.subr.bf16.mxu1 %v5721_v17 }
 0xbfc   : > { %5519 = vmatmul.mubr.msk.bf16.vlgmr.msra.gmra.mrb[40].mxu0 %vm2333_vm4, %v4183_v13 }
 0xbfd   : > { %5530 = vmatprep.mubr.msk.bf16.mxu0 %vm5722_vm2, %v5721_v17  ;;  %5529 = vmatpush3.bf16.msra.mxu0 %v4419_v4 }
 0xbfe   : > { %5540 = vmatprep.subr.bf16.mxu0 %v5721_v17 }
 0xca0   : > { %v4225_v12 = vpop.f32.mrb[40].mxu1  ;;  %v4269_v20 = vpop.f32.mrb[36].mxu0 }
 0xca1   : > { %v5502_v14 = vpop.f32.mrb[41].mxu1  ;;  %v5508_v15 = vpop.f32.mrb[37].mxu0 }
 0xca2   : > { %v4228_v16 = vpop.f32.mrb[42].mxu1  ;;  %v4272_v18 = vpop.f32.mrb[38].mxu0 }
 0xca3   : > { %v4364_v31 = vpack.c.bf16 %v4228_v16, %v4225_v12  ;;  %v4366_v32 = vpack.c.bf16 %v4272_v18, %v4269_v20  ;;  %v5503_v33 = vpop.f32.mrb[43].mxu1  ;;  %v5509_v36 = vpop.f32.mrb[39].mxu0  ;;  %v5617_v12 = vld [vmem:[%s5965_s11] sm:$0xff]   ;;  %v5618_v20 = vld [vmem:[%s5965_s11 + $0x8] sm:$0xff]  }
 0xca4   : > { %v5271_v36 = vld [vmem:[%s6851_s27] ss:$0 sm:$0xff] }
 0xca5   : > { %5525 = vmatmul.mubr.msk.bf16.vlgmr.msra.gmra.mrb[48].mxu1 %vm2128_vm3, %v4366_v32  ;;  %5531 = vmatmul.mubr.msk.bf16.vlgmr.msra.gmra.mrb[44].mxu0 %vm2128_vm3, %v4364_v31 }
 0xca6   : > { %5535 = vmatpush3.bf16.msra.mxu1 %v4468_v37  ;;  %5541 = vmatpush3.bf16.msra.mxu0 %v4519_v39 }
 0xca7   : > { %5536 = vmatprep.mubr.msk.bf16.mxu1 %vm5722_vm2, %v5721_v17  ;;  %5542 = vmatprep.mubr.msk.bf16.mxu0 %vm5722_vm2, %v5721_v17 }
 0xca8   : > { %5546 = vmatprep.subr.bf16.mxu1 %v5721_v17  ;;  %5554 = vmatprep.subr.bf16.mxu0 %v5721_v17 }
 0xccb   : > { %v4313_v40 = vpop.f32.mrb[44].mxu1 }
 0xccc   : > { %v5514_v38 = vpop.f32.mrb[45].mxu1 }
 0xccd   : > { %v4316_v23 = vpop.f32.mrb[46].mxu1 }
 0xcce   : > { %v4462_v24 = vpack.c.bf16 %v4316_v23, %v4313_v40  ;;  %v5515_v25 = vpop.f32.mrb[47].mxu1  ;;  %v5272_v23 = vld [vmem:[%s1089_s3] ss:$0 sm:$0xff] }
 0xccf   : > { %v4357_v26 = vpop.f32.mrb[40].mxu0 }
 0xcd0   : > { %v5520_v41 = vpop.f32.mrb[41].mxu0  ;;  %5537 = vmatmul.mubr.msk.bf16.vlgmr.msra.gmra.mrb[52].mxu1 %vm2128_vm3, %v4462_v24 }
 0xcd1   : > { %v4360_v27 = vpop.f32.mrb[42].mxu0  ;;  %5550 = vmatprep.mubr.msk.bf16.mxu1 %vm5722_vm2, %v5721_v17  ;;  %5547 = vmatpush3.bf16.msra.mxu1 %v5617_v12 }
 0xcd2   : > { %v4513_v55 = vpack.c.bf16 %v4360_v27, %v4357_v26  ;;  %v5521_v43 = vpop.f32.mrb[43].mxu0  ;;  %5548 = vmatprep.subr.bf16.mxu1 %v5721_v17  ;;  %v5621_v27 = vld [vmem:[%s5975_s14 + $0x10] sm:$0xff]  }
 0xcd3   : > { %v5273_v43 = vld [vmem:[%s6852_s0] ss:$0 sm:$0xff] }
 0xcd4   : > { %5543 = vmatmul.mubr.msk.bf16.vlgmr.msra.gmra.mrb[48].mxu0 %vm2128_vm3, %v4513_v55  ;;  %v5622_v55 = vld [vmem:[%s5975_s14 + $0x18] sm:$0xff]  }
 0xcd5   : > { %5562 = vmatprep.mubr.msk.bf16.mxu0 %vm5722_vm2, %v5721_v17  ;;  %5549 = vmatpush3.bf16.msra.mxu1 %v5618_v20  ;;  %v5706_v20 = vld [vmem:[%s6856_s30 + $0x28] sm:$0xff] (!%p5283_p5)  }
 0xcd6   : > { %5555 = vmatpush3.bf16.msra.mxu0 %v5619_v21  ;;  %v4902_v21 = vsel (!%p5283_p5), %vm1122_vm1, %v5706_v20, 0 }
 0xcd7   : > { %5556 = vmatprep.subr.bf16.mxu0 %v5721_v17 }
 0xcda   : > { %5557 = vmatpush3.bf16.msra.mxu0 %v5620_v22  ;;  %v5707_v22 = vld [vmem:[%s6856_s30 + $0x30] sm:$0xff] (!%p5283_p5)  }
 0xcdb   : > { %5558 = vmatprep.subr.bf16.mxu0 %v5721_v17 }
 0xcde   : > { %5559 = vmatpush3.bf16.msra.mxu0 %v5621_v27 }
 0xcdf   : > { %5560 = vmatprep.subr.bf16.mxu0 %v5721_v17  ;;  %v5277_v17 = vld [vmem:[%s6854_s24] ss:$0 sm:$0xff] }
 0xce2   : > { %5561 = vmatpush3.bf16.msra.mxu0 %v5622_v55 }
 0xd78   : > { %v4408_v45 = vpop.f32.mrb[48].mxu1  ;;  %v4455_v46 = vpop.f32.mrb[44].mxu0 }
 0xd79   : > { %v4456_v47 = vadd.f32 %v4455_v46, %v4408_v45  ;;  %v5526_v49 = vpop.f32.mrb[49].mxu1  ;;  %v5532_v50 = vpop.f32.mrb[45].mxu0 }
 0xd7a   : > { %v4411_v52 = vpop.f32.mrb[50].mxu1  ;;  %v4458_v53 = vpop.f32.mrb[46].mxu0 }
 0xd7b   : > { %v4459_v29 = vadd.f32 %v4458_v53, %v4411_v52  ;;  %v5527_v56 = vpop.f32.mrb[51].mxu1  ;;  %v5533_v60 = vpop.f32.mrb[47].mxu0 }
 0xda3   : > { %v4504_v44 = vpop.f32.mrb[52].mxu1 }
 0xda4   : > { %v4511_v51 = vadd.f32 %v4504_v44, %v4456_v47  ;;  %v5538_v54 = vpop.f32.mrb[53].mxu1 }
 0xda5   : > { %v4507_v63 = vpop.f32.mrb[54].mxu1 }
 0xda6   : > { %v4512_v2 = vadd.f32 %v4507_v63, %v4459_v29  ;;  %v5539_v62 = vpop.f32.mrb[55].mxu1 }
 0xda7   : > { %v4555_v5 = vpop.f32.mrb[48].mxu0 }
 0xda8   : > { %v4562_v8 = vadd.f32 %v4555_v5, %v4511_v51  ;;  %v5544_v28 = vpop.f32.mrb[49].mxu0 }
 0xda9   : > { %v4558_v58 = vpop.f32.mrb[50].mxu0  ;;  %v5701_v28 = vld [vmem:[%s6856_s30] sm:$0xff] (!%p5283_p5)  }
 0xdaa   : > { %v4571_v48 = vadd.f32 %v5270_v6, %v4562_v8  ;;  %v4563_v61 = vadd.f32 %v4558_v58, %v4512_v2  ;;  %v5545_v57 = vpop.f32.mrb[51].mxu0  ;;  %v5736_v58 = vmov (!%p5283_p5), 0.0  }
 0xdab   : > { %5566 = vmatprep.subr.bf16.mxu0 (!%p5283_p5), %v5736_v58 }
 0xdac   : > { %v6657_v7 = vadd.f32 %v4571_v48, %v6337_v0  ;;  %v4572_v59 = vadd.f32 %v5270_v6, %v4563_v61  ;;  %v4887_v48 = vsel (!%p5283_p5), %vm1122_vm1, %v5701_v28, 0  ;;  %v5702_v61 = vld [vmem:[%s6856_s30 + $0x8] sm:$0xff] (!%p5283_p5)  }
 0xdad   : > { %v4890_v57 = vsel (!%p5283_p5), %vm1122_vm1, %v5702_v61, 0 }
 0xdae   : > { %v6660_v9 = vadd.f32 %v4572_v59, %v6339_v3  ;;  %v4577_v42 = vsel %vm1122_vm1, %v6657_v7, 0.0 }
 0xdaf   : > { %4578 = vadd.xlane.f32.xlu0 %v4577_v42 }
 0xdb0   : > { %v4580_v34 = vsel %vm1122_vm1, %v6660_v9, 0.0 }
 0xdb1   : > { %4581 = vadd.xlane.f32.xlu1 %v4580_v34  ;;  %v5705_v34 = vld [vmem:[%s6856_s30 + $0x20] sm:$0xff] (!%p5283_p5)  }
 0xe3c   : > { %v4579_v35 = vpop.xlane.xlu0 %4578 }
 0xe3d   : > { %v4583_v11 = vmul.f32 0.03125, %v4579_v35  ;;  %v4899_v35 = vsel (!%p5283_p5), %vm1122_vm1, %v5705_v34, 0 }
 0xe3e   : > { %v4582_v30 = vpop.xlane.xlu1 %4581 }
 0xe3f   : > { %v4585_v0 = vsub.f32 %v6657_v7, %v4583_v11  ;;  %v4584_v13 = vmul.f32 0.03125, %v4582_v30 }
 0xe41   : > { %v4586_v3 = vsub.f32 %v6660_v9, %v4584_v13  ;;  %v4587_v1 = vmul.f32 %v4585_v0, %v4585_v0 }
 0xe43   : > { %v4589_v10 = vsel %vm1122_vm1, %v4587_v1, 0.0  ;;  %v4588_v19 = vmul.f32 %v4586_v3, %v4586_v3 }
 0xe44   : > { %4590 = vadd.xlane.f32.xlu0 %v4589_v10 }
 0xe45   : > { %v4592_v4 = vsel %vm1122_vm1, %v4588_v19, 0.0 }
 0xe46   : > { %4593 = vadd.xlane.f32.xlu1 %v4592_v4 }
 0xed1   : > { %v4591_v14 = vpop.xlane.xlu0 %4590 }
 0xed2   : > { %v4595_v15 = vmul.f32 0.03125, %v4591_v14  ;;  %v4905_v14 = vsel (!%p5283_p5), %vm1122_vm1, %v5707_v22, 0 }
 0xed3   : > { %v4594_v16 = vpop.xlane.xlu1 %4593 }
 0xed4   : > { %v4597_v18 = vadd.f32 1e-05, %v4595_v15  ;;  %v4596_v31 = vmul.f32 0.03125, %v4594_v16  ;;  %v5708_v15 = vld [vmem:[%s6856_s30 + $0x38] sm:$0xff] (!%p5283_p5)  }
 0xed5   : > { %v4908_v16 = vsel (!%p5283_p5), %vm1122_vm1, %v5708_v15, 0 }
 0xed6   : > { %5695 = vrsqrt.f32 %v4597_v18  ;;  %v4598_v32 = vadd.f32 1e-05, %v4596_v31 }
 0xed8   : > { %5697 = vrsqrt.f32 %v4598_v32 }
 0xee0   : > { %v5696_v33 = vpop.eup %5695 }
 0xee1   : > { %v4601_v37 = vmul.f32 %v5696_v33, %v4585_v0 }
 0xee2   : > { %v5698_v39 = vpop.eup %5697 }
 0xee3   : > { %v4609_v40 = vmul.f32 %v5271_v36, %v4601_v37  ;;  %v4602_v38 = vmul.f32 %v5698_v39, %v4586_v3 }
 0xee5   : > { %v4610_v24 = vmul.f32 %v5271_v36, %v4602_v38  ;;  %v4617_v25 = vadd.f32 %v5272_v23, %v4609_v40  ;;  %v5284_v38 = vld [vmem:[%s6857_s8] ss:$0 sm:$0xff] (!%p5283_p5) }
 0xee7   : > { %v4618_v26 = vadd.f32 %v5272_v23, %v4610_v24 }
 0xee9   : > { %v4619_v41 = vpack.c.bf16 %v4618_v26, %v4617_v25  ;;  %v5285_v26 = vld [vmem:[%s6858_s9] ss:$0 sm:$0xff] (!%p5283_p5) }
 0xeeb   : > { %5551 = vmatmul.mubr.msk.bf16.vlgmr.msra.gmra.mrb[56].mxu1 %vm1122_vm1, %v4619_v41 }
 0xfbe   : > { %v4680_v45 = vpop.f32.mrb[56].mxu1 }
 0xfbf   : > { %v4681_v46 = vadd.f32 %v5273_v43, %v4680_v45  ;;  %v5552_v47 = vpop.f32.mrb[57].mxu1 }
 0xfc0   : > { %v4683_v49 = vpop.f32.mrb[58].mxu1 }
 0xfc1   : > { %v4684_v50 = vadd.f32 %v5273_v43, %v4683_v49  ;;  %v5553_v52 = vpop.f32.mrb[59].mxu1  ;;  %v4687_v53 = vmax.f32 %v4681_v46, 0.0 }
 0xfc3   : > { %v4688_v29 = vmax.f32 %v4684_v50, 0.0 }
 0xfc5   : > { %v4689_v56 = vpack.c.bf16 %v4688_v29, %v4687_v53 }
 0xfc7   : > { %5563 = vmatmul.mubr.msk.bf16.vlgmr.msra.gmra.mrb[52].mxu0 %vm4729_vm6, %v4689_v56 }
 0xfc8   : > { %5567 = vmatpush3.bf16.xpose.msra.mxu0 (!%p5283_p5), %v4887_v48  ;;  %5582 = vmatprep.mubr.msk.bf16.mxu0 (!%p5283_p5), %vm5737_vm7, %v5736_v58 }
 0xfc9   : > { %5568 = vmatprep.subr.bf16.mxu0 (!%p5283_p5), %v5736_v58 }
 0xfd0   : > { %5569 = vmatpush3.bf16.xpose.msra.mxu0 (!%p5283_p5), %v4890_v57 }
 0xfd1   : > { %5570 = vmatprep.subr.bf16.mxu0 (!%p5283_p5), %v5736_v58 }
0x109a   : > { %v4767_v60 = vpop.f32.mrb[52].mxu0 }
0x109b   : > { %v4768_v44 = vadd.f32 %v5277_v17, %v4767_v60  ;;  %v5564_v51 = vpop.f32.mrb[53].mxu0  ;;  %4781 = sbr.rel (%p5283_p5) target bundleno = 4789 (0x12b5), region = 136 }
0x109c   : > { %v4770_v54 = vpop.f32.mrb[54].mxu0 }
0x109d   : > { %v4774_v63 = vadd.f32 %v4768_v44, %v6657_v7  ;;  %v4771_v2 = vadd.f32 %v5277_v17, %v4770_v54  ;;  %v5565_v62 = vpop.f32.mrb[55].mxu0  ;;  %v5703_v7 = vld [vmem:[%s6856_s30 + $0x10] sm:$0xff] (!%p5283_p5)  }
0x109e   : > { %v4893_v59 = vsel (!%p5283_p5), %vm1122_vm1, %v5703_v7, 0 }
0x109f   : > { %4776 = vst.msk [vmem:[#allocation2] sm:$0xff] %vm1122_vm1, %v4774_v63  ;;  %v4775_v5 = vadd.f32 %v4771_v2, %v6660_v9  ;;  %v4784_v6 = vsel (!%p5283_p5), %vm1122_vm1, %v4774_v63, 0.0  ;;  %5571 = vmatpush3.bf16.xpose.msra.mxu0 (!%p5283_p5), %v4893_v59  ;;  %v5704_v9 = vld [vmem:[%s6856_s30 + $0x18] sm:$0xff] (!%p5283_p5)  }
0x10a0   : > { %4785 = vadd.xlane.f32.xlu0 (!%p5283_p5), %v4784_v6  ;;  %5572 = vmatprep.subr.bf16.mxu0 (!%p5283_p5), %v5736_v58  ;;  %v4896_v42 = vsel (!%p5283_p5), %vm1122_vm1, %v5704_v9, 0 }
0x10a1   : > { %4777 = vst.msk [vmem:[#allocation2 + $0x8] sm:$0xff] %vm1122_vm1, %v4775_v5  ;;  %v4787_v8 = vsel (!%p5283_p5), %vm1122_vm1, %v4775_v5, 0.0 }
0x10a4   : > { %4788 = vadd.xlane.f32.xlu0 %v4787_v8 }
0x10a7   : > { %5573 = vmatpush3.bf16.xpose.msra.mxu0 %v4896_v42 }
0x10a8   : > { %5574 = vmatprep.subr.bf16.mxu0 %v5736_v58 }
0x10af   : > { %5575 = vmatpush3.bf16.xpose.msra.mxu0 %v4899_v35 }
0x10b0   : > { %5576 = vmatprep.subr.bf16.mxu0 %v5736_v58 }
0x10b7   : > { %5577 = vmatpush3.bf16.xpose.msra.mxu0 %v4902_v21 }
0x10b8   : > { %5578 = vmatprep.subr.bf16.mxu0 %v5736_v58 }
0x10bf   : > { %5579 = vmatpush3.bf16.xpose.msra.mxu0 %v4905_v14 }
0x10c0   : > { %5580 = vmatprep.subr.bf16.mxu0 %v5736_v58 }
0x10c7   : > { %5581 = vmatpush3.bf16.xpose.msra.mxu0 %v4908_v16 }
0x112d   : > { %v4786_v11 = vpop.xlane.xlu0 %4785 }
0x112e   : > { %v4790_v30 = vmul.f32 0.03125, %v4786_v11 }
0x1130   : > { %v4792_v0 = vsub.f32 %v4774_v63, %v4790_v30 }
0x1131   : > { %v4789_v13 = vpop.xlane.xlu0 %4788 }
0x1132   : > { %v4791_v3 = vmul.f32 0.03125, %v4789_v13  ;;  %v4794_v1 = vmul.f32 %v4792_v0, %v4792_v0 }
0x1134   : > { %v4793_v10 = vsub.f32 %v4775_v5, %v4791_v3  ;;  %v4796_v19 = vsel %vm1122_vm1, %v4794_v1, 0.0 }
0x1135   : > { %4797 = vadd.xlane.f32.xlu1 %v4796_v19 }
0x1136   : > { %v4795_v4 = vmul.f32 %v4793_v10, %v4793_v10 }
0x1138   : > { %v4799_v12 = vsel %vm1122_vm1, %v4795_v4, 0.0 }
0x1139   : > { %4800 = vadd.xlane.f32.xlu1 %v4799_v12 }
0x11c2   : > { %v4798_v18 = vpop.xlane.xlu1 %4797 }
0x11c3   : > { %v4802_v31 = vmul.f32 0.03125, %v4798_v18 }
0x11c5   : > { %v4804_v32 = vadd.f32 1e-05, %v4802_v31 }
0x11c6   : > { %v4801_v33 = vpop.xlane.xlu1 %4800 }
0x11c7   : > { %5709 = vrsqrt.f32 %v4804_v32  ;;  %v4803_v36 = vmul.f32 0.03125, %v4801_v33 }
0x11c9   : > { %v4805_v37 = vadd.f32 1e-05, %v4803_v36 }
0x11cb   : > { %5711 = vrsqrt.f32 %v4805_v37 }
0x11d1   : > { %v5710_v39 = vpop.eup %5709 }
0x11d2   : > { %v4808_v40 = vmul.f32 %v5710_v39, %v4792_v0 }
0x11d4   : > { %v4816_v25 = vmul.f32 %v5284_v38, %v4808_v40 }
0x11d5   : > { %v5712_v23 = vpop.eup %5711 }
0x11d6   : > { %v4809_v24 = vmul.f32 %v5712_v23, %v4793_v10  ;;  %v4824_v27 = vadd.f32 %v5285_v26, %v4816_v25 }
0x11d8   : > { %v4817_v41 = vmul.f32 %v5284_v38, %v4809_v24 }
0x11da   : > { %v4825_v55 = vadd.f32 %v5285_v26, %v4817_v41 }
0x11dc   : > { %v4826_v43 = vpack.c.bf16 %v4825_v55, %v4824_v27 }
0x11de   : > { %5583 = vmatmul.mubr.msk.bf16.vlgmr.msra.gmra.mrb[0].mxu0 %vm1122_vm1, %v4826_v43 }
0x12b1   : > { %v4944_v45 = vpop.f32.mrb[0].mxu0 }
0x12b2   : > { %4951 = vst [vmem:[%s6859_s25] sm:$0xff] %v4944_v45  ;;  %v5584_v46 = vpop.f32.mrb[1].mxu0 }
0x12b3   : > { %v4947_v47 = vpop.f32.mrb[2].mxu0 }
0x12b4   : > { %4952 = vst [vmem:[%s6859_s25 + $0x8] sm:$0xff] %v4947_v47  ;;  %v5585_v49 = vpop.f32.mrb[3].mxu0 }
0x12b5 PF: > { %s6860_s12 = sld [smem:[#allocation3_spill]] }
0x12bb   : > { %s37_s7 = sadd.s32 1, %s6860_s12  }
0x12bc   : > { %p34_p6 = scmp.ge.s32.totalorder %s37_s7, 4  }
0x12be   :  { %36 = sbr.rel (!%p34_p6) target bundleno = 21 (0x15), region = 219 }

</bundles_post_ra>
